<compile_context>
chip_gen: v7x
topology: tpu7x:2x2x1
jax: 0.10.0
libtpu: 0.0.40
codegen_flags: <defaults>
</compile_context>

<pallas_src>
import functools

import jax
import jax.numpy as jnp
from jax.experimental import pallas as pl
from jax.experimental.pallas import tpu as pltpu


_EPS = 1e-5


# ----------------------------- in-kernel helpers ----------------------------

def _ln(x, g, b, eps=_EPS):
    """LayerNorm over the last axis, f32 math (v5e has no bf16 VPU/EUP)."""
    mean = jnp.mean(x, axis=-1, keepdims=True)
    var = jnp.mean((x - mean) * (x - mean), axis=-1, keepdims=True)
    return (x - mean) * jax.lax.rsqrt(var + eps) * g + b


def _heads_attention(q_t, k_t, v_t, wo_ref, heads, scale, out_shape):
    """Multi-head attention from transposed activations, fully in-kernel.

    q_t: (D, Sq), k_t/v_t: (D, Sk) f32.  Per-head slices are 8-aligned sublane
    slices (tile-aligned for f32).  The output projection is accumulated per
    head against wo_ref[h] : (Dh, D) so the merged (Sq, D) result never needs a
    lane-axis concatenate.  Returns (Sq, D) f32 = concat_h(attn_h) @ W_o.
    """
    D, Sq = q_t.shape
    dh = D // heads
    acc = jnp.zeros(out_shape, jnp.float32)
    for h in range(heads):                                  # static unroll
        qT = q_t[h * dh:(h + 1) * dh, :]                    # (dh, Sq)
        kT = k_t[h * dh:(h + 1) * dh, :]                    # (dh, Sk)
        vT = v_t[h * dh:(h + 1) * dh, :]                    # (dh, Sk)
        s = jnp.dot(qT.T, kT, preferred_element_type=jnp.float32) * scale
        s = s - jnp.max(s, axis=-1, keepdims=True)          # f32 softmax
        p = jnp.exp(s)
        p = p * pl.reciprocal(jnp.sum(p, axis=-1, keepdims=True), approx=True)
        o_h = jnp.dot(p, vT.T, preferred_element_type=jnp.float32)   # (Sq, dh)
        acc = acc + jnp.dot(o_h.astype(jnp.bfloat16), wo_ref[h],
                            preferred_element_type=jnp.float32)      # (Sq, D)
    return acc


# ------------------------------- kernel bodies ------------------------------

def _self_attn_kernel(x_ref, g_ref, b_ref, wqkv_ref, bqkv_ref, wo_ref, bo_ref,
                      o_ref, *, heads, scale):
    x = x_ref[0]                                            # (S, D) f32
    S, D = x.shape
    h = _ln(x, g_ref[...], b_ref[...])
    # Single MXU matmul for the fused QKV projection (weight in (out, in)
    # layout); bf16 operands, f32 accumulation.
    qkv_t = jnp.dot(wqkv_ref[...], h.T.astype(jnp.bfloat16),
                    preferred_element_type=jnp.float32) + bqkv_ref[...]  # (3D,S)
    attn = _heads_attention(qkv_t[:D, :], qkv_t[D:2 * D, :], qkv_t[2 * D:, :],
                            wo_ref, heads, scale, (S, D))
    o_ref[0] = x + attn + bo_ref[...]


def _cross_attn_kernel(x_ref, c_ref, g_ref, b_ref, wq_ref, bq_ref, wkv_ref,
                       bkv_ref, wo_ref, bo_ref, o_ref, *, heads, scale):
    x = x_ref[0]                                            # (S, D)  decoder
    c = c_ref[0]                                            # (Sc, D) encoder ctx
    S, D = x.shape
    h = _ln(x, g_ref[...], b_ref[...])
    q_t = jnp.dot(wq_ref[...], h.T.astype(jnp.bfloat16),
                  preferred_element_type=jnp.float32) + bq_ref[...]      # (D, S)
    kv_t = jnp.dot(wkv_ref[...], c.T.astype(jnp.bfloat16),
                   preferred_element_type=jnp.float32) + bkv_ref[...]    # (2D,Sc)
    attn = _heads_attention(q_t, kv_t[:D, :], kv_t[D:, :],
                            wo_ref, heads, scale, (S, D))
    o_ref[0] = x + attn + bo_ref[...]


def _ff_kernel(x_ref, g_ref, b_ref, w1_ref, b1_ref, w2_ref, b2_ref, o_ref):
    x = x_ref[0]                                            # (S, D) f32
    h = _ln(x, g_ref[...], b_ref[...])
    h1 = jnp.dot(h.astype(jnp.bfloat16), w1_ref[...],
                 preferred_element_type=jnp.float32) + b1_ref[...]       # (S, F)
    # TODO(synk): PyTorch nn.GELU defaults to exact erf GELU; tanh approximation
    # is used here for robust Mosaic lowering (tiny numerical difference).
    h1 = jax.nn.gelu(h1, approximate=True)
    o_ref[0] = x + jnp.dot(h1.astype(jnp.bfloat16), w2_ref[...],
                           preferred_element_type=jnp.float32) + b2_ref[...]


def _layernorm_kernel(x_ref, g_ref, b_ref, o_ref):
    o_ref[0] = _ln(x_ref[0], g_ref[...], b_ref[...])


def _head_ce_kernel(x_ref, g_ref, b_ref, w_ref, bw_ref, t_ref, o_ref, *,
                    apply_ln):
    @pl.when(pl.program_id(0) == 0)
    def _():
        o_ref[...] = jnp.zeros_like(o_ref)
    x = x_ref[...]                                          # (tn, D) f32
    h = _ln(x, g_ref[...], b_ref[...]) if apply_ln else x
    logits = jnp.dot(h.astype(jnp.bfloat16), w_ref[...],
                     preferred_element_type=jnp.float32) + bw_ref[...]   # (tn, V)
    m = jnp.max(logits, axis=-1, keepdims=True)
    lse = jnp.log(jnp.sum(jnp.exp(logits - m), axis=-1, keepdims=True)) + m
    col = jax.lax.broadcasted_iota(jnp.int32, logits.shape, 1)
    tgt_logit = jnp.sum(jnp.where(col == t_ref[...], logits, 0.0),
                        axis=-1, keepdims=True)             # gather, no one-hot
    o_ref[...] += jnp.sum(lse - tgt_logit)                  # resident accumulator


# ------------------------------ kernel wrappers ------------------------------

def fused_self_attention(x, lp, heads):
    B, S, D = x.shape
    scale = (D // heads) ** -0.5
    return pl.pallas_call(
        functools.partial(_self_attn_kernel, heads=heads, scale=scale),
        out_shape=jax.ShapeDtypeStruct((B, S, D), jnp.float32),
        grid=(B,),
        in_specs=[
            pl.BlockSpec((1, S, D), lambda i: (i, 0, 0)),
            pl.BlockSpec((1, D), lambda i: (0, 0)),
            pl.BlockSpec((1, D), lambda i: (0, 0)),
            pl.BlockSpec((3 * D, D), lambda i: (0, 0)),
            pl.BlockSpec((3 * D, 1), lambda i: (0, 0)),
            pl.BlockSpec((heads, D // heads, D), lambda i: (0, 0, 0)),
            pl.BlockSpec((1, D), lambda i: (0, 0)),
        ],
        out_specs=pl.BlockSpec((1, S, D), lambda i: (i, 0, 0)),
        compiler_params=pltpu.CompilerParams(dimension_semantics=("parallel",)),
    )(x, lp["ln1_g"], lp["ln1_b"], lp["wqkv"], lp["bqkv"], lp["wo"], lp["bo"])


def fused_cross_attention(x, ctx, lp, heads):
    B, S, D = x.shape
    _, Sc, _ = ctx.shape
    scale = (D // heads) ** -0.5
    return pl.pallas_call(
        functools.partial(_cross_attn_kernel, heads=heads, scale=scale),
        out_shape=jax.ShapeDtypeStruct((B, S, D), jnp.float32),
        grid=(B,),
        in_specs=[
            pl.BlockSpec((1, S, D), lambda i: (i, 0, 0)),
            pl.BlockSpec((1, Sc, D), lambda i: (i, 0, 0)),
            pl.BlockSpec((1, D), lambda i: (0, 0)),
            pl.BlockSpec((1, D), lambda i: (0, 0)),
            pl.BlockSpec((D, D), lambda i: (0, 0)),
            pl.BlockSpec((D, 1), lambda i: (0, 0)),
            pl.BlockSpec((2 * D, D), lambda i: (0, 0)),
            pl.BlockSpec((2 * D, 1), lambda i: (0, 0)),
            pl.BlockSpec((heads, D // heads, D), lambda i: (0, 0, 0)),
            pl.BlockSpec((1, D), lambda i: (0, 0)),
        ],
        out_specs=pl.BlockSpec((1, S, D), lambda i: (i, 0, 0)),
        compiler_params=pltpu.CompilerParams(dimension_semantics=("parallel",)),
    )(x, ctx, lp["lnc_g"], lp["lnc_b"], lp["wcq"], lp["bcq"],
      lp["wckv"], lp["bckv"], lp["wco"], lp["bco"])


def fused_feedforward(x, lp):
    B, S, D = x.shape
    F = lp["w1"].shape[-1]
    return pl.pallas_call(
        _ff_kernel,
        out_shape=jax.ShapeDtypeStruct((B, S, D), jnp.float32),
        grid=(B,),
        in_specs=[
            pl.BlockSpec((1, S, D), lambda i: (i, 0, 0)),
            pl.BlockSpec((1, D), lambda i: (0, 0)),
            pl.BlockSpec((1, D), lambda i: (0, 0)),
            pl.BlockSpec((D, F), lambda i: (0, 0)),
            pl.BlockSpec((1, F), lambda i: (0, 0)),
            pl.BlockSpec((F, D), lambda i: (0, 0)),
            pl.BlockSpec((1, D), lambda i: (0, 0)),
        ],
        out_specs=pl.BlockSpec((1, S, D), lambda i: (i, 0, 0)),
        compiler_params=pltpu.CompilerParams(dimension_semantics=("parallel",)),
    )(x, lp["ln2_g"], lp["ln2_b"], lp["w1"], lp["b1"], lp["w2"], lp["b2"])


def layernorm3d(x, g, b):
    B, S, D = x.shape
    return pl.pallas_call(
        _layernorm_kernel,
        out_shape=jax.ShapeDtypeStruct((B, S, D), jnp.float32),
        grid=(B,),
        in_specs=[pl.BlockSpec((1, S, D), lambda i: (i, 0, 0)),
                  pl.BlockSpec((1, D), lambda i: (0, 0)),
                  pl.BlockSpec((1, D), lambda i: (0, 0))],
        out_specs=pl.BlockSpec((1, S, D), lambda i: (i, 0, 0)),
        compiler_params=pltpu.CompilerParams(dimension_semantics=("parallel",)),
    )(x, g, b)


def _row_tile(n, max_tile=256):
    """Row tile: full array when small, otherwise an 8-aligned divisor <= 256
    (keeps double-buffered blocks far below v7x's 32 MiB scoped VMEM)."""
    if n <= max_tile:
        return n
    t = max_tile - max_tile % 8
    while t >= 8:
        if n % t == 0:
            return t
        t -= 8
    return n


def fused_head_ce(x, g, b, w, bw, targets, apply_ln):
    """(optional final LN) -> x @ w + bw -> mean token-level cross entropy."""
    N, D = x.shape
    V = w.shape[-1]
    tn = _row_tile(N)
    t2 = targets.reshape(N, 1).astype(jnp.int32)
    nll = pl.pallas_call(
        functools.partial(_head_ce_kernel, apply_ln=apply_ln),
        out_shape=jax.ShapeDtypeStruct((1, 1), jnp.float32),
        grid=(N // tn,),
        in_specs=[
            pl.BlockSpec((tn, D), lambda i: (i, 0)),
            pl.BlockSpec((1, D), lambda i: (0, 0)),
            pl.BlockSpec((1, D), lambda i: (0, 0)),
            pl.BlockSpec((D, V), lambda i: (0, 0)),
            pl.BlockSpec((1, V), lambda i: (0, 0)),
            pl.BlockSpec((tn, 1), lambda i: (i, 0)),
        ],
        out_specs=pl.BlockSpec((1, 1), lambda i: (0, 0)),
        compiler_params=pltpu.CompilerParams(dimension_semantics=("arbitrary",)),
    )(x, g, b, w, bw, t2)
    return nll[0, 0] / N


# ------------------------- parameter initialization ------------------------

def _w(key, shape, scale=0.02, dtype=jnp.bfloat16):
    # Matmul weights stored in bf16 (half the weight DMA bytes; f32 accumulate).
    return (scale * jax.random.normal(key, shape, jnp.float32)).astype(dtype)


def _layer_params(key, dim, heads, ff_inner, cross):
    ks = jax.random.split(key, 8)
    dh = dim // heads
    p = {
        "ln1_g": jnp.ones((1, dim), jnp.float32),
        "ln1_b": jnp.zeros((1, dim), jnp.float32),
        "wqkv": _w(ks[0], (3 * dim, dim)),           # fused QKV, (out, in) layout
        "bqkv": jnp.zeros((3 * dim, 1), jnp.float32),
        "wo": _w(ks[1], (heads, dh, dim)),           # W_o stacked per head
        "bo": jnp.zeros((1, dim), jnp.float32),
        "ln2_g": jnp.ones((1, dim), jnp.float32),
        "ln2_b": jnp.zeros((1, dim), jnp.float32),
        "w1": _w(ks[2], (dim, ff_inner)),
        "b1": jnp.zeros((1, ff_inner), jnp.float32),
        "w2": _w(ks[3], (ff_inner, dim)),
        "b2": jnp.zeros((1, dim), jnp.float32),
    }
    if cross:
        p.update({
            "lnc_g": jnp.ones((1, dim), jnp.float32),
            "lnc_b": jnp.zeros((1, dim), jnp.float32),
            "wcq": _w(ks[4], (dim, dim)),
            "bcq": jnp.zeros((dim, 1), jnp.float32),
            "wckv": _w(ks[5], (2 * dim, dim)),       # fused KV for cross-attn
            "bckv": jnp.zeros((2 * dim, 1), jnp.float32),
            "wco": _w(ks[6], (heads, dh, dim)),
            "bco": jnp.zeros((1, dim), jnp.float32),
        })
    return p


def _stack_params(key, vocab, dim, depth, heads, max_seq_len, ff_inner, cross,
                  with_logits):
    ks = jax.random.split(key, depth + 3)
    p = {
        "tok_emb": 0.02 * jax.random.normal(ks[0], (vocab, dim), jnp.float32),
        "pos_emb": 0.02 * jax.random.normal(ks[1], (max_seq_len, dim), jnp.float32),
        "layers": [_layer_params(ks[2 + i], dim, heads, ff_inner, cross)
                   for i in range(depth)],
        "fn_g": jnp.ones((1, dim), jnp.float32),
        "fn_b": jnp.zeros((1, dim), jnp.float32),
    }
    if with_logits:
        p["to_logits_w"] = _w(ks[-1], (dim, vocab))
        p["to_logits_b"] = jnp.zeros((1, vocab), jnp.float32)
    return p


def init_model(key, *, vocab, dim, depth, heads, max_seq_len, ff_mult,
               n_len_classes):
    assert dim % heads == 0
    ff_inner = dim * ff_mult
    ke, k1, k2, kl = jax.random.split(key, 4)
    return {
        "encoder": _stack_params(ke, vocab, dim, depth, heads, max_seq_len,
                                 ff_inner, cross=False, with_logits=False),
        "decoder1": _stack_params(k1, vocab, dim, depth, heads, max_seq_len,
                                  ff_inner, cross=True, with_logits=True),
        "decoder2": _stack_params(k2, vocab, dim, depth, heads, max_seq_len,
                                  ff_inner, cross=True, with_logits=True),
        "length_predictor": {
            "w": _w(kl, (dim, n_len_classes)),
            "b": jnp.zeros((1, n_len_classes), jnp.float32),
        },
    }


# ------------------------------ model forward ------------------------------

def transformer_layers(params, tokens, heads, context=None):
    """Embeddings + (self-attn [-> cross-attn] -> FF) x depth; pre-final-norm."""
    B, S = tokens.shape
    x = (jnp.take(params["tok_emb"], tokens, axis=0)
         + params["pos_emb"][:S][None]).astype(jnp.float32)      # (B, S, D)
    for lp in params["layers"]:
        x = fused_self_attention(x, lp, heads)
        if context is not None:
            x = fused_cross_attention(x, context, lp, heads)
        x = fused_feedforward(x, lp)
    return x


def nar_decoder_loss(params, tgt, context, heads, mask_index):
    # TODO(synk): NonAutoregressiveWrapper masks a random subset of positions per
    # step; here every target position is deterministically masked.
    B, S = tgt.shape
    masked_inp = jnp.full_like(tgt, mask_index)
    h = transformer_layers(params, masked_inp, heads, context=context)
    D = h.shape[-1]
    # Final LN + to_logits projection + cross-entropy fused into one kernel.
    return fused_head_ce(h.reshape(B * S, D), params["fn_g"], params["fn_b"],
                         params["to_logits_w"], params["to_logits_b"],
                         tgt.reshape(-1), apply_ln=True)


def length_predictor_loss(params, lp_tgt, enc):
    B, S, D = enc.shape
    pooled = jnp.mean(enc, axis=1)                               # (B, D)
    dummy_g = jnp.ones((1, D), jnp.float32)                      # LN disabled
    dummy_b = jnp.zeros((1, D), jnp.float32)
    return fused_head_ce(pooled, dummy_g, dummy_b, params["w"], params["b"],
                         lp_tgt, apply_ln=False)


def dual_nar_decoder_forward(model, src, dec1_tgt, dec2_tgt, lp_tgt,
                             *, heads, mask_index):
    enc_h = transformer_layers(model["encoder"], src, heads)
    enc = layernorm3d(enc_h, model["encoder"]["fn_g"], model["encoder"]["fn_b"])
    out1 = nar_decoder_loss(model["decoder1"], dec1_tgt, enc, heads, mask_index)
    out2 = nar_decoder_loss(model["decoder2"], dec2_tgt, enc, heads, mask_index)
    if lp_tgt is None:
        return out1 + out2
    length_out = length_predictor_loss(model["length_predictor"], lp_tgt, enc)
    return out1 + out2 + length_out


# ----------------------------------- main -----------------------------------

if __name__ == "__main__":
    B = 2
    S_ENC = 16
    S_DEC = 16
    DIM = 32
    HEADS = 4
    DEPTH = 2
    VOCAB = 64
    MAX_SEQ_LEN = 32
    FF_MULT = 4
    N_LEN_CLASSES = 32
    MASK_INDEX = 1

    key = jax.random.PRNGKey(0)
    k_param, k_src, k_d1, k_d2, k_lp = jax.random.split(key, 5)

    model = init_model(k_param, vocab=VOCAB, dim=DIM, depth=DEPTH, heads=HEADS,
                       max_seq_len=MAX_SEQ_LEN, ff_mult=FF_MULT,
                       n_len_classes=N_LEN_CLASSES)

    src = jax.random.randint(k_src, (B, S_ENC), 2, VOCAB, dtype=jnp.int32)
    dec1_tgt = jax.random.randint(k_d1, (B, S_DEC), 2, VOCAB, dtype=jnp.int32)
    dec2_tgt = jax.random.randint(k_d2, (B, S_DEC), 2, VOCAB, dtype=jnp.int32)
    lp_tgt = jax.random.randint(k_lp, (B,), 0, N_LEN_CLASSES, dtype=jnp.int32)

    fwd = jax.jit(functools.partial(dual_nar_decoder_forward,
                                    heads=HEADS, mask_index=MASK_INDEX))
    loss = fwd(model, src, dec1_tgt, dec2_tgt, lp_tgt)
    loss = jax.block_until_ready(loss)
    assert loss.shape == () and bool(jnp.isfinite(loss))
    print("KERNEL_OK")
</pallas_src>

<mosaic_0001>
module attributes {stable_mosaic.version = 11 : i64} {
  func.func @_self_attn_kernel(%arg0: i32, %arg1: memref<1x16x32xf32, #tpu.memory_space<vmem>>, %arg2: memref<1x32xf32, #tpu.memory_space<vmem>>, %arg3: memref<1x32xf32, #tpu.memory_space<vmem>>, %arg4: memref<96x32xbf16, #tpu.memory_space<vmem>>, %arg5: memref<96x1xf32, #tpu.memory_space<vmem>>, %arg6: memref<4x8x32xbf16, #tpu.memory_space<vmem>>, %arg7: memref<1x32xf32, #tpu.memory_space<vmem>>, %arg8: memref<1x16x32xf32, #tpu.memory_space<vmem>>) attributes {dimension_semantics = [#tpu.dimension_semantics<parallel>], iteration_bounds = array<i64: 2>, scalar_prefetch = 0 : i64, scratch_operands = 0 : i64, tpu.core_type = #tpu.core_type<tc>, window_params = [{transform_indices = @transform_0, window_bounds = array<i64: 1, 16, 32>}, {pipeline_mode = #tpu.pipeline_mode<synchronous>, transform_indices = @transform_1, window_bounds = array<i64: 1, 32>}, {pipeline_mode = #tpu.pipeline_mode<synchronous>, transform_indices = @transform_2, window_bounds = array<i64: 1, 32>}, {pipeline_mode = #tpu.pipeline_mode<synchronous>, transform_indices = @transform_3, window_bounds = array<i64: 96, 32>}, {pipeline_mode = #tpu.pipeline_mode<synchronous>, transform_indices = @transform_4, window_bounds = array<i64: 96, 1>}, {pipeline_mode = #tpu.pipeline_mode<synchronous>, transform_indices = @transform_5, window_bounds = array<i64: 4, 8, 32>}, {pipeline_mode = #tpu.pipeline_mode<synchronous>, transform_indices = @transform_6, window_bounds = array<i64: 1, 32>}, {transform_indices = @transform_7, window_bounds = array<i64: 1, 16, 32>}]} {
    %c0 = arith.constant 0 : index
    %c0_0 = arith.constant 0 : index
    %c0_1 = arith.constant 0 : index
    %0 = vector.load %arg1[%c0, %c0_0, %c0_1] : memref<1x16x32xf32, #tpu.memory_space<vmem>>, vector<1x16x32xf32>
    %1 = vector.shape_cast %0 : vector<1x16x32xf32> to vector<16x32xf32>
    %c0_2 = arith.constant 0 : index
    %c0_3 = arith.constant 0 : index
    %2 = vector.load %arg2[%c0_2, %c0_3] : memref<1x32xf32, #tpu.memory_space<vmem>>, vector<1x32xf32>
    %c0_4 = arith.constant 0 : index
    %c0_5 = arith.constant 0 : index
    %3 = vector.load %arg3[%c0_4, %c0_5] : memref<1x32xf32, #tpu.memory_space<vmem>>, vector<1x32xf32>
    %cst = arith.constant dense<0.000000e+00> : vector<16xf32>
    %4 = vector.multi_reduction <add>, %1, %cst [1] : vector<16x32xf32> to vector<16xf32>
    %5 = vector.shape_cast %4 : vector<16xf32> to vector<16x1xf32>
    %cst_6 = arith.constant 3.200000e+01 : f32
    %6 = vector.broadcast %cst_6 : f32 to vector<16x1xf32>
    %7 = arith.divf %5, %6 : vector<16x1xf32>
    %8 = vector.broadcast %7 : vector<16x1xf32> to vector<16x32xf32>
    %9 = arith.subf %1, %8 : vector<16x32xf32>
    %10 = vector.broadcast %7 : vector<16x1xf32> to vector<16x32xf32>
    %11 = arith.subf %1, %10 : vector<16x32xf32>
    %12 = arith.mulf %9, %11 : vector<16x32xf32>
    %cst_7 = arith.constant dense<0.000000e+00> : vector<16xf32>
    %13 = vector.multi_reduction <add>, %12, %cst_7 [1] : vector<16x32xf32> to vector<16xf32>
    %14 = vector.shape_cast %13 : vector<16xf32> to vector<16x1xf32>
    %cst_8 = arith.constant 3.200000e+01 : f32
    %15 = vector.broadcast %cst_8 : f32 to vector<16x1xf32>
    %16 = arith.divf %14, %15 : vector<16x1xf32>
    %17 = vector.broadcast %7 : vector<16x1xf32> to vector<16x32xf32>
    %18 = arith.subf %1, %17 : vector<16x32xf32>
    %cst_9 = arith.constant 9.99999974E-6 : f32
    %19 = vector.broadcast %cst_9 : f32 to vector<16x1xf32>
    %20 = arith.addf %16, %19 : vector<16x1xf32>
    %21 = math.rsqrt %20 : vector<16x1xf32>
    %22 = vector.broadcast %21 : vector<16x1xf32> to vector<16x32xf32>
    %23 = arith.mulf %18, %22 : vector<16x32xf32>
    %24 = vector.broadcast %2 : vector<1x32xf32> to vector<16x32xf32>
    %25 = arith.mulf %23, %24 : vector<16x32xf32>
    %26 = vector.broadcast %3 : vector<1x32xf32> to vector<16x32xf32>
    %27 = arith.addf %25, %26 : vector<16x32xf32>
    %c0_10 = arith.constant 0 : index
    %c0_11 = arith.constant 0 : index
    %28 = vector.load %arg4[%c0_10, %c0_11] : memref<96x32xbf16, #tpu.memory_space<vmem>>, vector<96x32xbf16>
    %29 = tpu.transpose %27, [1, 0] : vector<16x32xf32> -> vector<32x16xf32>
    %30 = arith.truncf %29 : vector<32x16xf32> to vector<32x16xbf16>
    %cst_12 = arith.constant dense<0.000000e+00> : vector<96x16xf32>
    %31 = tpu.matmul %28, %30, %cst_12 {dimension_numbers = #tpu.dot_dimension_numbers<[1], [0], [0], [1], [0, 0, 1, 1], [], []>} : vector<96x32xbf16>, vector<32x16xbf16>, vector<96x16xf32> -> vector<96x16xf32>
    %c0_13 = arith.constant 0 : index
    %c0_14 = arith.constant 0 : index
    %32 = vector.load %arg5[%c0_13, %c0_14] : memref<96x1xf32, #tpu.memory_space<vmem>>, vector<96x1xf32>
    %33 = vector.broadcast %32 : vector<96x1xf32> to vector<96x16xf32>
    %34 = arith.addf %31, %33 : vector<96x16xf32>
    %35 = vector.extract_strided_slice %34 {offsets = [0, 0], sizes = [32, 16], strides = [1, 1]} : vector<96x16xf32> to vector<32x16xf32>
    %36 = vector.extract_strided_slice %34 {offsets = [32, 0], sizes = [32, 16], strides = [1, 1]} : vector<96x16xf32> to vector<32x16xf32>
    %37 = vector.extract_strided_slice %34 {offsets = [64, 0], sizes = [32, 16], strides = [1, 1]} : vector<96x16xf32> to vector<32x16xf32>
    %cst_15 = arith.constant 0.000000e+00 : f32
    %38 = vector.broadcast %cst_15 : f32 to vector<16x32xf32>
    %39 = vector.extract_strided_slice %35 {offsets = [0, 0], sizes = [8, 16], strides = [1, 1]} : vector<32x16xf32> to vector<8x16xf32>
    %40 = vector.extract_strided_slice %36 {offsets = [0, 0], sizes = [8, 16], strides = [1, 1]} : vector<32x16xf32> to vector<8x16xf32>
    %41 = vector.extract_strided_slice %37 {offsets = [0, 0], sizes = [8, 16], strides = [1, 1]} : vector<32x16xf32> to vector<8x16xf32>
    %42 = tpu.transpose %39, [1, 0] : vector<8x16xf32> -> vector<16x8xf32>
    %cst_16 = arith.constant dense<0.000000e+00> : vector<16x16xf32>
    %43 = tpu.matmul %42, %40, %cst_16 {dimension_numbers = #tpu.dot_dimension_numbers<[1], [0], [0], [1], [0, 0, 1, 1], [], []>} : vector<16x8xf32>, vector<8x16xf32>, vector<16x16xf32> -> vector<16x16xf32>
    %cst_17 = arith.constant 0.353553385 : f32
    %44 = vector.broadcast %cst_17 : f32 to vector<16x16xf32>
    %45 = arith.mulf %43, %44 : vector<16x16xf32>
    %cst_18 = arith.constant dense<0xFF800000> : vector<16xf32>
    %46 = vector.multi_reduction <maximumf>, %45, %cst_18 [1] : vector<16x16xf32> to vector<16xf32>
    %47 = vector.shape_cast %46 : vector<16xf32> to vector<16x1xf32>
    %48 = vector.broadcast %47 : vector<16x1xf32> to vector<16x16xf32>
    %49 = arith.subf %45, %48 : vector<16x16xf32>
    %50 = math.exp %49 : vector<16x16xf32>
    %cst_19 = arith.constant dense<0.000000e+00> : vector<16xf32>
    %51 = vector.multi_reduction <add>, %50, %cst_19 [1] : vector<16x16xf32> to vector<16xf32>
    %52 = vector.shape_cast %51 : vector<16xf32> to vector<16x1xf32>
    %53 = tpu.reciprocal %52 {approx = true} : vector<16x1xf32> -> vector<16x1xf32>
    %54 = vector.broadcast %53 : vector<16x1xf32> to vector<16x16xf32>
    %55 = arith.mulf %50, %54 : vector<16x16xf32>
    %56 = tpu.transpose %41, [1, 0] : vector<8x16xf32> -> vector<16x8xf32>
    %cst_20 = arith.constant dense<0.000000e+00> : vector<16x8xf32>
    %57 = tpu.matmul %55, %56, %cst_20 {dimension_numbers = #tpu.dot_dimension_numbers<[1], [0], [0], [1], [0, 0, 1, 1], [], []>} : vector<16x16xf32>, vector<16x8xf32>, vector<16x8xf32> -> vector<16x8xf32>
    %58 = arith.truncf %57 : vector<16x8xf32> to vector<16x8xbf16>
    %c0_21 = arith.constant 0 : index
    %c0_22 = arith.constant 0 : index
    %c0_23 = arith.constant 0 : index
    %59 = vector.load %arg6[%c0_21, %c0_22, %c0_23] : memref<4x8x32xbf16, #tpu.memory_space<vmem>>, vector<1x8x32xbf16>
    %60 = vector.shape_cast %59 : vector<1x8x32xbf16> to vector<8x32xbf16>
    %cst_24 = arith.constant dense<0.000000e+00> : vector<16x32xf32>
    %61 = tpu.matmul %58, %60, %cst_24 {dimension_numbers = #tpu.dot_dimension_numbers<[1], [0], [0], [1], [0, 0, 1, 1], [], []>} : vector<16x8xbf16>, vector<8x32xbf16>, vector<16x32xf32> -> vector<16x32xf32>
    %62 = arith.addf %38, %61 : vector<16x32xf32>
    %63 = vector.extract_strided_slice %35 {offsets = [8, 0], sizes = [8, 16], strides = [1, 1]} : vector<32x16xf32> to vector<8x16xf32>
    %64 = vector.extract_strided_slice %36 {offsets = [8, 0], sizes = [8, 16], strides = [1, 1]} : vector<32x16xf32> to vector<8x16xf32>
    %65 = vector.extract_strided_slice %37 {offsets = [8, 0], sizes = [8, 16], strides = [1, 1]} : vector<32x16xf32> to vector<8x16xf32>
    %66 = tpu.transpose %63, [1, 0] : vector<8x16xf32> -> vector<16x8xf32>
    %cst_25 = arith.constant dense<0.000000e+00> : vector<16x16xf32>
    %67 = tpu.matmul %66, %64, %cst_25 {dimension_numbers = #tpu.dot_dimension_numbers<[1], [0], [0], [1], [0, 0, 1, 1], [], []>} : vector<16x8xf32>, vector<8x16xf32>, vector<16x16xf32> -> vector<16x16xf32>
    %cst_26 = arith.constant 0.353553385 : f32
    %68 = vector.broadcast %cst_26 : f32 to vector<16x16xf32>
    %69 = arith.mulf %67, %68 : vector<16x16xf32>
    %cst_27 = arith.constant dense<0xFF800000> : vector<16xf32>
    %70 = vector.multi_reduction <maximumf>, %69, %cst_27 [1] : vector<16x16xf32> to vector<16xf32>
    %71 = vector.shape_cast %70 : vector<16xf32> to vector<16x1xf32>
    %72 = vector.broadcast %71 : vector<16x1xf32> to vector<16x16xf32>
    %73 = arith.subf %69, %72 : vector<16x16xf32>
    %74 = math.exp %73 : vector<16x16xf32>
    %cst_28 = arith.constant dense<0.000000e+00> : vector<16xf32>
    %75 = vector.multi_reduction <add>, %74, %cst_28 [1] : vector<16x16xf32> to vector<16xf32>
    %76 = vector.shape_cast %75 : vector<16xf32> to vector<16x1xf32>
    %77 = tpu.reciprocal %76 {approx = true} : vector<16x1xf32> -> vector<16x1xf32>
    %78 = vector.broadcast %77 : vector<16x1xf32> to vector<16x16xf32>
    %79 = arith.mulf %74, %78 : vector<16x16xf32>
    %80 = tpu.transpose %65, [1, 0] : vector<8x16xf32> -> vector<16x8xf32>
    %cst_29 = arith.constant dense<0.000000e+00> : vector<16x8xf32>
    %81 = tpu.matmul %79, %80, %cst_29 {dimension_numbers = #tpu.dot_dimension_numbers<[1], [0], [0], [1], [0, 0, 1, 1], [], []>} : vector<16x16xf32>, vector<16x8xf32>, vector<16x8xf32> -> vector<16x8xf32>
    %82 = arith.truncf %81 : vector<16x8xf32> to vector<16x8xbf16>
    %c1 = arith.constant 1 : index
    %c0_30 = arith.constant 0 : index
    %c0_31 = arith.constant 0 : index
    %83 = vector.load %arg6[%c1, %c0_30, %c0_31] : memref<4x8x32xbf16, #tpu.memory_space<vmem>>, vector<1x8x32xbf16>
    %84 = vector.shape_cast %83 : vector<1x8x32xbf16> to vector<8x32xbf16>
    %cst_32 = arith.constant dense<0.000000e+00> : vector<16x32xf32>
    %85 = tpu.matmul %82, %84, %cst_32 {dimension_numbers = #tpu.dot_dimension_numbers<[1], [0], [0], [1], [0, 0, 1, 1], [], []>} : vector<16x8xbf16>, vector<8x32xbf16>, vector<16x32xf32> -> vector<16x32xf32>
    %86 = arith.addf %62, %85 : vector<16x32xf32>
    %87 = vector.extract_strided_slice %35 {offsets = [16, 0], sizes = [8, 16], strides = [1, 1]} : vector<32x16xf32> to vector<8x16xf32>
    %88 = vector.extract_strided_slice %36 {offsets = [16, 0], sizes = [8, 16], strides = [1, 1]} : vector<32x16xf32> to vector<8x16xf32>
    %89 = vector.extract_strided_slice %37 {offsets = [16, 0], sizes = [8, 16], strides = [1, 1]} : vector<32x16xf32> to vector<8x16xf32>
    %90 = tpu.transpose %87, [1, 0] : vector<8x16xf32> -> vector<16x8xf32>
    %cst_33 = arith.constant dense<0.000000e+00> : vector<16x16xf32>
    %91 = tpu.matmul %90, %88, %cst_33 {dimension_numbers = #tpu.dot_dimension_numbers<[1], [0], [0], [1], [0, 0, 1, 1], [], []>} : vector<16x8xf32>, vector<8x16xf32>, vector<16x16xf32> -> vector<16x16xf32>
    %cst_34 = arith.constant 0.353553385 : f32
    %92 = vector.broadcast %cst_34 : f32 to vector<16x16xf32>
    %93 = arith.mulf %91, %92 : vector<16x16xf32>
    %cst_35 = arith.constant dense<0xFF800000> : vector<16xf32>
    %94 = vector.multi_reduction <maximumf>, %93, %cst_35 [1] : vector<16x16xf32> to vector<16xf32>
    %95 = vector.shape_cast %94 : vector<16xf32> to vector<16x1xf32>
    %96 = vector.broadcast %95 : vector<16x1xf32> to vector<16x16xf32>
    %97 = arith.subf %93, %96 : vector<16x16xf32>
    %98 = math.exp %97 : vector<16x16xf32>
    %cst_36 = arith.constant dense<0.000000e+00> : vector<16xf32>
    %99 = vector.multi_reduction <add>, %98, %cst_36 [1] : vector<16x16xf32> to vector<16xf32>
    %100 = vector.shape_cast %99 : vector<16xf32> to vector<16x1xf32>
    %101 = tpu.reciprocal %100 {approx = true} : vector<16x1xf32> -> vector<16x1xf32>
    %102 = vector.broadcast %101 : vector<16x1xf32> to vector<16x16xf32>
    %103 = arith.mulf %98, %102 : vector<16x16xf32>
    %104 = tpu.transpose %89, [1, 0] : vector<8x16xf32> -> vector<16x8xf32>
    %cst_37 = arith.constant dense<0.000000e+00> : vector<16x8xf32>
    %105 = tpu.matmul %103, %104, %cst_37 {dimension_numbers = #tpu.dot_dimension_numbers<[1], [0], [0], [1], [0, 0, 1, 1], [], []>} : vector<16x16xf32>, vector<16x8xf32>, vector<16x8xf32> -> vector<16x8xf32>
    %106 = arith.truncf %105 : vector<16x8xf32> to vector<16x8xbf16>
    %c2 = arith.constant 2 : index
    %c0_38 = arith.constant 0 : index
    %c0_39 = arith.constant 0 : index
    %107 = vector.load %arg6[%c2, %c0_38, %c0_39] : memref<4x8x32xbf16, #tpu.memory_space<vmem>>, vector<1x8x32xbf16>
    %108 = vector.shape_cast %107 : vector<1x8x32xbf16> to vector<8x32xbf16>
    %cst_40 = arith.constant dense<0.000000e+00> : vector<16x32xf32>
    %109 = tpu.matmul %106, %108, %cst_40 {dimension_numbers = #tpu.dot_dimension_numbers<[1], [0], [0], [1], [0, 0, 1, 1], [], []>} : vector<16x8xbf16>, vector<8x32xbf16>, vector<16x32xf32> -> vector<16x32xf32>
    %110 = arith.addf %86, %109 : vector<16x32xf32>
    %111 = vector.extract_strided_slice %35 {offsets = [24, 0], sizes = [8, 16], strides = [1, 1]} : vector<32x16xf32> to vector<8x16xf32>
    %112 = vector.extract_strided_slice %36 {offsets = [24, 0], sizes = [8, 16], strides = [1, 1]} : vector<32x16xf32> to vector<8x16xf32>
    %113 = vector.extract_strided_slice %37 {offsets = [24, 0], sizes = [8, 16], strides = [1, 1]} : vector<32x16xf32> to vector<8x16xf32>
    %114 = tpu.transpose %111, [1, 0] : vector<8x16xf32> -> vector<16x8xf32>
    %cst_41 = arith.constant dense<0.000000e+00> : vector<16x16xf32>
    %115 = tpu.matmul %114, %112, %cst_41 {dimension_numbers = #tpu.dot_dimension_numbers<[1], [0], [0], [1], [0, 0, 1, 1], [], []>} : vector<16x8xf32>, vector<8x16xf32>, vector<16x16xf32> -> vector<16x16xf32>
    %cst_42 = arith.constant 0.353553385 : f32
    %116 = vector.broadcast %cst_42 : f32 to vector<16x16xf32>
    %117 = arith.mulf %115, %116 : vector<16x16xf32>
    %cst_43 = arith.constant dense<0xFF800000> : vector<16xf32>
    %118 = vector.multi_reduction <maximumf>, %117, %cst_43 [1] : vector<16x16xf32> to vector<16xf32>
    %119 = vector.shape_cast %118 : vector<16xf32> to vector<16x1xf32>
    %120 = vector.broadcast %119 : vector<16x1xf32> to vector<16x16xf32>
    %121 = arith.subf %117, %120 : vector<16x16xf32>
    %122 = math.exp %121 : vector<16x16xf32>
    %cst_44 = arith.constant dense<0.000000e+00> : vector<16xf32>
    %123 = vector.multi_reduction <add>, %122, %cst_44 [1] : vector<16x16xf32> to vector<16xf32>
    %124 = vector.shape_cast %123 : vector<16xf32> to vector<16x1xf32>
    %125 = tpu.reciprocal %124 {approx = true} : vector<16x1xf32> -> vector<16x1xf32>
    %126 = vector.broadcast %125 : vector<16x1xf32> to vector<16x16xf32>
    %127 = arith.mulf %122, %126 : vector<16x16xf32>
    %128 = tpu.transpose %113, [1, 0] : vector<8x16xf32> -> vector<16x8xf32>
    %cst_45 = arith.constant dense<0.000000e+00> : vector<16x8xf32>
    %129 = tpu.matmul %127, %128, %cst_45 {dimension_numbers = #tpu.dot_dimension_numbers<[1], [0], [0], [1], [0, 0, 1, 1], [], []>} : vector<16x16xf32>, vector<16x8xf32>, vector<16x8xf32> -> vector<16x8xf32>
    %130 = arith.truncf %129 : vector<16x8xf32> to vector<16x8xbf16>
    %c3 = arith.constant 3 : index
    %c0_46 = arith.constant 0 : index
    %c0_47 = arith.constant 0 : index
    %131 = vector.load %arg6[%c3, %c0_46, %c0_47] : memref<4x8x32xbf16, #tpu.memory_space<vmem>>, vector<1x8x32xbf16>
    %132 = vector.shape_cast %131 : vector<1x8x32xbf16> to vector<8x32xbf16>
    %cst_48 = arith.constant dense<0.000000e+00> : vector<16x32xf32>
    %133 = tpu.matmul %130, %132, %cst_48 {dimension_numbers = #tpu.dot_dimension_numbers<[1], [0], [0], [1], [0, 0, 1, 1], [], []>} : vector<16x8xbf16>, vector<8x32xbf16>, vector<16x32xf32> -> vector<16x32xf32>
    %134 = arith.addf %110, %133 : vector<16x32xf32>
    %135 = arith.addf %1, %134 : vector<16x32xf32>
    %c0_49 = arith.constant 0 : index
    %c0_50 = arith.constant 0 : index
    %136 = vector.load %arg7[%c0_49, %c0_50] : memref<1x32xf32, #tpu.memory_space<vmem>>, vector<1x32xf32>
    %137 = vector.broadcast %136 : vector<1x32xf32> to vector<16x32xf32>
    %138 = arith.addf %135, %137 : vector<16x32xf32>
    %c0_51 = arith.constant 0 : index
    %c0_52 = arith.constant 0 : index
    %c0_53 = arith.constant 0 : index
    %139 = vector.load %arg8[%c0_51, %c0_52, %c0_53] : memref<1x16x32xf32, #tpu.memory_space<vmem>>, vector<1x16x32xf32>
    %140 = vector.shape_cast %139 : vector<1x16x32xf32> to vector<16x32xf32>
    %141 = vector.shape_cast %138 : vector<16x32xf32> to vector<1x16x32xf32>
    tpu.vector_store %arg8[%c0_51, %c0_52, %c0_53], %141 {strides = array<i32>} : memref<1x16x32xf32, #tpu.memory_space<vmem>>, vector<1x16x32xf32>,
    return
  }
  func.func @transform_0(%arg0: i32) -> (i32, i32, i32) {
    %c0_i32 = arith.constant 0 : i32
    %c0_i32_0 = arith.constant 0 : i32
    %c0_i32_1 = arith.constant 0 : i32
    return %arg0, %c0_i32, %c0_i32_0 : i32, i32, i32
  }
  func.func @transform_1(%arg0: i32) -> (i32, i32) {
    %c0_i32 = arith.constant 0 : i32
    %c0_i32_0 = arith.constant 0 : i32
    %c0_i32_1 = arith.constant 0 : i32
    return %c0_i32, %c0_i32_0 : i32, i32
  }
  func.func @transform_2(%arg0: i32) -> (i32, i32) {
    %c0_i32 = arith.constant 0 : i32
    %c0_i32_0 = arith.constant 0 : i32
    %c0_i32_1 = arith.constant 0 : i32
    return %c0_i32, %c0_i32_0 : i32, i32
  }
  func.func @transform_3(%arg0: i32) -> (i32, i32) {
    %c0_i32 = arith.constant 0 : i32
    %c0_i32_0 = arith.constant 0 : i32
    %c0_i32_1 = arith.constant 0 : i32
    return %c0_i32, %c0_i32_0 : i32, i32
  }
  func.func @transform_4(%arg0: i32) -> (i32, i32) {
    %c0_i32 = arith.constant 0 : i32
    %c0_i32_0 = arith.constant 0 : i32
    %c0_i32_1 = arith.constant 0 : i32
    return %c0_i32, %c0_i32_0 : i32, i32
  }
  func.func @transform_5(%arg0: i32) -> (i32, i32, i32) {
    %c0_i32 = arith.constant 0 : i32
    %c0_i32_0 = arith.constant 0 : i32
    %c0_i32_1 = arith.constant 0 : i32
    %c0_i32_2 = arith.constant 0 : i32
    return %c0_i32, %c0_i32_0, %c0_i32_1 : i32, i32, i32
  }
  func.func @transform_6(%arg0: i32) -> (i32, i32) {
    %c0_i32 = arith.constant 0 : i32
    %c0_i32_0 = arith.constant 0 : i32
    %c0_i32_1 = arith.constant 0 : i32
    return %c0_i32, %c0_i32_0 : i32, i32
  }
  func.func @transform_7(%arg0: i32) -> (i32, i32, i32) {
    %c0_i32 = arith.constant 0 : i32
    %c0_i32_0 = arith.constant 0 : i32
    %c0_i32_1 = arith.constant 0 : i32
    return %arg0, %c0_i32, %c0_i32_0 : i32, i32, i32
  }
}

module attributes {stable_mosaic.version = 11 : i64} {
  func.func @_layernorm_kernel(%arg0: i32, %arg1: memref<1x16x32xf32, #tpu.memory_space<vmem>>, %arg2: memref<1x32xf32, #tpu.memory_space<vmem>>, %arg3: memref<1x32xf32, #tpu.memory_space<vmem>>, %arg4: memref<1x16x32xf32, #tpu.memory_space<vmem>>) attributes {dimension_semantics = [#tpu.dimension_semantics<parallel>], iteration_bounds = array<i64: 2>, scalar_prefetch = 0 : i64, scratch_operands = 0 : i64, tpu.core_type = #tpu.core_type<tc>, window_params = [{transform_indices = @transform_0, window_bounds = array<i64: 1, 16, 32>}, {pipeline_mode = #tpu.pipeline_mode<synchronous>, transform_indices = @transform_1, window_bounds = array<i64: 1, 32>}, {pipeline_mode = #tpu.pipeline_mode<synchronous>, transform_indices = @transform_2, window_bounds = array<i64: 1, 32>}, {transform_indices = @transform_3, window_bounds = array<i64: 1, 16, 32>}]} {
    %c0 = arith.constant 0 : index
    %c0_0 = arith.constant 0 : index
    %c0_1 = arith.constant 0 : index
    %0 = vector.load %arg1[%c0, %c0_0, %c0_1] : memref<1x16x32xf32, #tpu.memory_space<vmem>>, vector<1x16x32xf32>
    %1 = vector.shape_cast %0 : vector<1x16x32xf32> to vector<16x32xf32>
    %c0_2 = arith.constant 0 : index
    %c0_3 = arith.constant 0 : index
    %2 = vector.load %arg2[%c0_2, %c0_3] : memref<1x32xf32, #tpu.memory_space<vmem>>, vector<1x32xf32>
    %c0_4 = arith.constant 0 : index
    %c0_5 = arith.constant 0 : index
    %3 = vector.load %arg3[%c0_4, %c0_5] : memref<1x32xf32, #tpu.memory_space<vmem>>, vector<1x32xf32>
    %cst = arith.constant dense<0.000000e+00> : vector<16xf32>
    %4 = vector.multi_reduction <add>, %1, %cst [1] : vector<16x32xf32> to vector<16xf32>
    %5 = vector.shape_cast %4 : vector<16xf32> to vector<16x1xf32>
    %cst_6 = arith.constant 3.200000e+01 : f32
    %6 = vector.broadcast %cst_6 : f32 to vector<16x1xf32>
    %7 = arith.divf %5, %6 : vector<16x1xf32>
    %8 = vector.broadcast %7 : vector<16x1xf32> to vector<16x32xf32>
    %9 = arith.subf %1, %8 : vector<16x32xf32>
    %10 = vector.broadcast %7 : vector<16x1xf32> to vector<16x32xf32>
    %11 = arith.subf %1, %10 : vector<16x32xf32>
    %12 = arith.mulf %9, %11 : vector<16x32xf32>
    %cst_7 = arith.constant dense<0.000000e+00> : vector<16xf32>
    %13 = vector.multi_reduction <add>, %12, %cst_7 [1] : vector<16x32xf32> to vector<16xf32>
    %14 = vector.shape_cast %13 : vector<16xf32> to vector<16x1xf32>
    %cst_8 = arith.constant 3.200000e+01 : f32
    %15 = vector.broadcast %cst_8 : f32 to vector<16x1xf32>
    %16 = arith.divf %14, %15 : vector<16x1xf32>
    %17 = vector.broadcast %7 : vector<16x1xf32> to vector<16x32xf32>
    %18 = arith.subf %1, %17 : vector<16x32xf32>
    %cst_9 = arith.constant 9.99999974E-6 : f32
    %19 = vector.broadcast %cst_9 : f32 to vector<16x1xf32>
    %20 = arith.addf %16, %19 : vector<16x1xf32>
    %21 = math.rsqrt %20 : vector<16x1xf32>
    %22 = vector.broadcast %21 : vector<16x1xf32> to vector<16x32xf32>
    %23 = arith.mulf %18, %22 : vector<16x32xf32>
    %24 = vector.broadcast %2 : vector<1x32xf32> to vector<16x32xf32>
    %25 = arith.mulf %23, %24 : vector<16x32xf32>
    %26 = vector.broadcast %3 : vector<1x32xf32> to vector<16x32xf32>
    %27 = arith.addf %25, %26 : vector<16x32xf32>
    %c0_10 = arith.constant 0 : index
    %c0_11 = arith.constant 0 : index
    %c0_12 = arith.constant 0 : index
    %28 = vector.load %arg4[%c0_10, %c0_11, %c0_12] : memref<1x16x32xf32, #tpu.memory_space<vmem>>, vector<1x16x32xf32>
    %29 = vector.shape_cast %28 : vector<1x16x32xf32> to vector<16x32xf32>
    %30 = vector.shape_cast %27 : vector<16x32xf32> to vector<1x16x32xf32>
    tpu.vector_store %arg4[%c0_10, %c0_11, %c0_12], %30 {strides = array<i32>} : memref<1x16x32xf32, #tpu.memory_space<vmem>>, vector<1x16x32xf32>,
    return
  }
  func.func @transform_0(%arg0: i32) -> (i32, i32, i32) {
    %c0_i32 = arith.constant 0 : i32
    %c0_i32_0 = arith.constant 0 : i32
    %c0_i32_1 = arith.constant 0 : i32
    return %arg0, %c0_i32, %c0_i32_0 : i32, i32, i32
  }
  func.func @transform_1(%arg0: i32) -> (i32, i32) {
    %c0_i32 = arith.constant 0 : i32
    %c0_i32_0 = arith.constant 0 : i32
    %c0_i32_1 = arith.constant 0 : i32
    return %c0_i32, %c0_i32_0 : i32, i32
  }
  func.func @transform_2(%arg0: i32) -> (i32, i32) {
    %c0_i32 = arith.constant 0 : i32
    %c0_i32_0 = arith.constant 0 : i32
    %c0_i32_1 = arith.constant 0 : i32
    return %c0_i32, %c0_i32_0 : i32, i32
  }
  func.func @transform_3(%arg0: i32) -> (i32, i32, i32) {
    %c0_i32 = arith.constant 0 : i32
    %c0_i32_0 = arith.constant 0 : i32
    %c0_i32_1 = arith.constant 0 : i32
    return %arg0, %c0_i32, %c0_i32_0 : i32, i32, i32
  }
}

module attributes {stable_mosaic.version = 11 : i64} {
  func.func @_ff_kernel(%arg0: i32, %arg1: memref<1x16x32xf32, #tpu.memory_space<vmem>>, %arg2: memref<1x32xf32, #tpu.memory_space<vmem>>, %arg3: memref<1x32xf32, #tpu.memory_space<vmem>>, %arg4: memref<32x128xbf16, #tpu.memory_space<vmem>>, %arg5: memref<1x128xf32, #tpu.memory_space<vmem>>, %arg6: memref<128x32xbf16, #tpu.memory_space<vmem>>, %arg7: memref<1x32xf32, #tpu.memory_space<vmem>>, %arg8: memref<1x16x32xf32, #tpu.memory_space<vmem>>) attributes {dimension_semantics = [#tpu.dimension_semantics<parallel>], iteration_bounds = array<i64: 2>, scalar_prefetch = 0 : i64, scratch_operands = 0 : i64, tpu.core_type = #tpu.core_type<tc>, window_params = [{transform_indices = @transform_0, window_bounds = array<i64: 1, 16, 32>}, {pipeline_mode = #tpu.pipeline_mode<synchronous>, transform_indices = @transform_1, window_bounds = array<i64: 1, 32>}, {pipeline_mode = #tpu.pipeline_mode<synchronous>, transform_indices = @transform_2, window_bounds = array<i64: 1, 32>}, {pipeline_mode = #tpu.pipeline_mode<synchronous>, transform_indices = @transform_3, window_bounds = array<i64: 32, 128>}, {pipeline_mode = #tpu.pipeline_mode<synchronous>, transform_indices = @transform_4, window_bounds = array<i64: 1, 128>}, {pipeline_mode = #tpu.pipeline_mode<synchronous>, transform_indices = @transform_5, window_bounds = array<i64: 128, 32>}, {pipeline_mode = #tpu.pipeline_mode<synchronous>, transform_indices = @transform_6, window_bounds = array<i64: 1, 32>}, {transform_indices = @transform_7, window_bounds = array<i64: 1, 16, 32>}]} {
    %c0 = arith.constant 0 : index
    %c0_0 = arith.constant 0 : index
    %c0_1 = arith.constant 0 : index
    %0 = vector.load %arg1[%c0, %c0_0, %c0_1] : memref<1x16x32xf32, #tpu.memory_space<vmem>>, vector<1x16x32xf32>
    %1 = vector.shape_cast %0 : vector<1x16x32xf32> to vector<16x32xf32>
    %c0_2 = arith.constant 0 : index
    %c0_3 = arith.constant 0 : index
    %2 = vector.load %arg2[%c0_2, %c0_3] : memref<1x32xf32, #tpu.memory_space<vmem>>, vector<1x32xf32>
    %c0_4 = arith.constant 0 : index
    %c0_5 = arith.constant 0 : index
    %3 = vector.load %arg3[%c0_4, %c0_5] : memref<1x32xf32, #tpu.memory_space<vmem>>, vector<1x32xf32>
    %cst = arith.constant dense<0.000000e+00> : vector<16xf32>
    %4 = vector.multi_reduction <add>, %1, %cst [1] : vector<16x32xf32> to vector<16xf32>
    %5 = vector.shape_cast %4 : vector<16xf32> to vector<16x1xf32>
    %cst_6 = arith.constant 3.200000e+01 : f32
    %6 = vector.broadcast %cst_6 : f32 to vector<16x1xf32>
    %7 = arith.divf %5, %6 : vector<16x1xf32>
    %8 = vector.broadcast %7 : vector<16x1xf32> to vector<16x32xf32>
    %9 = arith.subf %1, %8 : vector<16x32xf32>
    %10 = vector.broadcast %7 : vector<16x1xf32> to vector<16x32xf32>
    %11 = arith.subf %1, %10 : vector<16x32xf32>
    %12 = arith.mulf %9, %11 : vector<16x32xf32>
    %cst_7 = arith.constant dense<0.000000e+00> : vector<16xf32>
    %13 = vector.multi_reduction <add>, %12, %cst_7 [1] : vector<16x32xf32> to vector<16xf32>
    %14 = vector.shape_cast %13 : vector<16xf32> to vector<16x1xf32>
    %cst_8 = arith.constant 3.200000e+01 : f32
    %15 = vector.broadcast %cst_8 : f32 to vector<16x1xf32>
    %16 = arith.divf %14, %15 : vector<16x1xf32>
    %17 = vector.broadcast %7 : vector<16x1xf32> to vector<16x32xf32>
    %18 = arith.subf %1, %17 : vector<16x32xf32>
    %cst_9 = arith.constant 9.99999974E-6 : f32
    %19 = vector.broadcast %cst_9 : f32 to vector<16x1xf32>
    %20 = arith.addf %16, %19 : vector<16x1xf32>
    %21 = math.rsqrt %20 : vector<16x1xf32>
    %22 = vector.broadcast %21 : vector<16x1xf32> to vector<16x32xf32>
    %23 = arith.mulf %18, %22 : vector<16x32xf32>
    %24 = vector.broadcast %2 : vector<1x32xf32> to vector<16x32xf32>
    %25 = arith.mulf %23, %24 : vector<16x32xf32>
    %26 = vector.broadcast %3 : vector<1x32xf32> to vector<16x32xf32>
    %27 = arith.addf %25, %26 : vector<16x32xf32>
    %28 = arith.truncf %27 : vector<16x32xf32> to vector<16x32xbf16>
    %c0_10 = arith.constant 0 : index
    %c0_11 = arith.constant 0 : index
    %29 = vector.load %arg4[%c0_10, %c0_11] : memref<32x128xbf16, #tpu.memory_space<vmem>>, vector<32x128xbf16>
    %cst_12 = arith.constant dense<0.000000e+00> : vector<16x128xf32>
    %30 = tpu.matmul %28, %29, %cst_12 {dimension_numbers = #tpu.dot_dimension_numbers<[1], [0], [0], [1], [0, 0, 1, 1], [], []>} : vector<16x32xbf16>, vector<32x128xbf16>, vector<16x128xf32> -> vector<16x128xf32>
    %c0_13 = arith.constant 0 : index
    %c0_14 = arith.constant 0 : index
    %31 = vector.load %arg5[%c0_13, %c0_14] : memref<1x128xf32, #tpu.memory_space<vmem>>, vector<1x128xf32>
    %32 = vector.broadcast %31 : vector<1x128xf32> to vector<16x128xf32>
    %33 = arith.addf %30, %32 : vector<16x128xf32>
    %34 = arith.mulf %33, %33 : vector<16x128xf32>
    %35 = arith.mulf %33, %34 : vector<16x128xf32>
    %cst_15 = arith.constant 4.471500e-02 : f32
    %36 = vector.broadcast %cst_15 : f32 to vector<16x128xf32>
    %37 = arith.mulf %36, %35 : vector<16x128xf32>
    %38 = arith.addf %33, %37 : vector<16x128xf32>
    %cst_16 = arith.constant 0.797884583 : f32
    %39 = vector.broadcast %cst_16 : f32 to vector<16x128xf32>
    %40 = arith.mulf %39, %38 : vector<16x128xf32>
    %41 = math.tanh %40 : vector<16x128xf32>
    %cst_17 = arith.constant 1.000000e+00 : f32
    %42 = vector.broadcast %cst_17 : f32 to vector<16x128xf32>
    %43 = arith.addf %42, %41 : vector<16x128xf32>
    %cst_18 = arith.constant 5.000000e-01 : f32
    %44 = vector.broadcast %cst_18 : f32 to vector<16x128xf32>
    %45 = arith.mulf %44, %43 : vector<16x128xf32>
    %46 = arith.mulf %33, %45 : vector<16x128xf32>
    %47 = arith.truncf %46 : vector<16x128xf32> to vector<16x128xbf16>
    %c0_19 = arith.constant 0 : index
    %c0_20 = arith.constant 0 : index
    %48 = vector.load %arg6[%c0_19, %c0_20] : memref<128x32xbf16, #tpu.memory_space<vmem>>, vector<128x32xbf16>
    %cst_21 = arith.constant dense<0.000000e+00> : vector<16x32xf32>
    %49 = tpu.matmul %47, %48, %cst_21 {dimension_numbers = #tpu.dot_dimension_numbers<[1], [0], [0], [1], [0, 0, 1, 1], [], []>} : vector<16x128xbf16>, vector<128x32xbf16>, vector<16x32xf32> -> vector<16x32xf32>
    %50 = arith.addf %1, %49 : vector<16x32xf32>
    %c0_22 = arith.constant 0 : index
    %c0_23 = arith.constant 0 : index
    %51 = vector.load %arg7[%c0_22, %c0_23] : memref<1x32xf32, #tpu.memory_space<vmem>>, vector<1x32xf32>
    %52 = vector.broadcast %51 : vector<1x32xf32> to vector<16x32xf32>
    %53 = arith.addf %50, %52 : vector<16x32xf32>
    %c0_24 = arith.constant 0 : index
    %c0_25 = arith.constant 0 : index
    %c0_26 = arith.constant 0 : index
    %54 = vector.load %arg8[%c0_24, %c0_25, %c0_26] : memref<1x16x32xf32, #tpu.memory_space<vmem>>, vector<1x16x32xf32>
    %55 = vector.shape_cast %54 : vector<1x16x32xf32> to vector<16x32xf32>
    %56 = vector.shape_cast %53 : vector<16x32xf32> to vector<1x16x32xf32>
    tpu.vector_store %arg8[%c0_24, %c0_25, %c0_26], %56 {strides = array<i32>} : memref<1x16x32xf32, #tpu.memory_space<vmem>>, vector<1x16x32xf32>,
    return
  }
  func.func @transform_0(%arg0: i32) -> (i32, i32, i32) {
    %c0_i32 = arith.constant 0 : i32
    %c0_i32_0 = arith.constant 0 : i32
    %c0_i32_1 = arith.constant 0 : i32
    return %arg0, %c0_i32, %c0_i32_0 : i32, i32, i32
  }
  func.func @transform_1(%arg0: i32) -> (i32, i32) {
    %c0_i32 = arith.constant 0 : i32
    %c0_i32_0 = arith.constant 0 : i32
    %c0_i32_1 = arith.constant 0 : i32
    return %c0_i32, %c0_i32_0 : i32, i32
  }
  func.func @transform_2(%arg0: i32) -> (i32, i32) {
    %c0_i32 = arith.constant 0 : i32
    %c0_i32_0 = arith.constant 0 : i32
    %c0_i32_1 = arith.constant 0 : i32
    return %c0_i32, %c0_i32_0 : i32, i32
  }
  func.func @transform_3(%arg0: i32) -> (i32, i32) {
    %c0_i32 = arith.constant 0 : i32
    %c0_i32_0 = arith.constant 0 : i32
    %c0_i32_1 = arith.constant 0 : i32
    return %c0_i32, %c0_i32_0 : i32, i32
  }
  func.func @transform_4(%arg0: i32) -> (i32, i32) {
    %c0_i32 = arith.constant 0 : i32
    %c0_i32_0 = arith.constant 0 : i32
    %c0_i32_1 = arith.constant 0 : i32
    return %c0_i32, %c0_i32_0 : i32, i32
  }
  func.func @transform_5(%arg0: i32) -> (i32, i32) {
    %c0_i32 = arith.constant 0 : i32
    %c0_i32_0 = arith.constant 0 : i32
    %c0_i32_1 = arith.constant 0 : i32
    return %c0_i32, %c0_i32_0 : i32, i32
  }
  func.func @transform_6(%arg0: i32) -> (i32, i32) {
    %c0_i32 = arith.constant 0 : i32
    %c0_i32_0 = arith.constant 0 : i32
    %c0_i32_1 = arith.constant 0 : i32
    return %c0_i32, %c0_i32_0 : i32, i32
  }
  func.func @transform_7(%arg0: i32) -> (i32, i32, i32) {
    %c0_i32 = arith.constant 0 : i32
    %c0_i32_0 = arith.constant 0 : i32
    %c0_i32_1 = arith.constant 0 : i32
    return %arg0, %c0_i32, %c0_i32_0 : i32, i32, i32
  }
}

module attributes {stable_mosaic.version = 11 : i64} {
  func.func @_cross_attn_kernel(%arg0: i32, %arg1: memref<1x16x32xf32, #tpu.memory_space<vmem>>, %arg2: memref<1x16x32xf32, #tpu.memory_space<vmem>>, %arg3: memref<1x32xf32, #tpu.memory_space<vmem>>, %arg4: memref<1x32xf32, #tpu.memory_space<vmem>>, %arg5: memref<32x32xbf16, #tpu.memory_space<vmem>>, %arg6: memref<32x1xf32, #tpu.memory_space<vmem>>, %arg7: memref<64x32xbf16, #tpu.memory_space<vmem>>, %arg8: memref<64x1xf32, #tpu.memory_space<vmem>>, %arg9: memref<4x8x32xbf16, #tpu.memory_space<vmem>>, %arg10: memref<1x32xf32, #tpu.memory_space<vmem>>, %arg11: memref<1x16x32xf32, #tpu.memory_space<vmem>>) attributes {dimension_semantics = [#tpu.dimension_semantics<parallel>], iteration_bounds = array<i64: 2>, scalar_prefetch = 0 : i64, scratch_operands = 0 : i64, tpu.core_type = #tpu.core_type<tc>, window_params = [{transform_indices = @transform_0, window_bounds = array<i64: 1, 16, 32>}, {transform_indices = @transform_1, window_bounds = array<i64: 1, 16, 32>}, {pipeline_mode = #tpu.pipeline_mode<synchronous>, transform_indices = @transform_2, window_bounds = array<i64: 1, 32>}, {pipeline_mode = #tpu.pipeline_mode<synchronous>, transform_indices = @transform_3, window_bounds = array<i64: 1, 32>}, {pipeline_mode = #tpu.pipeline_mode<synchronous>, transform_indices = @transform_4, window_bounds = array<i64: 32, 32>}, {pipeline_mode = #tpu.pipeline_mode<synchronous>, transform_indices = @transform_5, window_bounds = array<i64: 32, 1>}, {pipeline_mode = #tpu.pipeline_mode<synchronous>, transform_indices = @transform_6, window_bounds = array<i64: 64, 32>}, {pipeline_mode = #tpu.pipeline_mode<synchronous>, transform_indices = @transform_7, window_bounds = array<i64: 64, 1>}, {pipeline_mode = #tpu.pipeline_mode<synchronous>, transform_indices = @transform_8, window_bounds = array<i64: 4, 8, 32>}, {pipeline_mode = #tpu.pipeline_mode<synchronous>, transform_indices = @transform_9, window_bounds = array<i64: 1, 32>}, {transform_indices = @transform_10, window_bounds = array<i64: 1, 16, 32>}]} {
    %c0 = arith.constant 0 : index
    %c0_0 = arith.constant 0 : index
    %c0_1 = arith.constant 0 : index
    %0 = vector.load %arg1[%c0, %c0_0, %c0_1] : memref<1x16x32xf32, #tpu.memory_space<vmem>>, vector<1x16x32xf32>
    %1 = vector.shape_cast %0 : vector<1x16x32xf32> to vector<16x32xf32>
    %c0_2 = arith.constant 0 : index
    %c0_3 = arith.constant 0 : index
    %c0_4 = arith.constant 0 : index
    %2 = vector.load %arg2[%c0_2, %c0_3, %c0_4] : memref<1x16x32xf32, #tpu.memory_space<vmem>>, vector<1x16x32xf32>
    %3 = vector.shape_cast %2 : vector<1x16x32xf32> to vector<16x32xf32>
    %c0_5 = arith.constant 0 : index
    %c0_6 = arith.constant 0 : index
    %4 = vector.load %arg3[%c0_5, %c0_6] : memref<1x32xf32, #tpu.memory_space<vmem>>, vector<1x32xf32>
    %c0_7 = arith.constant 0 : index
    %c0_8 = arith.constant 0 : index
    %5 = vector.load %arg4[%c0_7, %c0_8] : memref<1x32xf32, #tpu.memory_space<vmem>>, vector<1x32xf32>
    %cst = arith.constant dense<0.000000e+00> : vector<16xf32>
    %6 = vector.multi_reduction <add>, %1, %cst [1] : vector<16x32xf32> to vector<16xf32>
    %7 = vector.shape_cast %6 : vector<16xf32> to vector<16x1xf32>
    %cst_9 = arith.constant 3.200000e+01 : f32
    %8 = vector.broadcast %cst_9 : f32 to vector<16x1xf32>
    %9 = arith.divf %7, %8 : vector<16x1xf32>
    %10 = vector.broadcast %9 : vector<16x1xf32> to vector<16x32xf32>
    %11 = arith.subf %1, %10 : vector<16x32xf32>
    %12 = vector.broadcast %9 : vector<16x1xf32> to vector<16x32xf32>
    %13 = arith.subf %1, %12 : vector<16x32xf32>
    %14 = arith.mulf %11, %13 : vector<16x32xf32>
    %cst_10 = arith.constant dense<0.000000e+00> : vector<16xf32>
    %15 = vector.multi_reduction <add>, %14, %cst_10 [1] : vector<16x32xf32> to vector<16xf32>
    %16 = vector.shape_cast %15 : vector<16xf32> to vector<16x1xf32>
    %cst_11 = arith.constant 3.200000e+01 : f32
    %17 = vector.broadcast %cst_11 : f32 to vector<16x1xf32>
    %18 = arith.divf %16, %17 : vector<16x1xf32>
    %19 = vector.broadcast %9 : vector<16x1xf32> to vector<16x32xf32>
    %20 = arith.subf %1, %19 : vector<16x32xf32>
    %cst_12 = arith.constant 9.99999974E-6 : f32
    %21 = vector.broadcast %cst_12 : f32 to vector<16x1xf32>
    %22 = arith.addf %18, %21 : vector<16x1xf32>
    %23 = math.rsqrt %22 : vector<16x1xf32>
    %24 = vector.broadcast %23 : vector<16x1xf32> to vector<16x32xf32>
    %25 = arith.mulf %20, %24 : vector<16x32xf32>
    %26 = vector.broadcast %4 : vector<1x32xf32> to vector<16x32xf32>
    %27 = arith.mulf %25, %26 : vector<16x32xf32>
    %28 = vector.broadcast %5 : vector<1x32xf32> to vector<16x32xf32>
    %29 = arith.addf %27, %28 : vector<16x32xf32>
    %c0_13 = arith.constant 0 : index
    %c0_14 = arith.constant 0 : index
    %30 = vector.load %arg5[%c0_13, %c0_14] : memref<32x32xbf16, #tpu.memory_space<vmem>>, vector<32x32xbf16>
    %31 = tpu.transpose %29, [1, 0] : vector<16x32xf32> -> vector<32x16xf32>
    %32 = arith.truncf %31 : vector<32x16xf32> to vector<32x16xbf16>
    %cst_15 = arith.constant dense<0.000000e+00> : vector<32x16xf32>
    %33 = tpu.matmul %30, %32, %cst_15 {dimension_numbers = #tpu.dot_dimension_numbers<[1], [0], [0], [1], [0, 0, 1, 1], [], []>} : vector<32x32xbf16>, vector<32x16xbf16>, vector<32x16xf32> -> vector<32x16xf32>
    %c0_16 = arith.constant 0 : index
    %c0_17 = arith.constant 0 : index
    %34 = vector.load %arg6[%c0_16, %c0_17] : memref<32x1xf32, #tpu.memory_space<vmem>>, vector<32x1xf32>
    %35 = vector.broadcast %34 : vector<32x1xf32> to vector<32x16xf32>
    %36 = arith.addf %33, %35 : vector<32x16xf32>
    %c0_18 = arith.constant 0 : index
    %c0_19 = arith.constant 0 : index
    %37 = vector.load %arg7[%c0_18, %c0_19] : memref<64x32xbf16, #tpu.memory_space<vmem>>, vector<64x32xbf16>
    %38 = tpu.transpose %3, [1, 0] : vector<16x32xf32> -> vector<32x16xf32>
    %39 = arith.truncf %38 : vector<32x16xf32> to vector<32x16xbf16>
    %cst_20 = arith.constant dense<0.000000e+00> : vector<64x16xf32>
    %40 = tpu.matmul %37, %39, %cst_20 {dimension_numbers = #tpu.dot_dimension_numbers<[1], [0], [0], [1], [0, 0, 1, 1], [], []>} : vector<64x32xbf16>, vector<32x16xbf16>, vector<64x16xf32> -> vector<64x16xf32>
    %c0_21 = arith.constant 0 : index
    %c0_22 = arith.constant 0 : index
    %41 = vector.load %arg8[%c0_21, %c0_22] : memref<64x1xf32, #tpu.memory_space<vmem>>, vector<64x1xf32>
    %42 = vector.broadcast %41 : vector<64x1xf32> to vector<64x16xf32>
    %43 = arith.addf %40, %42 : vector<64x16xf32>
    %44 = vector.extract_strided_slice %43 {offsets = [0, 0], sizes = [32, 16], strides = [1, 1]} : vector<64x16xf32> to vector<32x16xf32>
    %45 = vector.extract_strided_slice %43 {offsets = [32, 0], sizes = [32, 16], strides = [1, 1]} : vector<64x16xf32> to vector<32x16xf32>
    %cst_23 = arith.constant 0.000000e+00 : f32
    %46 = vector.broadcast %cst_23 : f32 to vector<16x32xf32>
    %47 = vector.extract_strided_slice %36 {offsets = [0, 0], sizes = [8, 16], strides = [1, 1]} : vector<32x16xf32> to vector<8x16xf32>
    %48 = vector.extract_strided_slice %44 {offsets = [0, 0], sizes = [8, 16], strides = [1, 1]} : vector<32x16xf32> to vector<8x16xf32>
    %49 = vector.extract_strided_slice %45 {offsets = [0, 0], sizes = [8, 16], strides = [1, 1]} : vector<32x16xf32> to vector<8x16xf32>
    %50 = tpu.transpose %47, [1, 0] : vector<8x16xf32> -> vector<16x8xf32>
    %cst_24 = arith.constant dense<0.000000e+00> : vector<16x16xf32>
    %51 = tpu.matmul %50, %48, %cst_24 {dimension_numbers = #tpu.dot_dimension_numbers<[1], [0], [0], [1], [0, 0, 1, 1], [], []>} : vector<16x8xf32>, vector<8x16xf32>, vector<16x16xf32> -> vector<16x16xf32>
    %cst_25 = arith.constant 0.353553385 : f32
    %52 = vector.broadcast %cst_25 : f32 to vector<16x16xf32>
    %53 = arith.mulf %51, %52 : vector<16x16xf32>
    %cst_26 = arith.constant dense<0xFF800000> : vector<16xf32>
    %54 = vector.multi_reduction <maximumf>, %53, %cst_26 [1] : vector<16x16xf32> to vector<16xf32>
    %55 = vector.shape_cast %54 : vector<16xf32> to vector<16x1xf32>
    %56 = vector.broadcast %55 : vector<16x1xf32> to vector<16x16xf32>
    %57 = arith.subf %53, %56 : vector<16x16xf32>
    %58 = math.exp %57 : vector<16x16xf32>
    %cst_27 = arith.constant dense<0.000000e+00> : vector<16xf32>
    %59 = vector.multi_reduction <add>, %58, %cst_27 [1] : vector<16x16xf32> to vector<16xf32>
    %60 = vector.shape_cast %59 : vector<16xf32> to vector<16x1xf32>
    %61 = tpu.reciprocal %60 {approx = true} : vector<16x1xf32> -> vector<16x1xf32>
    %62 = vector.broadcast %61 : vector<16x1xf32> to vector<16x16xf32>
    %63 = arith.mulf %58, %62 : vector<16x16xf32>
    %64 = tpu.transpose %49, [1, 0] : vector<8x16xf32> -> vector<16x8xf32>
    %cst_28 = arith.constant dense<0.000000e+00> : vector<16x8xf32>
    %65 = tpu.matmul %63, %64, %cst_28 {dimension_numbers = #tpu.dot_dimension_numbers<[1], [0], [0], [1], [0, 0, 1, 1], [], []>} : vector<16x16xf32>, vector<16x8xf32>, vector<16x8xf32> -> vector<16x8xf32>
    %66 = arith.truncf %65 : vector<16x8xf32> to vector<16x8xbf16>
    %c0_29 = arith.constant 0 : index
    %c0_30 = arith.constant 0 : index
    %c0_31 = arith.constant 0 : index
    %67 = vector.load %arg9[%c0_29, %c0_30, %c0_31] : memref<4x8x32xbf16, #tpu.memory_space<vmem>>, vector<1x8x32xbf16>
    %68 = vector.shape_cast %67 : vector<1x8x32xbf16> to vector<8x32xbf16>
    %cst_32 = arith.constant dense<0.000000e+00> : vector<16x32xf32>
    %69 = tpu.matmul %66, %68, %cst_32 {dimension_numbers = #tpu.dot_dimension_numbers<[1], [0], [0], [1], [0, 0, 1, 1], [], []>} : vector<16x8xbf16>, vector<8x32xbf16>, vector<16x32xf32> -> vector<16x32xf32>
    %70 = arith.addf %46, %69 : vector<16x32xf32>
    %71 = vector.extract_strided_slice %36 {offsets = [8, 0], sizes = [8, 16], strides = [1, 1]} : vector<32x16xf32> to vector<8x16xf32>
    %72 = vector.extract_strided_slice %44 {offsets = [8, 0], sizes = [8, 16], strides = [1, 1]} : vector<32x16xf32> to vector<8x16xf32>
    %73 = vector.extract_strided_slice %45 {offsets = [8, 0], sizes = [8, 16], strides = [1, 1]} : vector<32x16xf32> to vector<8x16xf32>
    %74 = tpu.transpose %71, [1, 0] : vector<8x16xf32> -> vector<16x8xf32>
    %cst_33 = arith.constant dense<0.000000e+00> : vector<16x16xf32>
    %75 = tpu.matmul %74, %72, %cst_33 {dimension_numbers = #tpu.dot_dimension_numbers<[1], [0], [0], [1], [0, 0, 1, 1], [], []>} : vector<16x8xf32>, vector<8x16xf32>, vector<16x16xf32> -> vector<16x16xf32>
    %cst_34 = arith.constant 0.353553385 : f32
    %76 = vector.broadcast %cst_34 : f32 to vector<16x16xf32>
    %77 = arith.mulf %75, %76 : vector<16x16xf32>
    %cst_35 = arith.constant dense<0xFF800000> : vector<16xf32>
    %78 = vector.multi_reduction <maximumf>, %77, %cst_35 [1] : vector<16x16xf32> to vector<16xf32>
    %79 = vector.shape_cast %78 : vector<16xf32> to vector<16x1xf32>
    %80 = vector.broadcast %79 : vector<16x1xf32> to vector<16x16xf32>
    %81 = arith.subf %77, %80 : vector<16x16xf32>
    %82 = math.exp %81 : vector<16x16xf32>
    %cst_36 = arith.constant dense<0.000000e+00> : vector<16xf32>
    %83 = vector.multi_reduction <add>, %82, %cst_36 [1] : vector<16x16xf32> to vector<16xf32>
    %84 = vector.shape_cast %83 : vector<16xf32> to vector<16x1xf32>
    %85 = tpu.reciprocal %84 {approx = true} : vector<16x1xf32> -> vector<16x1xf32>
    %86 = vector.broadcast %85 : vector<16x1xf32> to vector<16x16xf32>
    %87 = arith.mulf %82, %86 : vector<16x16xf32>
    %88 = tpu.transpose %73, [1, 0] : vector<8x16xf32> -> vector<16x8xf32>
    %cst_37 = arith.constant dense<0.000000e+00> : vector<16x8xf32>
    %89 = tpu.matmul %87, %88, %cst_37 {dimension_numbers = #tpu.dot_dimension_numbers<[1], [0], [0], [1], [0, 0, 1, 1], [], []>} : vector<16x16xf32>, vector<16x8xf32>, vector<16x8xf32> -> vector<16x8xf32>
    %90 = arith.truncf %89 : vector<16x8xf32> to vector<16x8xbf16>
    %c1 = arith.constant 1 : index
    %c0_38 = arith.constant 0 : index
    %c0_39 = arith.constant 0 : index
    %91 = vector.load %arg9[%c1, %c0_38, %c0_39] : memref<4x8x32xbf16, #tpu.memory_space<vmem>>, vector<1x8x32xbf16>
    %92 = vector.shape_cast %91 : vector<1x8x32xbf16> to vector<8x32xbf16>
    %cst_40 = arith.constant dense<0.000000e+00> : vector<16x32xf32>
    %93 = tpu.matmul %90, %92, %cst_40 {dimension_numbers = #tpu.dot_dimension_numbers<[1], [0], [0], [1], [0, 0, 1, 1], [], []>} : vector<16x8xbf16>, vector<8x32xbf16>, vector<16x32xf32> -> vector<16x32xf32>
    %94 = arith.addf %70, %93 : vector<16x32xf32>
    %95 = vector.extract_strided_slice %36 {offsets = [16, 0], sizes = [8, 16], strides = [1, 1]} : vector<32x16xf32> to vector<8x16xf32>
    %96 = vector.extract_strided_slice %44 {offsets = [16, 0], sizes = [8, 16], strides = [1, 1]} : vector<32x16xf32> to vector<8x16xf32>
    %97 = vector.extract_strided_slice %45 {offsets = [16, 0], sizes = [8, 16], strides = [1, 1]} : vector<32x16xf32> to vector<8x16xf32>
    %98 = tpu.transpose %95, [1, 0] : vector<8x16xf32> -> vector<16x8xf32>
    %cst_41 = arith.constant dense<0.000000e+00> : vector<16x16xf32>
    %99 = tpu.matmul %98, %96, %cst_41 {dimension_numbers = #tpu.dot_dimension_numbers<[1], [0], [0], [1], [0, 0, 1, 1], [], []>} : vector<16x8xf32>, vector<8x16xf32>, vector<16x16xf32> -> vector<16x16xf32>
    %cst_42 = arith.constant 0.353553385 : f32
    %100 = vector.broadcast %cst_42 : f32 to vector<16x16xf32>
    %101 = arith.mulf %99, %100 : vector<16x16xf32>
    %cst_43 = arith.constant dense<0xFF800000> : vector<16xf32>
    %102 = vector.multi_reduction <maximumf>, %101, %cst_43 [1] : vector<16x16xf32> to vector<16xf32>
    %103 = vector.shape_cast %102 : vector<16xf32> to vector<16x1xf32>
    %104 = vector.broadcast %103 : vector<16x1xf32> to vector<16x16xf32>
    %105 = arith.subf %101, %104 : vector<16x16xf32>
    %106 = math.exp %105 : vector<16x16xf32>
    %cst_44 = arith.constant dense<0.000000e+00> : vector<16xf32>
    %107 = vector.multi_reduction <add>, %106, %cst_44 [1] : vector<16x16xf32> to vector<16xf32>
    %108 = vector.shape_cast %107 : vector<16xf32> to vector<16x1xf32>
    %109 = tpu.reciprocal %108 {approx = true} : vector<16x1xf32> -> vector<16x1xf32>
    %110 = vector.broadcast %109 : vector<16x1xf32> to vector<16x16xf32>
    %111 = arith.mulf %106, %110 : vector<16x16xf32>
    %112 = tpu.transpose %97, [1, 0] : vector<8x16xf32> -> vector<16x8xf32>
    %cst_45 = arith.constant dense<0.000000e+00> : vector<16x8xf32>
    %113 = tpu.matmul %111, %112, %cst_45 {dimension_numbers = #tpu.dot_dimension_numbers<[1], [0], [0], [1], [0, 0, 1, 1], [], []>} : vector<16x16xf32>, vector<16x8xf32>, vector<16x8xf32> -> vector<16x8xf32>
    %114 = arith.truncf %113 : vector<16x8xf32> to vector<16x8xbf16>
    %c2 = arith.constant 2 : index
    %c0_46 = arith.constant 0 : index
    %c0_47 = arith.constant 0 : index
    %115 = vector.load %arg9[%c2, %c0_46, %c0_47] : memref<4x8x32xbf16, #tpu.memory_space<vmem>>, vector<1x8x32xbf16>
    %116 = vector.shape_cast %115 : vector<1x8x32xbf16> to vector<8x32xbf16>
    %cst_48 = arith.constant dense<0.000000e+00> : vector<16x32xf32>
    %117 = tpu.matmul %114, %116, %cst_48 {dimension_numbers = #tpu.dot_dimension_numbers<[1], [0], [0], [1], [0, 0, 1, 1], [], []>} : vector<16x8xbf16>, vector<8x32xbf16>, vector<16x32xf32> -> vector<16x32xf32>
    %118 = arith.addf %94, %117 : vector<16x32xf32>
    %119 = vector.extract_strided_slice %36 {offsets = [24, 0], sizes = [8, 16], strides = [1, 1]} : vector<32x16xf32> to vector<8x16xf32>
    %120 = vector.extract_strided_slice %44 {offsets = [24, 0], sizes = [8, 16], strides = [1, 1]} : vector<32x16xf32> to vector<8x16xf32>
    %121 = vector.extract_strided_slice %45 {offsets = [24, 0], sizes = [8, 16], strides = [1, 1]} : vector<32x16xf32> to vector<8x16xf32>
    %122 = tpu.transpose %119, [1, 0] : vector<8x16xf32> -> vector<16x8xf32>
    %cst_49 = arith.constant dense<0.000000e+00> : vector<16x16xf32>
    %123 = tpu.matmul %122, %120, %cst_49 {dimension_numbers = #tpu.dot_dimension_numbers<[1], [0], [0], [1], [0, 0, 1, 1], [], []>} : vector<16x8xf32>, vector<8x16xf32>, vector<16x16xf32> -> vector<16x16xf32>
    %cst_50 = arith.constant 0.353553385 : f32
    %124 = vector.broadcast %cst_50 : f32 to vector<16x16xf32>
    %125 = arith.mulf %123, %124 : vector<16x16xf32>
    %cst_51 = arith.constant dense<0xFF800000> : vector<16xf32>
    %126 = vector.multi_reduction <maximumf>, %125, %cst_51 [1] : vector<16x16xf32> to vector<16xf32>
    %127 = vector.shape_cast %126 : vector<16xf32> to vector<16x1xf32>
    %128 = vector.broadcast %127 : vector<16x1xf32> to vector<16x16xf32>
    %129 = arith.subf %125, %128 : vector<16x16xf32>
    %130 = math.exp %129 : vector<16x16xf32>
    %cst_52 = arith.constant dense<0.000000e+00> : vector<16xf32>
    %131 = vector.multi_reduction <add>, %130, %cst_52 [1] : vector<16x16xf32> to vector<16xf32>
    %132 = vector.shape_cast %131 : vector<16xf32> to vector<16x1xf32>
    %133 = tpu.reciprocal %132 {approx = true} : vector<16x1xf32> -> vector<16x1xf32>
    %134 = vector.broadcast %133 : vector<16x1xf32> to vector<16x16xf32>
    %135 = arith.mulf %130, %134 : vector<16x16xf32>
    %136 = tpu.transpose %121, [1, 0] : vector<8x16xf32> -> vector<16x8xf32>
    %cst_53 = arith.constant dense<0.000000e+00> : vector<16x8xf32>
    %137 = tpu.matmul %135, %136, %cst_53 {dimension_numbers = #tpu.dot_dimension_numbers<[1], [0], [0], [1], [0, 0, 1, 1], [], []>} : vector<16x16xf32>, vector<16x8xf32>, vector<16x8xf32> -> vector<16x8xf32>
    %138 = arith.truncf %137 : vector<16x8xf32> to vector<16x8xbf16>
    %c3 = arith.constant 3 : index
    %c0_54 = arith.constant 0 : index
    %c0_55 = arith.constant 0 : index
    %139 = vector.load %arg9[%c3, %c0_54, %c0_55] : memref<4x8x32xbf16, #tpu.memory_space<vmem>>, vector<1x8x32xbf16>
    %140 = vector.shape_cast %139 : vector<1x8x32xbf16> to vector<8x32xbf16>
    %cst_56 = arith.constant dense<0.000000e+00> : vector<16x32xf32>
    %141 = tpu.matmul %138, %140, %cst_56 {dimension_numbers = #tpu.dot_dimension_numbers<[1], [0], [0], [1], [0, 0, 1, 1], [], []>} : vector<16x8xbf16>, vector<8x32xbf16>, vector<16x32xf32> -> vector<16x32xf32>
    %142 = arith.addf %118, %141 : vector<16x32xf32>
    %143 = arith.addf %1, %142 : vector<16x32xf32>
    %c0_57 = arith.constant 0 : index
    %c0_58 = arith.constant 0 : index
    %144 = vector.load %arg10[%c0_57, %c0_58] : memref<1x32xf32, #tpu.memory_space<vmem>>, vector<1x32xf32>
    %145 = vector.broadcast %144 : vector<1x32xf32> to vector<16x32xf32>
    %146 = arith.addf %143, %145 : vector<16x32xf32>
    %c0_59 = arith.constant 0 : index
    %c0_60 = arith.constant 0 : index
    %c0_61 = arith.constant 0 : index
    %147 = vector.load %arg11[%c0_59, %c0_60, %c0_61] : memref<1x16x32xf32, #tpu.memory_space<vmem>>, vector<1x16x32xf32>
    %148 = vector.shape_cast %147 : vector<1x16x32xf32> to vector<16x32xf32>
    %149 = vector.shape_cast %146 : vector<16x32xf32> to vector<1x16x32xf32>
    tpu.vector_store %arg11[%c0_59, %c0_60, %c0_61], %149 {strides = array<i32>} : memref<1x16x32xf32, #tpu.memory_space<vmem>>, vector<1x16x32xf32>,
    return
  }
  func.func @transform_0(%arg0: i32) -> (i32, i32, i32) {
    %c0_i32 = arith.constant 0 : i32
    %c0_i32_0 = arith.constant 0 : i32
    %c0_i32_1 = arith.constant 0 : i32
    return %arg0, %c0_i32, %c0_i32_0 : i32, i32, i32
  }
  func.func @transform_1(%arg0: i32) -> (i32, i32, i32) {
    %c0_i32 = arith.constant 0 : i32
    %c0_i32_0 = arith.constant 0 : i32
    %c0_i32_1 = arith.constant 0 : i32
    return %arg0, %c0_i32, %c0_i32_0 : i32, i32, i32
  }
  func.func @transform_2(%arg0: i32) -> (i32, i32) {
    %c0_i32 = arith.constant 0 : i32
    %c0_i32_0 = arith.constant 0 : i32
    %c0_i32_1 = arith.constant 0 : i32
    return %c0_i32, %c0_i32_0 : i32, i32
  }
  func.func @transform_3(%arg0: i32) -> (i32, i32) {
    %c0_i32 = arith.constant 0 : i32
    %c0_i32_0 = arith.constant 0 : i32
    %c0_i32_1 = arith.constant 0 : i32
    return %c0_i32, %c0_i32_0 : i32, i32
  }
  func.func @transform_4(%arg0: i32) -> (i32, i32) {
    %c0_i32 = arith.constant 0 : i32
    %c0_i32_0 = arith.constant 0 : i32
    %c0_i32_1 = arith.constant 0 : i32
    return %c0_i32, %c0_i32_0 : i32, i32
  }
  func.func @transform_5(%arg0: i32) -> (i32, i32) {
    %c0_i32 = arith.constant 0 : i32
    %c0_i32_0 = arith.constant 0 : i32
    %c0_i32_1 = arith.constant 0 : i32
    return %c0_i32, %c0_i32_0 : i32, i32
  }
  func.func @transform_6(%arg0: i32) -> (i32, i32) {
    %c0_i32 = arith.constant 0 : i32
    %c0_i32_0 = arith.constant 0 : i32
    %c0_i32_1 = arith.constant 0 : i32
    return %c0_i32, %c0_i32_0 : i32, i32
  }
  func.func @transform_7(%arg0: i32) -> (i32, i32) {
    %c0_i32 = arith.constant 0 : i32
    %c0_i32_0 = arith.constant 0 : i32
    %c0_i32_1 = arith.constant 0 : i32
    return %c0_i32, %c0_i32_0 : i32, i32
  }
  func.func @transform_8(%arg0: i32) -> (i32, i32, i32) {
    %c0_i32 = arith.constant 0 : i32
    %c0_i32_0 = arith.constant 0 : i32
    %c0_i32_1 = arith.constant 0 : i32
    %c0_i32_2 = arith.constant 0 : i32
    return %c0_i32, %c0_i32_0, %c0_i32_1 : i32, i32, i32
  }
  func.func @transform_9(%arg0: i32) -> (i32, i32) {
    %c0_i32 = arith.constant 0 : i32
    %c0_i32_0 = arith.constant 0 : i32
    %c0_i32_1 = arith.constant 0 : i32
    return %c0_i32, %c0_i32_0 : i32, i32
  }
  func.func @transform_10(%arg0: i32) -> (i32, i32, i32) {
    %c0_i32 = arith.constant 0 : i32
    %c0_i32_0 = arith.constant 0 : i32
    %c0_i32_1 = arith.constant 0 : i32
    return %arg0, %c0_i32, %c0_i32_0 : i32, i32, i32
  }
}

module attributes {stable_mosaic.version = 11 : i64} {
  func.func @_head_ce_kernel(%arg0: i32, %arg1: memref<32x32xf32, #tpu.memory_space<vmem>>, %arg2: memref<1x32xf32, #tpu.memory_space<vmem>>, %arg3: memref<1x32xf32, #tpu.memory_space<vmem>>, %arg4: memref<32x64xbf16, #tpu.memory_space<vmem>>, %arg5: memref<1x64xf32, #tpu.memory_space<vmem>>, %arg6: memref<32x1xi32, #tpu.memory_space<vmem>>, %arg7: memref<1x1xf32, #tpu.memory_space<vmem>>) attributes {dimension_semantics = [#tpu.dimension_semantics<arbitrary>], iteration_bounds = array<i64: 1>, scalar_prefetch = 0 : i64, scratch_operands = 0 : i64, tpu.core_type = #tpu.core_type<tc>, window_params = [{transform_indices = @transform_0, window_bounds = array<i64: 32, 32>}, {pipeline_mode = #tpu.pipeline_mode<synchronous>, transform_indices = @transform_1, window_bounds = array<i64: 1, 32>}, {pipeline_mode = #tpu.pipeline_mode<synchronous>, transform_indices = @transform_2, window_bounds = array<i64: 1, 32>}, {pipeline_mode = #tpu.pipeline_mode<synchronous>, transform_indices = @transform_3, window_bounds = array<i64: 32, 64>}, {pipeline_mode = #tpu.pipeline_mode<synchronous>, transform_indices = @transform_4, window_bounds = array<i64: 1, 64>}, {transform_indices = @transform_5, window_bounds = array<i64: 32, 1>}, {pipeline_mode = #tpu.pipeline_mode<synchronous>, transform_indices = @transform_6, window_bounds = array<i64: 1, 1>}]} {
    %c0_i32 = arith.constant 0 : i32
    %0 = arith.cmpi eq, %arg0, %c0_i32 : i32
    %1 = arith.extui %0 : i1 to i32
    %c0_i32_0 = arith.constant 0 : i32
    %2 = arith.cmpi ne, %1, %c0_i32_0 : i32
    scf.if %2 {
      %cst_26 = arith.constant 0.000000e+00 : f32
      %62 = vector.broadcast %cst_26 : f32 to vector<1x1xf32>
      %c0_27 = arith.constant 0 : index
      %c0_28 = arith.constant 0 : index
      %63 = vector.load %arg7[%c0_27, %c0_28] : memref<1x1xf32, #tpu.memory_space<vmem>>, vector<1x1xf32>
      tpu.vector_store %arg7[%c0_27, %c0_28], %62 {strides = array<i32>} : memref<1x1xf32, #tpu.memory_space<vmem>>, vector<1x1xf32>,
    } else {
    }
    %c0 = arith.constant 0 : index
    %c0_1 = arith.constant 0 : index
    %3 = vector.load %arg1[%c0, %c0_1] : memref<32x32xf32, #tpu.memory_space<vmem>>, vector<32x32xf32>
    %c0_2 = arith.constant 0 : index
    %c0_3 = arith.constant 0 : index
    %4 = vector.load %arg2[%c0_2, %c0_3] : memref<1x32xf32, #tpu.memory_space<vmem>>, vector<1x32xf32>
    %c0_4 = arith.constant 0 : index
    %c0_5 = arith.constant 0 : index
    %5 = vector.load %arg3[%c0_4, %c0_5] : memref<1x32xf32, #tpu.memory_space<vmem>>, vector<1x32xf32>
    %cst = arith.constant dense<0.000000e+00> : vector<32xf32>
    %6 = vector.multi_reduction <add>, %3, %cst [1] : vector<32x32xf32> to vector<32xf32>
    %7 = vector.shape_cast %6 : vector<32xf32> to vector<32x1xf32>
    %cst_6 = arith.constant 3.200000e+01 : f32
    %8 = vector.broadcast %cst_6 : f32 to vector<32x1xf32>
    %9 = arith.divf %7, %8 : vector<32x1xf32>
    %10 = vector.broadcast %9 : vector<32x1xf32> to vector<32x32xf32>
    %11 = arith.subf %3, %10 : vector<32x32xf32>
    %12 = vector.broadcast %9 : vector<32x1xf32> to vector<32x32xf32>
    %13 = arith.subf %3, %12 : vector<32x32xf32>
    %14 = arith.mulf %11, %13 : vector<32x32xf32>
    %cst_7 = arith.constant dense<0.000000e+00> : vector<32xf32>
    %15 = vector.multi_reduction <add>, %14, %cst_7 [1] : vector<32x32xf32> to vector<32xf32>
    %16 = vector.shape_cast %15 : vector<32xf32> to vector<32x1xf32>
    %cst_8 = arith.constant 3.200000e+01 : f32
    %17 = vector.broadcast %cst_8 : f32 to vector<32x1xf32>
    %18 = arith.divf %16, %17 : vector<32x1xf32>
    %19 = vector.broadcast %9 : vector<32x1xf32> to vector<32x32xf32>
    %20 = arith.subf %3, %19 : vector<32x32xf32>
    %cst_9 = arith.constant 9.99999974E-6 : f32
    %21 = vector.broadcast %cst_9 : f32 to vector<32x1xf32>
    %22 = arith.addf %18, %21 : vector<32x1xf32>
    %23 = math.rsqrt %22 : vector<32x1xf32>
    %24 = vector.broadcast %23 : vector<32x1xf32> to vector<32x32xf32>
    %25 = arith.mulf %20, %24 : vector<32x32xf32>
    %26 = vector.broadcast %4 : vector<1x32xf32> to vector<32x32xf32>
    %27 = arith.mulf %25, %26 : vector<32x32xf32>
    %28 = vector.broadcast %5 : vector<1x32xf32> to vector<32x32xf32>
    %29 = arith.addf %27, %28 : vector<32x32xf32>
    %30 = arith.truncf %29 : vector<32x32xf32> to vector<32x32xbf16>
    %c0_10 = arith.constant 0 : index
    %c0_11 = arith.constant 0 : index
    %31 = vector.load %arg4[%c0_10, %c0_11] : memref<32x64xbf16, #tpu.memory_space<vmem>>, vector<32x64xbf16>
    %cst_12 = arith.constant dense<0.000000e+00> : vector<32x64xf32>
    %32 = tpu.matmul %30, %31, %cst_12 {dimension_numbers = #tpu.dot_dimension_numbers<[1], [0], [0], [1], [0, 0, 1, 1], [], []>} : vector<32x32xbf16>, vector<32x64xbf16>, vector<32x64xf32> -> vector<32x64xf32>
    %c0_13 = arith.constant 0 : index
    %c0_14 = arith.constant 0 : index
    %33 = vector.load %arg5[%c0_13, %c0_14] : memref<1x64xf32, #tpu.memory_space<vmem>>, vector<1x64xf32>
    %34 = vector.broadcast %33 : vector<1x64xf32> to vector<32x64xf32>
    %35 = arith.addf %32, %34 : vector<32x64xf32>
    %cst_15 = arith.constant dense<0xFF800000> : vector<32xf32>
    %36 = vector.multi_reduction <maximumf>, %35, %cst_15 [1] : vector<32x64xf32> to vector<32xf32>
    %37 = vector.shape_cast %36 : vector<32xf32> to vector<32x1xf32>
    %38 = vector.broadcast %37 : vector<32x1xf32> to vector<32x64xf32>
    %39 = arith.subf %35, %38 : vector<32x64xf32>
    %40 = math.exp %39 : vector<32x64xf32>
    %cst_16 = arith.constant dense<0.000000e+00> : vector<32xf32>
    %41 = vector.multi_reduction <add>, %40, %cst_16 [1] : vector<32x64xf32> to vector<32xf32>
    %42 = vector.shape_cast %41 : vector<32xf32> to vector<32x1xf32>
    %43 = math.log %42 : vector<32x1xf32>
    %44 = arith.addf %43, %37 : vector<32x1xf32>
    %45 = tpu.iota {dimensions = array<i32: 1>} : vector<32x64xi32>
    %c0_17 = arith.constant 0 : index
    %c0_18 = arith.constant 0 : index
    %46 = vector.load %arg6[%c0_17, %c0_18] : memref<32x1xi32, #tpu.memory_space<vmem>>, vector<32x1xi32>
    %47 = vector.broadcast %46 : vector<32x1xi32> to vector<32x64xi32>
    %48 = arith.cmpi eq, %45, %47 : vector<32x64xi32>
    %cst_19 = arith.constant 0.000000e+00 : f32
    %49 = vector.broadcast %cst_19 : f32 to vector<32x64xf32>
    %50 = arith.select %48, %35, %49 : vector<32x64xi1>, vector<32x64xf32>
    %cst_20 = arith.constant dense<0.000000e+00> : vector<32xf32>
    %51 = vector.multi_reduction <add>, %50, %cst_20 [1] : vector<32x64xf32> to vector<32xf32>
    %52 = vector.shape_cast %51 : vector<32xf32> to vector<32x1xf32>
    %c0_21 = arith.constant 0 : index
    %c0_22 = arith.constant 0 : index
    %53 = vector.load %arg7[%c0_21, %c0_22] : memref<1x1xf32, #tpu.memory_space<vmem>>, vector<1x1xf32>
    %54 = arith.subf %44, %52 : vector<32x1xf32>
    %55 = vector.shape_cast %54 : vector<32x1xf32> to vector<1x32x1xf32>
    %cst_23 = arith.constant dense<0.000000e+00> : vector<1xf32>
    %56 = vector.multi_reduction <add>, %55, %cst_23 [1, 2] : vector<1x32x1xf32> to vector<1xf32>
    %57 = vector.shape_cast %56 : vector<1xf32> to vector<1x1x1xf32>
    %58 = vector.extract %57[0, 0, 0] : f32 from vector<1x1x1xf32>
    %59 = vector.broadcast %58 : f32 to vector<1x1xf32>
    %60 = arith.addf %53, %59 : vector<1x1xf32>
    %c0_24 = arith.constant 0 : index
    %c0_25 = arith.constant 0 : index
    %61 = vector.load %arg7[%c0_24, %c0_25] : memref<1x1xf32, #tpu.memory_space<vmem>>, vector<1x1xf32>
    tpu.vector_store %arg7[%c0_24, %c0_25], %60 {strides = array<i32>} : memref<1x1xf32, #tpu.memory_space<vmem>>, vector<1x1xf32>,
    return
  }
  func.func @transform_0(%arg0: i32) -> (i32, i32) {
    %c0_i32 = arith.constant 0 : i32
    %c0_i32_0 = arith.constant 0 : i32
    return %arg0, %c0_i32 : i32, i32
  }
  func.func @transform_1(%arg0: i32) -> (i32, i32) {
    %c0_i32 = arith.constant 0 : i32
    %c0_i32_0 = arith.constant 0 : i32
    %c0_i32_1 = arith.constant 0 : i32
    return %c0_i32, %c0_i32_0 : i32, i32
  }
  func.func @transform_2(%arg0: i32) -> (i32, i32) {
    %c0_i32 = arith.constant 0 : i32
    %c0_i32_0 = arith.constant 0 : i32
    %c0_i32_1 = arith.constant 0 : i32
    return %c0_i32, %c0_i32_0 : i32, i32
  }
  func.func @transform_3(%arg0: i32) -> (i32, i32) {
    %c0_i32 = arith.constant 0 : i32
    %c0_i32_0 = arith.constant 0 : i32
    %c0_i32_1 = arith.constant 0 : i32
    return %c0_i32, %c0_i32_0 : i32, i32
  }
  func.func @transform_4(%arg0: i32) -> (i32, i32) {
    %c0_i32 = arith.constant 0 : i32
    %c0_i32_0 = arith.constant 0 : i32
    %c0_i32_1 = arith.constant 0 : i32
    return %c0_i32, %c0_i32_0 : i32, i32
  }
  func.func @transform_5(%arg0: i32) -> (i32, i32) {
    %c0_i32 = arith.constant 0 : i32
    %c0_i32_0 = arith.constant 0 : i32
    return %arg0, %c0_i32 : i32, i32
  }
  func.func @transform_6(%arg0: i32) -> (i32, i32) {
    %c0_i32 = arith.constant 0 : i32
    %c0_i32_0 = arith.constant 0 : i32
    %c0_i32_1 = arith.constant 0 : i32
    return %c0_i32, %c0_i32_0 : i32, i32
  }
}

module attributes {stable_mosaic.version = 11 : i64} {
  func.func @_head_ce_kernel(%arg0: i32, %arg1: memref<2x32xf32, #tpu.memory_space<vmem>>, %arg2: memref<1x32xf32, #tpu.memory_space<vmem>>, %arg3: memref<1x32xf32, #tpu.memory_space<vmem>>, %arg4: memref<32x32xbf16, #tpu.memory_space<vmem>>, %arg5: memref<1x32xf32, #tpu.memory_space<vmem>>, %arg6: memref<2x1xi32, #tpu.memory_space<vmem>>, %arg7: memref<1x1xf32, #tpu.memory_space<vmem>>) attributes {dimension_semantics = [#tpu.dimension_semantics<arbitrary>], iteration_bounds = array<i64: 1>, scalar_prefetch = 0 : i64, scratch_operands = 0 : i64, tpu.core_type = #tpu.core_type<tc>, window_params = [{transform_indices = @transform_0, window_bounds = array<i64: 2, 32>}, {pipeline_mode = #tpu.pipeline_mode<synchronous>, transform_indices = @transform_1, window_bounds = array<i64: 1, 32>}, {pipeline_mode = #tpu.pipeline_mode<synchronous>, transform_indices = @transform_2, window_bounds = array<i64: 1, 32>}, {pipeline_mode = #tpu.pipeline_mode<synchronous>, transform_indices = @transform_3, window_bounds = array<i64: 32, 32>}, {pipeline_mode = #tpu.pipeline_mode<synchronous>, transform_indices = @transform_4, window_bounds = array<i64: 1, 32>}, {transform_indices = @transform_5, window_bounds = array<i64: 2, 1>}, {pipeline_mode = #tpu.pipeline_mode<synchronous>, transform_indices = @transform_6, window_bounds = array<i64: 1, 1>}]} {
    %c0_i32 = arith.constant 0 : i32
    %0 = arith.cmpi eq, %arg0, %c0_i32 : i32
    %1 = arith.extui %0 : i1 to i32
    %c0_i32_0 = arith.constant 0 : i32
    %2 = arith.cmpi ne, %1, %c0_i32_0 : i32
    scf.if %2 {
      %cst_17 = arith.constant 0.000000e+00 : f32
      %36 = vector.broadcast %cst_17 : f32 to vector<1x1xf32>
      %c0_18 = arith.constant 0 : index
      %c0_19 = arith.constant 0 : index
      %37 = vector.load %arg7[%c0_18, %c0_19] : memref<1x1xf32, #tpu.memory_space<vmem>>, vector<1x1xf32>
      tpu.vector_store %arg7[%c0_18, %c0_19], %36 {strides = array<i32>} : memref<1x1xf32, #tpu.memory_space<vmem>>, vector<1x1xf32>,
    } else {
    }
    %c0 = arith.constant 0 : index
    %c0_1 = arith.constant 0 : index
    %3 = vector.load %arg1[%c0, %c0_1] : memref<2x32xf32, #tpu.memory_space<vmem>>, vector<2x32xf32>
    %4 = arith.truncf %3 : vector<2x32xf32> to vector<2x32xbf16>
    %c0_2 = arith.constant 0 : index
    %c0_3 = arith.constant 0 : index
    %5 = vector.load %arg4[%c0_2, %c0_3] : memref<32x32xbf16, #tpu.memory_space<vmem>>, vector<32x32xbf16>
    %cst = arith.constant dense<0.000000e+00> : vector<2x32xf32>
    %6 = tpu.matmul %4, %5, %cst {dimension_numbers = #tpu.dot_dimension_numbers<[1], [0], [0], [1], [0, 0, 1, 1], [], []>} : vector<2x32xbf16>, vector<32x32xbf16>, vector<2x32xf32> -> vector<2x32xf32>
    %c0_4 = arith.constant 0 : index
    %c0_5 = arith.constant 0 : index
    %7 = vector.load %arg5[%c0_4, %c0_5] : memref<1x32xf32, #tpu.memory_space<vmem>>, vector<1x32xf32>
    %8 = vector.broadcast %7 : vector<1x32xf32> to vector<2x32xf32>
    %9 = arith.addf %6, %8 : vector<2x32xf32>
    %cst_6 = arith.constant dense<0xFF800000> : vector<2xf32>
    %10 = vector.multi_reduction <maximumf>, %9, %cst_6 [1] : vector<2x32xf32> to vector<2xf32>
    %11 = vector.shape_cast %10 : vector<2xf32> to vector<2x1xf32>
    %12 = vector.broadcast %11 : vector<2x1xf32> to vector<2x32xf32>
    %13 = arith.subf %9, %12 : vector<2x32xf32>
    %14 = math.exp %13 : vector<2x32xf32>
    %cst_7 = arith.constant dense<0.000000e+00> : vector<2xf32>
    %15 = vector.multi_reduction <add>, %14, %cst_7 [1] : vector<2x32xf32> to vector<2xf32>
    %16 = vector.shape_cast %15 : vector<2xf32> to vector<2x1xf32>
    %17 = math.log %16 : vector<2x1xf32>
    %18 = arith.addf %17, %11 : vector<2x1xf32>
    %19 = tpu.iota {dimensions = array<i32: 1>} : vector<2x32xi32>
    %c0_8 = arith.constant 0 : index
    %c0_9 = arith.constant 0 : index
    %20 = vector.load %arg6[%c0_8, %c0_9] : memref<2x1xi32, #tpu.memory_space<vmem>>, vector<2x1xi32>
    %21 = vector.broadcast %20 : vector<2x1xi32> to vector<2x32xi32>
    %22 = arith.cmpi eq, %19, %21 : vector<2x32xi32>
    %cst_10 = arith.constant 0.000000e+00 : f32
    %23 = vector.broadcast %cst_10 : f32 to vector<2x32xf32>
    %24 = arith.select %22, %9, %23 : vector<2x32xi1>, vector<2x32xf32>
    %cst_11 = arith.constant dense<0.000000e+00> : vector<2xf32>
    %25 = vector.multi_reduction <add>, %24, %cst_11 [1] : vector<2x32xf32> to vector<2xf32>
    %26 = vector.shape_cast %25 : vector<2xf32> to vector<2x1xf32>
    %c0_12 = arith.constant 0 : index
    %c0_13 = arith.constant 0 : index
    %27 = vector.load %arg7[%c0_12, %c0_13] : memref<1x1xf32, #tpu.memory_space<vmem>>, vector<1x1xf32>
    %28 = arith.subf %18, %26 : vector<2x1xf32>
    %29 = vector.shape_cast %28 : vector<2x1xf32> to vector<1x2x1xf32>
    %cst_14 = arith.constant dense<0.000000e+00> : vector<1xf32>
    %30 = vector.multi_reduction <add>, %29, %cst_14 [1, 2] : vector<1x2x1xf32> to vector<1xf32>
    %31 = vector.shape_cast %30 : vector<1xf32> to vector<1x1x1xf32>
    %32 = vector.extract %31[0, 0, 0] : f32 from vector<1x1x1xf32>
    %33 = vector.broadcast %32 : f32 to vector<1x1xf32>
    %34 = arith.addf %27, %33 : vector<1x1xf32>
    %c0_15 = arith.constant 0 : index
    %c0_16 = arith.constant 0 : index
    %35 = vector.load %arg7[%c0_15, %c0_16] : memref<1x1xf32, #tpu.memory_space<vmem>>, vector<1x1xf32>
    tpu.vector_store %arg7[%c0_15, %c0_16], %34 {strides = array<i32>} : memref<1x1xf32, #tpu.memory_space<vmem>>, vector<1x1xf32>,
    return
  }
  func.func @transform_0(%arg0: i32) -> (i32, i32) {
    %c0_i32 = arith.constant 0 : i32
    %c0_i32_0 = arith.constant 0 : i32
    return %arg0, %c0_i32 : i32, i32
  }
  func.func @transform_1(%arg0: i32) -> (i32, i32) {
    %c0_i32 = arith.constant 0 : i32
    %c0_i32_0 = arith.constant 0 : i32
    %c0_i32_1 = arith.constant 0 : i32
    return %c0_i32, %c0_i32_0 : i32, i32
  }
  func.func @transform_2(%arg0: i32) -> (i32, i32) {
    %c0_i32 = arith.constant 0 : i32
    %c0_i32_0 = arith.constant 0 : i32
    %c0_i32_1 = arith.constant 0 : i32
    return %c0_i32, %c0_i32_0 : i32, i32
  }
  func.func @transform_3(%arg0: i32) -> (i32, i32) {
    %c0_i32 = arith.constant 0 : i32
    %c0_i32_0 = arith.constant 0 : i32
    %c0_i32_1 = arith.constant 0 : i32
    return %c0_i32, %c0_i32_0 : i32, i32
  }
  func.func @transform_4(%arg0: i32) -> (i32, i32) {
    %c0_i32 = arith.constant 0 : i32
    %c0_i32_0 = arith.constant 0 : i32
    %c0_i32_1 = arith.constant 0 : i32
    return %c0_i32, %c0_i32_0 : i32, i32
  }
  func.func @transform_5(%arg0: i32) -> (i32, i32) {
    %c0_i32 = arith.constant 0 : i32
    %c0_i32_0 = arith.constant 0 : i32
    return %arg0, %c0_i32 : i32, i32
  }
  func.func @transform_6(%arg0: i32) -> (i32, i32) {
    %c0_i32 = arith.constant 0 : i32
    %c0_i32_0 = arith.constant 0 : i32
    %c0_i32_1 = arith.constant 0 : i32
    return %c0_i32, %c0_i32_0 : i32, i32
  }
}

</mosaic_0001>

<bundles_post_ra>
// kernel: dual_nar_decoder_forward.24
= control target key start
LH: loop header
LB: loop body
LE: loop exit
PB: predicated region body
PF: predicated region fallthrough
CT: control target
= control target key end

     0   :  { %s331_s12 = smov 0   ;;  %s367_s0 = inlined_call_operand.vmem [shape: f32[2,16,32], index: 0, kind: input, shape index: {}]   ;;  %s368_s1 = inlined_call_operand.vmem [shape: f32[1,32], index: 1, kind: input, shape index: {}]   ;;  %s369_s2 = inlined_call_operand.vmem [shape: f32[1,32], index: 2, kind: input, shape index: {}]   ;;  %s370_s3 = inlined_call_operand.vmem [shape: f32[2,16,32], index: 3, kind: output, shape index: {}]  }
   0x1 LB: > { %s276_s13 = sadd.s32 4294967295, %s309_s12   ;;  %p280_p0 = scmp.ge.s32.totalorder %s309_s12, 1  ;;  %s309_s12 = sphi %s331_s12, %s13_s12  }
   0x2   : > { %p137_p1 = scmp.lt.s32.totalorder %s309_s12, 3 }
   0x4   : > { %p138_p2 = pnand %p280_p0, %p137_p1 }
   0x5   : > { %p161_p3 = scmp.lt.s32.totalorder (!%p138_p2), %s276_s13, 1  ;;  %vm175_vm0 = vcmask (!%p138_p2), 261120   ;;  %v285_v21 = vld [vmem:[%s368_s1] ss:$0 sm:$0xff] (!%p138_p2) }
   0x6   : > { %141 = sbr.rel (%p138_p2) target bundleno = 335 (0x14f), region = 32  ;;  %v286_v23 = vld [vmem:[%s369_s2] ss:$0 sm:$0xff] (!%p138_p2) }
   0xd   : > { %s372_s13 = smov (!%p161_p3, %s276_s13), 1 }
   0xe   : > { %s289_s14 = sshll.u32 %s372_s13, 4 }
   0xf   : > { %s165_s17 = scalar_lea.vmem %s367_s0, %s289_s14  ;;  %s170_s24 = scalar_lea.vmem %s370_s3, %s289_s14 }
  0x10   : > { %v171_v0 = vld [vmem:[%s165_s17] sm:$0xff]  ;;  %v172_v1 = vld [vmem:[%s165_s17 + $0x8] sm:$0xff] }
  0x11   : > { %v176_v2 = vsel %vm175_vm0, %v171_v0, 0.0  ;;  %v179_v3 = vsel %vm175_vm0, %v172_v1, 0.0 }
  0x12   : > { %177 = vadd.xlane.f32.xlu0 %v176_v2 }
  0x16   : > { %180 = vadd.xlane.f32.xlu0 %v179_v3 }
  0x9f   : > { %v178_v4 = vpop.xlane.xlu0 %177 }
  0xa0   : > { %v183_v5 = vmul.f32 0.03125, %v178_v4 }
  0xa2   : > { %v185_v6 = vsub.f32 %v171_v0, %v183_v5 }
  0xa3   : > { %v181_v7 = vpop.xlane.xlu0 %180 }
  0xa4   : > { %v184_v8 = vmul.f32 0.03125, %v181_v7  ;;  %v187_v9 = vmul.f32 %v185_v6, %v185_v6 }
  0xa6   : > { %v186_v10 = vsub.f32 %v172_v1, %v184_v8  ;;  %v189_v11 = vsel %vm175_vm0, %v187_v9, 0.0 }
  0xa7   : > { %190 = vadd.xlane.f32.xlu1 %v189_v11 }
  0xa8   : > { %v188_v12 = vmul.f32 %v186_v10, %v186_v10 }
  0xaa   : > { %v192_v13 = vsel %vm175_vm0, %v188_v12, 0.0 }
  0xab   : > { %193 = vadd.xlane.f32.xlu1 %v192_v13 }
 0x134   : > { %v191_v14 = vpop.xlane.xlu1 %190 }
 0x135   : > { %v195_v15 = vmul.f32 0.03125, %v191_v14 }
 0x137   : > { %v197_v16 = vadd.f32 1e-05, %v195_v15 }
 0x138   : > { %v194_v17 = vpop.xlane.xlu1 %193 }
 0x139   : > { %299 = vrsqrt.f32 %v197_v16  ;;  %v196_v18 = vmul.f32 0.03125, %v194_v17 }
 0x13b   : > { %v198_v19 = vadd.f32 1e-05, %v196_v18 }
 0x13d   : > { %301 = vrsqrt.f32 %v198_v19 }
 0x143   : > { %v300_v20 = vpop.eup %299 }
 0x144   : > { %v201_v22 = vmul.f32 %v300_v20, %v185_v6 }
 0x146   : > { %v209_v24 = vmul.f32 %v285_v21, %v201_v22 }
 0x147   : > { %v302_v25 = vpop.eup %301 }
 0x148   : > { %v217_v26 = vadd.f32 %v286_v23, %v209_v24  ;;  %v202_v27 = vmul.f32 %v302_v25, %v186_v10 }
 0x14a   : > { %219 = vst.msk [vmem:[%s170_s24] sm:$0xff] %vm175_vm0, %v217_v26  ;;  %v210_v28 = vmul.f32 %v285_v21, %v202_v27 }
 0x14c   : > { %v218_v29 = vadd.f32 %v286_v23, %v210_v28 }
 0x14e   : > { %220 = vst.msk [vmem:[%s170_s24 + $0x8] sm:$0xff] %vm175_vm0, %v218_v29 }
 0x14f PF: > { %s13_s12 = sadd.s32 1, %s309_s12  }
 0x150   : > { %p10_p4 = scmp.ge.s32.totalorder %s13_s12, 4  }
 0x152   :  { %12 = sbr.rel (!%p10_p4) target bundleno = 1 (0x1), region = 62 }

// kernel: dual_nar_decoder_forward.21
= control target key start
LH: loop header
LB: loop body
LE: loop exit
PB: predicated region body
PF: predicated region fallthrough
CT: control target
= control target key end

     0   :  { %s734_s24 = smov 0   ;;  %s817_s0 = inlined_call_operand.vmem [shape: f32[2,16,32], index: 0, kind: input, shape index: {}]   ;;  %s818_s1 = inlined_call_operand.vmem [shape: f32[1,32], index: 1, kind: input, shape index: {}]   ;;  %s819_s2 = inlined_call_operand.vmem [shape: f32[1,32], index: 2, kind: input, shape index: {}]   ;;  %s820_s3 = inlined_call_operand.vmem [shape: bf16[32,128], index: 3, kind: input, shape index: {}]   ;;  %s821_s4 = inlined_call_operand.vmem [shape: f32[1,128], index: 4, kind: input, shape index: {}]   ;;  %s822_s5 = inlined_call_operand.vmem [shape: bf16[128,32], index: 5, kind: input, shape index: {}]   ;;  %s823_s6 = inlined_call_operand.vmem [shape: f32[1,32], index: 6, kind: input, shape index: {}]   ;;  %s824_s7 = inlined_call_operand.vmem [shape: f32[2,16,32], index: 7, kind: output, shape index: {}]  }
   0x1 LB: > { %s588_s25 = sadd.s32 4294967295, %s690_s24   ;;  %p592_p0 = scmp.ge.s32.totalorder %s690_s24, 1  ;;  %s690_s24 = sphi %s734_s24, %s17_s24  }
   0x2   : > { %p237_p1 = scmp.lt.s32.totalorder %s690_s24, 3 }
   0x4   : > { %p238_p2 = pnand %p592_p0, %p237_p1 }
   0x5   : > { %p269_p3 = scmp.lt.s32.totalorder (!%p238_p2), %s588_s25, 1  ;;  %vm284_vm0 = vcmask (!%p238_p2), 261120   ;;  %v666_v14 = vld [vmem:[%s820_s3] sm:$0xff] (!%p238_p2)   ;;  %v692_v15 = vmov (!%p238_p2), 0.0   ;;  %v667_v16 = vld [vmem:[%s820_s3 + $0x8] sm:$0xff] (!%p238_p2)   ;;  %vm693_vm1 = vmmov (!%p238_p2), 0  }
   0x6   : > { %241 = sbr.rel (%p238_p2) target bundleno = 800 (0x320), region = 48  ;;  %628 = vmatprep.subr.bf16.mxu0 (!%p238_p2), %v692_v15  ;;  %636 = vmatprep.subr.bf16.mxu1 (!%p238_p2), %v692_v15  ;;  %v597_v25 = vld [vmem:[%s818_s1] ss:$0 sm:$0xff] (!%p238_p2)  ;;  %v669_v35 = vld [vmem:[%s822_s5 + $0x8] sm:$0xff] (!%p238_p2)   ;;  %v670_v36 = vld [vmem:[%s822_s5 + $0x10] sm:$0xff] (!%p238_p2)  }
   0x7   : > { %629 = vmatpush3.bf16.msra.mxu0 (!%p238_p2), %v666_v14  ;;  %632 = vmatprep.mubr.msk.bf16.mxu0 (!%p238_p2), %vm693_vm1, %v692_v15  ;;  %v598_v29 = vld [vmem:[%s819_s2] ss:$0 sm:$0xff] (!%p238_p2)  ;;  %v671_v37 = vld [vmem:[%s822_s5 + $0x18] sm:$0xff] (!%p238_p2)   ;;  %v673_v39 = vld [vmem:[%s822_s5 + $0x28] sm:$0xff] (!%p238_p2)  }
   0x8   : > { %630 = vmatprep.subr.bf16.mxu0 (!%p238_p2), %v692_v15  ;;  %652 = vmatprep.mubr.msk.bf16.mxu1 (!%p238_p2), %vm693_vm1, %v692_v15  ;;  %v668_v34 = vld [vmem:[%s822_s5] sm:$0xff] (!%p238_p2)   ;;  %v674_v40 = vld [vmem:[%s822_s5 + $0x30] sm:$0xff] (!%p238_p2)   ;;  %v675_v41 = vld [vmem:[%s822_s5 + $0x38] sm:$0xff] (!%p238_p2)  }
   0x9   : > { %637 = vmatpush3.bf16.msra.mxu1 (!%p238_p2), %v668_v34  ;;  %v672_v38 = vld [vmem:[%s822_s5 + $0x20] sm:$0xff] (!%p238_p2)  }
   0xa   : > { %638 = vmatprep.subr.bf16.mxu1 (!%p238_p2), %v692_v15  ;;  %v599_v42 = vld [vmem:[%s821_s4] ss:$0 sm:$0xff] (!%p238_p2) }
   0xb   : > { %631 = vmatpush3.bf16.msra.mxu0 (!%p238_p2), %v667_v16 }
   0xd   : > { %s826_s25 = smov (!%p269_p3, %s588_s25), 1  ;;  %639 = vmatpush3.bf16.msra.mxu1 %v669_v35 }
   0xe   : > { %s614_s26 = sshll.u32 %s826_s25, 4  ;;  %640 = vmatprep.subr.bf16.mxu1 %v692_v15 }
   0xf   : > { %s273_s29 = scalar_lea.vmem %s817_s0, %s614_s26  ;;  %s278_s17 = scalar_lea.vmem %s824_s7, %s614_s26 }
  0x10   : > { %v750_v0 = vld [vmem:[%s273_s29] sm:$0xff]  ;;  %v752_v1 = vld [vmem:[%s273_s29 + $0x8] sm:$0xff] }
  0x11   : > { %v285_v2 = vsel %vm284_vm0, %v750_v0, 0.0  ;;  %v288_v3 = vsel %vm284_vm0, %v752_v1, 0.0  ;;  %641 = vmatpush3.bf16.msra.mxu1 %v670_v36 }
  0x12   : > { %286 = vadd.xlane.f32.xlu0 %v285_v2  ;;  %642 = vmatprep.subr.bf16.mxu1 %v692_v15 }
  0x15   : > { %643 = vmatpush3.bf16.msra.mxu1 %v671_v37 }
  0x16   : > { %289 = vadd.xlane.f32.xlu0 %v288_v3  ;;  %644 = vmatprep.subr.bf16.mxu1 %v692_v15 }
  0x19   : > { %645 = vmatpush3.bf16.msra.mxu1 %v672_v38 }
  0x1a   : > { %646 = vmatprep.subr.bf16.mxu1 %v692_v15 }
  0x1d   : > { %647 = vmatpush3.bf16.msra.mxu1 %v673_v39 }
  0x1e   : > { %648 = vmatprep.subr.bf16.mxu1 %v692_v15 }
  0x21   : > { %649 = vmatpush3.bf16.msra.mxu1 %v674_v40 }
  0x22   : > { %650 = vmatprep.subr.bf16.mxu1 %v692_v15 }
  0x25   : > { %651 = vmatpush3.bf16.msra.mxu1 %v675_v41 }
  0x9f   : > { %v287_v4 = vpop.xlane.xlu0 %286 }
  0xa0   : > { %v292_v5 = vmul.f32 0.03125, %v287_v4 }
  0xa2   : > { %v294_v6 = vsub.f32 %v750_v0, %v292_v5 }
  0xa3   : > { %v290_v7 = vpop.xlane.xlu0 %289 }
  0xa4   : > { %v293_v8 = vmul.f32 0.03125, %v290_v7  ;;  %v296_v9 = vmul.f32 %v294_v6, %v294_v6  ;;  %v611_v7 = vld [vmem:[%s823_s6] ss:$0 sm:$0xff] }
  0xa6   : > { %v295_v10 = vsub.f32 %v752_v1, %v293_v8  ;;  %v298_v11 = vsel %vm284_vm0, %v296_v9, 0.0 }
  0xa7   : > { %299 = vadd.xlane.f32.xlu1 %v298_v11 }
  0xa8   : > { %v297_v12 = vmul.f32 %v295_v10, %v295_v10 }
  0xaa   : > { %v301_v13 = vsel %vm284_vm0, %v297_v12, 0.0 }
  0xab   : > { %302 = vadd.xlane.f32.xlu1 %v301_v13 }
 0x134   : > { %v300_v17 = vpop.xlane.xlu1 %299 }
 0x135   : > { %v304_v18 = vmul.f32 0.03125, %v300_v17 }
 0x137   : > { %v306_v19 = vadd.f32 1e-05, %v304_v18 }
 0x138   : > { %v303_v20 = vpop.xlane.xlu1 %302 }
 0x139   : > { %676 = vrsqrt.f32 %v306_v19  ;;  %v305_v21 = vmul.f32 0.03125, %v303_v20 }
 0x13b   : > { %v307_v22 = vadd.f32 1e-05, %v305_v21 }
 0x13d   : > { %678 = vrsqrt.f32 %v307_v22 }
 0x143   : > { %v677_v23 = vpop.eup %676 }
 0x144   : > { %v310_v24 = vmul.f32 %v677_v23, %v294_v6 }
 0x146   : > { %v318_v28 = vmul.f32 %v597_v25, %v310_v24 }
 0x147   : > { %v679_v26 = vpop.eup %678 }
 0x148   : > { %v311_v27 = vmul.f32 %v679_v26, %v295_v10  ;;  %v326_v31 = vadd.f32 %v598_v29, %v318_v28 }
 0x14a   : > { %v319_v30 = vmul.f32 %v597_v25, %v311_v27 }
 0x14c   : > { %v327_v32 = vadd.f32 %v598_v29, %v319_v30 }
 0x14e   : > { %v328_v33 = vpack.c.bf16 %v327_v32, %v326_v31 }
 0x150   : > { %633 = vmatmul.mubr.msk.bf16.vlgmr.msra.gmra.mrb[0].mxu0 %vm284_vm0, %v328_v33 }
 0x223   : > { %v389_v43 = vpop.f32.mrb[0].mxu0 }
 0x224   : > { %v390_v44 = vadd.f32 %v599_v42, %v389_v43  ;;  %v634_v45 = vpop.f32.mrb[1].mxu0 }
 0x225   : > { %v392_v46 = vpop.f32.mrb[2].mxu0 }
 0x226   : > { %v396_v47 = vmul.f32 %v390_v44, %v390_v44  ;;  %v393_v48 = vadd.f32 %v599_v42, %v392_v46  ;;  %v635_v49 = vpop.f32.mrb[3].mxu0 }
 0x228   : > { %v398_v50 = vmul.f32 %v396_v47, %v390_v44  ;;  %v397_v51 = vmul.f32 %v393_v48, %v393_v48 }
 0x22a   : > { %v400_v52 = vmul.f32 0.044715, %v398_v50  ;;  %v399_v53 = vmul.f32 %v397_v51, %v393_v48 }
 0x22c   : > { %v402_v54 = vadd.f32 %v400_v52, %v390_v44  ;;  %v401_v55 = vmul.f32 0.044715, %v399_v53 }
 0x22e   : > { %v404_v56 = vmul.f32 0.7978846, %v402_v54  ;;  %v403_v57 = vadd.f32 %v401_v55, %v393_v48 }
 0x230   : > { %680 = vtanh.f32 %v404_v56  ;;  %v405_v58 = vmul.f32 0.7978846, %v403_v57 }
 0x232   : > { %682 = vtanh.f32 %v405_v58 }
 0x23a   : > { %v681_v59 = vpop.eup %680 }
 0x23b   : > { %v408_v60 = vadd.f32 1.0, %v681_v59 }
 0x23c   : > { %v683_v61 = vpop.eup %682 }
 0x23d   : > { %v409_v62 = vadd.f32 1.0, %v683_v61  ;;  %v410_v63 = vmul.f32 0.5, %v408_v60 }
 0x23f   : > { %v411_v2 = vmul.f32 0.5, %v409_v62  ;;  %v412_v3 = vmul.f32 %v410_v63, %v390_v44 }
 0x241   : > { %v413_v4 = vmul.f32 %v411_v2, %v393_v48 }
 0x243   : > { %v414_v5 = vpack.c.bf16 %v413_v4, %v412_v3 }
 0x245   : > { %653 = vmatmul.mubr.bf16.vlgmr.msra.gmra.mrb[0].mxu1 %v414_v5 }
 0x318   : > { %v513_v6 = vpop.f32.mrb[0].mxu1 }
 0x319   : > { %v520_v8 = vadd.f32 %v513_v6, %v750_v0  ;;  %v654_v9 = vpop.f32.mrb[1].mxu1 }
 0x31a   : > { %v516_v10 = vpop.f32.mrb[2].mxu1 }
 0x31b   : > { %v529_v11 = vadd.f32 %v611_v7, %v520_v8  ;;  %v521_v12 = vadd.f32 %v516_v10, %v752_v1  ;;  %v655_v13 = vpop.f32.mrb[3].mxu1 }
 0x31d   : > { %531 = vst.msk [vmem:[%s278_s17] sm:$0xff] %vm284_vm0, %v529_v11  ;;  %v530_v14 = vadd.f32 %v611_v7, %v521_v12 }
 0x31f   : > { %532 = vst.msk [vmem:[%s278_s17 + $0x8] sm:$0xff] %vm284_vm0, %v530_v14 }
 0x320 PF: > { %s17_s24 = sadd.s32 1, %s690_s24  }
 0x321   : > { %p14_p4 = scmp.ge.s32.totalorder %s17_s24, 4  }
 0x323   :  { %16 = sbr.rel (!%p14_p4) target bundleno = 1 (0x1), region = 78 }

// kernel: dual_nar_decoder_forward.20
= control target key start
LH: loop header
LB: loop body
LE: loop exit
PB: predicated region body
PF: predicated region fallthrough
CT: control target
= control target key end

     0   :  { %s2014_s24 = smov 0   ;;  %s2228_s0 = inlined_call_operand.vmem [shape: f32[2,16,32], index: 0, kind: input, shape index: {}]   ;;  %s2229_s1 = inlined_call_operand.vmem [shape: f32[1,32], index: 1, kind: input, shape index: {}]   ;;  %s2230_s2 = inlined_call_operand.vmem [shape: f32[1,32], index: 2, kind: input, shape index: {}]   ;;  %s2231_s3 = inlined_call_operand.vmem [shape: bf16[96,32], index: 3, kind: input, shape index: {}]   ;;  %s2232_s4 = inlined_call_operand.vmem [shape: f32[96,1], index: 4, kind: input, shape index: {}]   ;;  %s2233_s5 = inlined_call_operand.vmem [shape: bf16[4,8,32], index: 5, kind: input, shape index: {}]   ;;  %s2234_s6 = inlined_call_operand.vmem [shape: f32[1,32], index: 6, kind: input, shape index: {}]   ;;  %s2235_s7 = inlined_call_operand.vmem [shape: f32[2,16,32], index: 7, kind: output, shape index: {}]  }
   0x1 LB: > { %s1733_s25 = sadd.s32 4294967295, %s1969_s24   ;;  %p1737_p0 = scmp.ge.s32.totalorder %s1969_s24, 1  ;;  %s1969_s24 = sphi %s2014_s24, %s17_s24  }
   0x2   : > { %p237_p1 = scmp.lt.s32.totalorder %s1969_s24, 3 }
   0x4   : > { %p238_p2 = pnand %p1737_p0, %p237_p1 }
   0x5   : > { %p269_p3 = scmp.lt.s32.totalorder (!%p238_p2), %s1733_s25, 1  ;;  %vm284_vm0 = vcmask (!%p238_p2), 261120   ;;  %v1742_v21 = vld [vmem:[%s2229_s1] ss:$0 sm:$0xff] (!%p238_p2)  ;;  %v1971_v32 = vmov (!%p238_p2), 0   ;;  %v1922_v40 = vld [vmem:[%s2231_s3 + $0x8] sm:$0xff] (!%p238_p2)  }
   0x6   : > { %241 = sbr.rel (%p238_p2) target bundleno = 3691 (0xe6b), region = 48  ;;  %v1743_v23 = vld [vmem:[%s2230_s2] ss:$0 sm:$0xff] (!%p238_p2)  ;;  %1919 = vset.pattern.permute.xlu1 (!%p238_p2), %v1971_v32  ;;  %v1923_v41 = vld [vmem:[%s2231_s3 + $0x10] sm:$0xff] (!%p238_p2)   ;;  %v1924_v42 = vld [vmem:[%s2231_s3 + $0x18] sm:$0xff] (!%p238_p2)   ;;  %vm607_vm1 = vcmask (!%p238_p2), 64512  }
   0x7   : > { %v1921_v30 = vld [vmem:[%s2231_s3] sm:$0xff] (!%p238_p2)   ;;  %v1926_v53 = vld [vmem:[%s2231_s3 + $0x28] sm:$0xff] (!%p238_p2)   ;;  %vm691_vm2 = vcmask (!%p238_p2), 130048   ;;  %vm1027_vm3 = vcmask (!%p238_p2), 1043456   ;;  %vm1973_vm4 = vmmov (!%p238_p2), 0  }
   0x8   : > { %1832 = vmatprep.mubr.msk.bf16.mxu0 (!%p238_p2), %vm284_vm0, %v1921_v30  ;;  %v374_v31 = vld [vmem:[%s2232_s4] sm:$0xff] (!%p238_p2) }
   0x9   : > { %v378_v33 = vld [vmem:[%s2232_s4 + $0x20] sm:$0xff] (!%p238_p2) }
   0xa   : > { %v1925_v52 = vld [vmem:[%s2231_s3 + $0x20] sm:$0xff] (!%p238_p2)  }
   0xd   : > { %s2237_s25 = smov (!%p269_p3, %s1733_s25), 1 }
   0xe   : > { %s1786_s26 = sshll.u32 %s2237_s25, 4 }
   0xf   : > { %s273_s29 = scalar_lea.vmem %s2228_s0, %s1786_s26  ;;  %s278_s19 = scalar_lea.vmem %s2235_s7, %s1786_s26 }
  0x10   : > { %v2030_v0 = vld [vmem:[%s273_s29] sm:$0xff]  ;;  %v2032_v1 = vld [vmem:[%s273_s29 + $0x8] sm:$0xff] }
  0x11   : > { %v285_v2 = vsel %vm284_vm0, %v2030_v0, 0.0  ;;  %v288_v3 = vsel %vm284_vm0, %v2032_v1, 0.0 }
  0x12   : > { %286 = vadd.xlane.f32.xlu0 %v285_v2 }
  0x16   : > { %289 = vadd.xlane.f32.xlu0 %v288_v3  ;;  %v382_v3 = vld [vmem:[%s2232_s4 + $0x40] sm:$0xff] }
  0x9f   : > { %v287_v4 = vpop.xlane.xlu0 %286 }
  0xa0   : > { %v292_v5 = vmul.f32 0.03125, %v287_v4 }
  0xa2   : > { %v294_v6 = vsub.f32 %v2030_v0, %v292_v5 }
  0xa3   : > { %v290_v7 = vpop.xlane.xlu0 %289 }
  0xa4   : > { %v293_v8 = vmul.f32 0.03125, %v290_v7  ;;  %v296_v9 = vmul.f32 %v294_v6, %v294_v6 }
  0xa6   : > { %v295_v10 = vsub.f32 %v2032_v1, %v293_v8  ;;  %v298_v11 = vsel %vm284_vm0, %v296_v9, 0.0 }
  0xa7   : > { %299 = vadd.xlane.f32.xlu1 %v298_v11 }
  0xa8   : > { %v297_v12 = vmul.f32 %v295_v10, %v295_v10 }
  0xaa   : > { %v301_v13 = vsel %vm284_vm0, %v297_v12, 0.0 }
  0xab   : > { %302 = vadd.xlane.f32.xlu1 %v301_v13 }
  0xbc   : > { %388 = vperm.xlu1 %1919, %v374_v31  }
  0xc0   : > { %408 = vperm.xlu1 %1919, %v378_v33  }
 0x134   : > { %v300_v14 = vpop.xlane.xlu1 %299 }
 0x135   : > { %v304_v15 = vmul.f32 0.03125, %v300_v14 }
 0x137   : > { %v306_v16 = vadd.f32 1e-05, %v304_v15 }
 0x138   : > { %v303_v17 = vpop.xlane.xlu1 %302 }
 0x139   : > { %1927 = vrsqrt.f32 %v306_v16  ;;  %v305_v18 = vmul.f32 0.03125, %v303_v17 }
 0x13b   : > { %v307_v19 = vadd.f32 1e-05, %v305_v18 }
 0x13c   : > { %v389_v44 = vpop.permute.xlu1 %388 }
 0x13d   : > { %1929 = vrsqrt.f32 %v307_v19  ;;  %v379_v19 = vld [vmem:[%s2232_s4 + $0x28] sm:$0xff] }
 0x140   : > { %v409_v50 = vpop.permute.xlu1 %408 }
 0x143   : > { %v1928_v20 = vpop.eup %1927 }
 0x144   : > { %v310_v22 = vmul.f32 %v1928_v20, %v294_v6  ;;  %v375_v6 = vld [vmem:[%s2232_s4 + $0x8] sm:$0xff] }
 0x146   : > { %v318_v24 = vmul.f32 %v1742_v21, %v310_v22 }
 0x147   : > { %v1930_v25 = vpop.eup %1929 }
 0x148   : > { %v326_v26 = vadd.f32 %v1743_v23, %v318_v24  ;;  %v311_v27 = vmul.f32 %v1930_v25, %v295_v10 }
 0x14a   : > { %340 = vxpose.xlu0.b32.start [1/2] (short) (narrow) %v326_v26, 32  ;;  %v319_v28 = vmul.f32 %v1742_v21, %v311_v27 }
 0x14c   : > { %v327_v29 = vadd.f32 %v1743_v23, %v319_v28 }
 0x14e   : > { %341 = vxpose.xlu0.b32.end [2/2] (short) (narrow) %v327_v29, 32 }
 0x177   : > { %1920 = vset.pattern.permute.xlu0 %v1971_v32 }
 0x1ca   : > { %v356_v34 = vpop.trf.xlu0 }
 0x1ce   : > { %v357_v35 = vpop.trf.xlu0 }
 0x1cf   : > { %v372_v36 = vpack.c.bf16 %v357_v35, %v356_v34 }
 0x1d1   : > { %1828 = vmatprep.subr.bf16.mxu0 %v372_v36 }
 0x1d2   : > { %1829 = vmatpush3.bf16.msra.mxu0 %v372_v36  ;;  %v358_v37 = vpop.trf.xlu0 }
 0x1d6   : > { %v359_v38 = vpop.trf.xlu0 }
 0x1d7   : > { %v373_v39 = vpack.c.bf16 %v359_v38, %v358_v37 }
 0x1d9   : > { %1830 = vmatprep.subr.bf16.mxu0 %v373_v39 }
 0x1da   : > { %1831 = vmatpush3.bf16.msra.mxu0 %v373_v39 }
 0x1dd   : > { %1833 = vmatmul.mubr.msk.bf16.vlgmr.msra.gmra.mrb[0].mxu0 %vm284_vm0, %v1922_v40 }
 0x1de   : > { %1836 = vmatprep.mubr.msk.bf16.mxu0 %vm284_vm0, %v1923_v41 }
 0x1e5   : > { %1837 = vmatmul.mubr.msk.bf16.gmra.mrb[4].mxu0 %vm284_vm0, %v1924_v42 }
 0x1e6   : > { %1840 = vmatprep.mubr.msk.bf16.mxu0 %vm284_vm0, %v1925_v52 }
 0x1ed   : > { %1841 = vmatmul.mubr.msk.bf16.gmra.mrb[8].mxu0 %vm284_vm0, %v1926_v53 }
 0x2b0   : > { %v2070_v43 = vpop.f32.mrb[0].mxu0 }
 0x2b1   : > { %v528_v45 = vpop.f32.mrb[1].mxu0 }
 0x2b2   : > { %v529_v46 = vadd.f32 %v528_v45, %v389_v44  ;;  %v2072_v47 = vpop.f32.mrb[2].mxu0 }
 0x2b3   : > { %v531_v48 = vpop.f32.mrb[3].mxu0 }
 0x2b4   : > { %575 = vxpose.xlu1.b32.start.end [1/1] (short) (narrow) %v529_v46, 16 }
 0x2b8   : > { %v2074_v49 = vpop.f32.mrb[4].mxu0 }
 0x2b9   : > { %v544_v51 = vpop.f32.mrb[5].mxu0 }
 0x2ba   : > { %v545_v54 = vadd.f32 %v544_v51, %v409_v50  ;;  %v2082_v55 = vpop.f32.mrb[6].mxu0 }
 0x2bb   : > { %v547_v56 = vpop.f32.mrb[7].mxu0 }
 0x2bc   : > { %1844 = vmatprep.subr.mxu1 %v545_v54 }
 0x2bd   : > { %1845 = vmatpush3.msra.mxu1 %v545_v54 }
 0x2c0   : > { %v2093_v4 = vpop.f32.mrb[8].mxu0 }
 0x2c1   : > { %v560_v5 = vpop.f32.mrb[9].mxu0 }
 0x2c2   : > { %v2105_v20 = vpop.f32.mrb[10].mxu0 }
 0x2c3   : > { %v563_v21 = vpop.f32.mrb[11].mxu0 }
 0x334   : > { %v591_v57 = vpop.trf.xlu1 }
 0x335   : > { %1846 = vmatprep.mubr.msk.f32.mxu1 %vm607_vm1, %v591_v57  ;;  %v383_v57 = vld [vmem:[%s2232_s4 + $0x48] sm:$0xff] }
 0x338   : > { %v592_v58 = vpop.trf.xlu1 }
 0x339   : > { %1847 = vmatmul.mubr.msk.f32.vlgmr.msra.gmra.mrb[0].mxu1 %vm607_vm1, %v592_v58  ;;  %v376_v58 = vld [vmem:[%s2232_s4 + $0x10] sm:$0xff] }
 0x40c   : > { %v1848_v59 = vpop.f32.mrb[0].mxu1 }
 0x40d   : > { %v690_v60 = vmul.f32 0.35355338, %v1848_v59  ;;  %v680_v61 = vpop.f32.mrb[1].mxu1  ;;  %v380_v59 = vld [vmem:[%s2232_s4 + $0x30] sm:$0xff] }
 0x40e   : > { %v689_v62 = vmul.f32 0.35355338, %v680_v61 }
 0x40f   : > { %v695_v63 = vsel %vm691_vm2, %v690_v60, -inf }
 0x410   : > { %696 = vmax.xlane.f32.xlu1 %v695_v63  ;;  %v692_v2 = vsel %vm691_vm2, %v689_v62, -inf }
 0x411   : > { %693 = vmax.xlane.f32.xlu0 %v692_v2 }
 0x421   : > { %428 = vperm.xlu1 %1919, %v382_v3  }
 0x427   : > { %393 = vperm.xlu0 %1920, %v375_v6  }
 0x49d   : > { %v697_v7 = vpop.xlane.xlu1 %696 }
 0x49e   : > { %v699_v8 = vsub.f32 %v690_v60, %v697_v7  ;;  %v694_v9 = vpop.xlane.xlu0 %693  ;;  %v1972_v60 = vmov 0.0  }
 0x49f   : > { %v698_v10 = vsub.f32 %v689_v62, %v694_v9  ;;  %1886 = vmatprep.subr.bf16.mxu0 %v1972_v60  ;;  %1888 = vmatprep.mubr.msk.bf16.mxu0 %vm1973_vm4, %v1972_v60 }
 0x4a0   : > { %v702_v11 = vmul.f32 1.442695, %v699_v8 }
 0x4a1   : > { %v700_v12 = vmul.f32 1.442695, %v698_v10  ;;  %v429_v13 = vpop.permute.xlu1 %428  ;;  %v1766_v10 = vld [vmem:[%s2233_s5 + $0x4] sm:$0xf] }
 0x4a2   : > { %1931 = vpow2.f32 %v702_v11  ;;  %v561_v14 = vadd.f32 %v560_v5, %v429_v13  ;;  %v1029_v11 = vsel %vm1027_vm3, %v1766_v10, 0 }
 0x4a3   : > { %1933 = vpow2.f32 %v700_v12 }
 0x4a4   : > { %1849 = vmatprep.subr.msk.mxu1 %vm691_vm2, %v561_v14 }
 0x4a5   : > { %1850 = vmatpush3.xpose.msk.msra.mxu1 %vm691_vm2, %v561_v14 }
 0x4a6   : > { %v394_v22 = vpop.permute.xlu0 %393 }
 0x4a7   : > { %v532_v23 = vadd.f32 %v531_v48, %v394_v22 }
 0x4ac   : > { %v1932_v15 = vpop.eup %1931 }
 0x4ad   : > { %v707_v16 = vsel %vm691_vm2, %v1932_v15, 0.0  ;;  %v1934_v17 = vpop.eup %1933 }
 0x4ae   : > { %708 = vadd.xlane.f32.xlu1 %v707_v16  ;;  %v704_v18 = vsel %vm691_vm2, %v1934_v17, 0.0 }
 0x4b2   : > { %705 = vadd.xlane.f32.xlu1 %v704_v18 }
 0x4c3   : > { %413 = vperm.xlu1 %1919, %v379_v19  }
 0x4ec   : > { %800 = vxpose.xlu1.b32.start.end [1/1] (short) (narrow) %v532_v23, 16 }
 0x53b   : > { %v709_v24 = vpop.xlane.xlu1 %708 }
 0x53c   : > { %1935 = vrcp.f32 %v709_v24 }
 0x53f   : > { %v706_v25 = vpop.xlane.xlu1 %705 }
 0x540   : > { %1937 = vrcp.f32 %v706_v25 }
 0x543   : > { %v414_v26 = vpop.permute.xlu1 %413 }
 0x544   : > { %v548_v27 = vadd.f32 %v547_v56, %v414_v26 }
 0x546   : > { %1854 = vmatprep.subr.mxu1 %v548_v27  ;;  %v1936_v28 = vpop.eup %1935 }
 0x547   : > { %v713_v31 = vmul.f32 %v1936_v28, %v1932_v15 }
 0x54a   : > { %v1938_v29 = vpop.eup %1937 }
 0x54b   : > { %v712_v30 = vmul.f32 %v1938_v29, %v1934_v17 }
 0x54d   : > { %1851 = vmatprep.mubr.msk.f32.mxu1 %vm691_vm2, %v712_v30 }
 0x54e   : > { %1852 = vmatmul.mubr.msk.f32.vlgmr.msra.gmra.mrb[2].mxu1 %vm691_vm2, %v713_v31 }
 0x54f   : > { %1855 = vmatpush3.msra.mxu1 %v548_v27 }
 0x56c   : > { %v816_v32 = vpop.trf.xlu1 }
 0x56d   : > { %1856 = vmatprep.mubr.msk.f32.mxu1 %vm607_vm1, %v816_v32 }
 0x570   : > { %v817_v33 = vpop.trf.xlu1 }
 0x571   : > { %1857 = vmatmul.mubr.msk.f32.vlgmr.msra.gmra.mrb[4].mxu1 %vm607_vm1, %v817_v33 }
 0x621   : > { %v2111_v34 = vpop.f32.mrb[2].mxu1 }
 0x622   : > { %v2113_v35 = vpop.f32.mrb[3].mxu1 }
 0x623   : > { %v798_v36 = vpack.c.bf16 %v2111_v34, %v2113_v35 }
 0x644   : > { %v1858_v37 = vpop.f32.mrb[4].mxu1 }
 0x645   : > { %v914_v38 = vmul.f32 0.35355338, %v1858_v37  ;;  %v904_v39 = vpop.f32.mrb[5].mxu1 }
 0x646   : > { %v913_v40 = vmul.f32 0.35355338, %v904_v39 }
 0x647   : > { %v918_v41 = vsel %vm691_vm2, %v914_v38, -inf }
 0x648   : > { %919 = vmax.xlane.f32.xlu1 %v918_v41  ;;  %v915_v42 = vsel %vm691_vm2, %v913_v40, -inf }
 0x649   : > { %916 = vmax.xlane.f32.xlu0 %v915_v42 }
 0x6d5   : > { %v920_v44 = vpop.xlane.xlu1 %919 }
 0x6d6   : > { %v922_v45 = vsub.f32 %v914_v38, %v920_v44  ;;  %v917_v46 = vpop.xlane.xlu0 %916 }
 0x6d7   : > { %v921_v48 = vsub.f32 %v913_v40, %v917_v46 }
 0x6d8   : > { %v925_v50 = vmul.f32 1.442695, %v922_v45 }
 0x6d9   : > { %v923_v51 = vmul.f32 1.442695, %v921_v48 }
 0x6da   : > { %1939 = vpow2.f32 %v925_v50  ;;  %v384_v50 = vld [vmem:[%s2232_s4 + $0x50] sm:$0xff] }
 0x6db   : > { %1941 = vpow2.f32 %v923_v51  ;;  %v381_v51 = vld [vmem:[%s2232_s4 + $0x38] sm:$0xff] }
 0x6e4   : > { %v1940_v52 = vpop.eup %1939 }
 0x6e5   : > { %v930_v53 = vsel %vm691_vm2, %v1940_v52, 0.0  ;;  %v1942_v54 = vpop.eup %1941 }
 0x6e6   : > { %931 = vadd.xlane.f32.xlu0 %v930_v53  ;;  %v927_v56 = vsel %vm691_vm2, %v1942_v54, 0.0 }
 0x6ea   : > { %928 = vadd.xlane.f32.xlu0 %v927_v56 }
 0x700   : > { %433 = vperm.xlu0 %1920, %v383_v57  }
 0x704   : > { %398 = vperm.xlu0 %1920, %v376_v58  }
 0x708   : > { %418 = vperm.xlu0 %1920, %v380_v59  }
 0x773   : > { %v932_v61 = vpop.xlane.xlu0 %931 }
 0x774   : > { %1943 = vrcp.f32 %v932_v61 }
 0x777   : > { %v929_v62 = vpop.xlane.xlu0 %928 }
 0x778   : > { %1945 = vrcp.f32 %v929_v62 }
 0x77e   : > { %v1944_v3 = vpop.eup %1943 }
 0x77f   : > { %v434_v63 = vpop.permute.xlu0 %433  ;;  %v936_v8 = vmul.f32 %v1944_v3, %v1940_v52 }
 0x780   : > { %v564_v2 = vadd.f32 %v563_v21, %v434_v63 }
 0x782   : > { %v1946_v5 = vpop.eup %1945  ;;  %1859 = vmatprep.subr.msk.mxu1 %vm691_vm2, %v564_v2 }
 0x783   : > { %1860 = vmatpush3.xpose.msk.msra.mxu1 %vm691_vm2, %v564_v2  ;;  %v399_v6 = vpop.permute.xlu0 %398  ;;  %v935_v7 = vmul.f32 %v1946_v5, %v1942_v54  ;;  %v1774_v5 = vld [vmem:[%s2233_s5 + $0x8] sm:$0xf] }
 0x784   : > { %v537_v9 = vadd.f32 %v2070_v43, %v399_v6  ;;  %1864 = vmatprep.subr.bf16.mxu1 %v1972_v60  ;;  %v799_v43 = vld [vmem:[%s2233_s5] sm:$0xf] }
 0x785   : > { %1861 = vmatprep.mubr.msk.f32.mxu1 %vm691_vm2, %v935_v7  ;;  %v1076_v16 = vsel %vm1027_vm3, %v799_v43, 0 }
 0x786   : > { %1862 = vmatmul.mubr.msk.f32.vlgmr.msra.gmra.mrb[6].mxu1 %vm691_vm2, %v936_v8  ;;  %1119 = vxpose.xlu0.b32.start.end [1/1] (short) (narrow) %v537_v9, 16 }
 0x787   : > { %1865 = vmatpush3.bf16.msra.mxu1 %v1029_v11  ;;  %1866 = vmatprep.mubr.msk.bf16.mxu1 %vm1973_vm4, %v1972_v60  ;;  %v419_v13 = vpop.permute.xlu0 %418 }
 0x788   : > { %1870 = vmatprep.subr.bf16.mxu1 %v1972_v60  ;;  %v553_v17 = vadd.f32 %v2074_v49, %v419_v13 }
 0x806   : > { %v1135_v18 = vpop.trf.xlu0 }
 0x80a   : > { %v1136_v19 = vpop.trf.xlu0 }
 0x859   : > { %v1863_v12 = vpop.f32.mrb[6].mxu1 }
 0x85a   : > { %v1012_v14 = vpop.f32.mrb[7].mxu1 }
 0x85b   : > { %v1021_v15 = vpack.c.bf16 %v1863_v12, %v1012_v14 }
 0x85d   : > { %1867 = vmatmul.mubr.msk.bf16.vlgmr.msra.gmra.mrb[8].mxu1 %vm607_vm1, %v1021_v15 }
 0x85e   : > { %1871 = vmatpush3.bf16.msra.mxu1 %v1076_v16  ;;  %1872 = vmatprep.mubr.msk.bf16.mxu1 %vm1973_vm4, %v1972_v60 }
 0x85f   : > { %1876 = vmatprep.subr.mxu1 %v553_v17 }
 0x865   : > { %1873 = vmatmul.mubr.msk.bf16.vlgmr.msra.gmra.mrb[12].mxu1 %vm607_vm1, %v798_v36  ;;  %v377_v36 = vld [vmem:[%s2232_s4 + $0x18] sm:$0xff] }
 0x866   : > { %1877 = vmatpush3.msra.mxu1 %v553_v17  ;;  %1878 = vmatprep.mubr.msk.f32.mxu1 %vm607_vm1, %v1135_v18 }
 0x86d   : > { %1879 = vmatmul.mubr.msk.f32.vlgmr.msra.gmra.mrb[16].mxu1 %vm607_vm1, %v1136_v19 }
 0x930   : > { %v1065_v49 = vpop.f32.mrb[8].mxu1 }
 0x931   : > { %v1868_v21 = vpop.f32.mrb[9].mxu1 }
 0x932   : > { %v1068_v22 = vpop.f32.mrb[10].mxu1 }
 0x933   : > { %v1869_v23 = vpop.f32.mrb[11].mxu1 }
 0x938   : > { %v1112_v24 = vpop.f32.mrb[12].mxu1 }
 0x939   : > { %v2160_v25 = vadd.f32 %v1112_v24, %v1065_v49  ;;  %v1874_v26 = vpop.f32.mrb[13].mxu1 }
 0x93a   : > { %v1115_v27 = vpop.f32.mrb[14].mxu1 }
 0x93b   : > { %v2162_v28 = vadd.f32 %v1115_v27, %v1068_v22  ;;  %v1875_v29 = vpop.f32.mrb[15].mxu1 }
 0x93c   : > { %v385_v29 = vld [vmem:[%s2232_s4 + $0x58] sm:$0xff] }
 0x940   : > { %v1880_v30 = vpop.f32.mrb[16].mxu1 }
 0x941   : > { %v1223_v31 = vpop.f32.mrb[17].mxu1  ;;  %v1233_v33 = vmul.f32 0.35355338, %v1880_v30 }
 0x942   : > { %v1232_v32 = vmul.f32 0.35355338, %v1223_v31 }
 0x943   : > { %v1237_v35 = vsel %vm691_vm2, %v1233_v33, -inf }
 0x944   : > { %v1234_v34 = vsel %vm691_vm2, %v1232_v32, -inf }
 0x945   : > { %1235 = vmax.xlane.f32.xlu1 %v1234_v34 }
 0x949   : > { %1238 = vmax.xlane.f32.xlu1 %v1237_v35 }
 0x95a   : > { %403 = vperm.xlu1 %1919, %v377_v36  }
 0x9d2   : > { %v1236_v37 = vpop.xlane.xlu1 %1235 }
 0x9d3   : > { %v1240_v38 = vsub.f32 %v1232_v32, %v1236_v37  ;;  %v1781_v32 = vld [vmem:[%s2233_s5 + $0xc] sm:$0xf] }
 0x9d5   : > { %v1242_v39 = vmul.f32 1.442695, %v1240_v38 }
 0x9d6   : > { %v1239_v40 = vpop.xlane.xlu1 %1238 }
 0x9d7   : > { %1947 = vpow2.f32 %v1242_v39  ;;  %v1241_v41 = vsub.f32 %v1233_v33, %v1239_v40  ;;  %v1620_v33 = vsel %vm1027_vm3, %v1781_v32, 0 }
 0x9d9   : > { %v1244_v42 = vmul.f32 1.442695, %v1241_v41 }
 0x9da   : > { %v404_v52 = vpop.permute.xlu1 %403 }
 0x9db   : > { %1949 = vpow2.f32 %v1244_v42  ;;  %v540_v53 = vadd.f32 %v2072_v47, %v404_v52 }
 0x9e1   : > { %v1948_v44 = vpop.eup %1947 }
 0x9e2   : > { %v1246_v45 = vsel %vm691_vm2, %v1948_v44, 0.0 }
 0x9e3   : > { %1247 = vadd.xlane.f32.xlu1 %v1246_v45 }
 0x9e5   : > { %v1950_v46 = vpop.eup %1949 }
 0x9e6   : > { %v1249_v48 = vsel %vm691_vm2, %v1950_v46, 0.0 }
 0x9e7   : > { %1250 = vadd.xlane.f32.xlu0 %v1249_v48 }
 0x9f4   : > { %438 = vperm.xlu1 %1919, %v384_v50  }
 0x9fd   : > { %423 = vperm.xlu0 %1920, %v381_v51  }
 0xa1d   : > { %1392 = vxpose.xlu1.b32.start.end [1/1] (short) (narrow) %v540_v53, 16 }
 0xa70   : > { %v1248_v54 = vpop.xlane.xlu1 %1247 }
 0xa71   : > { %1951 = vrcp.f32 %v1248_v54 }
 0xa74   : > { %v1251_v56 = vpop.xlane.xlu0 %1250  ;;  %v439_v57 = vpop.permute.xlu1 %438 }
 0xa75   : > { %1953 = vrcp.f32 %v1251_v56  ;;  %v569_v58 = vadd.f32 %v2093_v4, %v439_v57 }
 0xa77   : > { %1881 = vmatprep.subr.msk.mxu1 %vm691_vm2, %v569_v58 }
 0xa78   : > { %1882 = vmatpush3.xpose.msk.msra.mxu1 %vm691_vm2, %v569_v58 }
 0xa7b   : > { %v1952_v59 = vpop.eup %1951 }
 0xa7c   : > { %v424_v61 = vpop.permute.xlu0 %423  ;;  %v1254_v62 = vmul.f32 %v1952_v59, %v1948_v44 }
 0xa7d   : > { %v556_v63 = vadd.f32 %v2082_v55, %v424_v61  ;;  %v1347_v55 = vsel %vm1027_vm3, %v1774_v5, 0 }
 0xa7e   : > { %1883 = vmatprep.mubr.msk.f32.mxu1 %vm691_vm2, %v1254_v62  ;;  %1887 = vmatpush3.bf16.msra.mxu0 %v1347_v55 }
 0xa7f   : > { %v1954_v47 = vpop.eup %1953  ;;  %1892 = vmatprep.subr.mxu1 %v556_v63  ;;  %1902 = vmatprep.subr.bf16.mxu0 %v1972_v60 }
 0xa80   : > { %v1255_v2 = vmul.f32 %v1954_v47, %v1950_v46  ;;  %v1783_v46 = vld [vmem:[%s2234_s6] ss:$0 sm:$0xff] }
 0xa82   : > { %1884 = vmatmul.mubr.msk.f32.vlgmr.msra.gmra.mrb[18].mxu1 %vm691_vm2, %v1255_v2 }
 0xa83   : > { %1893 = vmatpush3.msra.mxu1 %v556_v63 }
 0xa9d   : > { %v1408_v3 = vpop.trf.xlu1 }
 0xa9e   : > { %1894 = vmatprep.mubr.msk.f32.mxu1 %vm607_vm1, %v1408_v3 }
 0xaa1   : > { %v1409_v4 = vpop.trf.xlu1 }
 0xaa2   : > { %1895 = vmatmul.mubr.msk.f32.vlgmr.msra.gmra.mrb[20].mxu1 %vm607_vm1, %v1409_v4 }
 0xb55   : > { %v1885_v6 = vpop.f32.mrb[18].mxu1 }
 0xb56   : > { %v1331_v7 = vpop.f32.mrb[19].mxu1 }
 0xb57   : > { %v1340_v8 = vpack.c.bf16 %v1885_v6, %v1331_v7 }
 0xb59   : > { %1889 = vmatmul.mubr.msk.bf16.vlgmr.msra.gmra.mrb[12].mxu0 %vm607_vm1, %v1340_v8 }
 0xb5a   : > { %1904 = vmatprep.mubr.msk.bf16.mxu0 %vm1973_vm4, %v1972_v60  ;;  %1903 = vmatpush3.bf16.msra.mxu0 %v1620_v33 }
 0xb75   : > { %v1896_v9 = vpop.f32.mrb[20].mxu1 }
 0xb76   : > { %v1506_v10 = vmul.f32 0.35355338, %v1896_v9  ;;  %v1496_v11 = vpop.f32.mrb[21].mxu1 }
 0xb77   : > { %v1505_v43 = vmul.f32 0.35355338, %v1496_v11 }
 0xb78   : > { %v1510_v12 = vsel %vm691_vm2, %v1506_v10, -inf }
 0xb79   : > { %1511 = vmax.xlane.f32.xlu1 %v1510_v12  ;;  %v1507_v13 = vsel %vm691_vm2, %v1505_v43, -inf }
 0xb7a   : > { %1508 = vmax.xlane.f32.xlu0 %v1507_v13 }
 0xc06   : > { %v1512_v14 = vpop.xlane.xlu1 %1511 }
 0xc07   : > { %v1514_v15 = vsub.f32 %v1506_v10, %v1512_v14  ;;  %v1509_v16 = vpop.xlane.xlu0 %1508 }
 0xc08   : > { %v1513_v17 = vsub.f32 %v1505_v43, %v1509_v16 }
 0xc09   : > { %v1517_v18 = vmul.f32 1.442695, %v1514_v15 }
 0xc0a   : > { %v1515_v19 = vmul.f32 1.442695, %v1513_v17 }
 0xc0b   : > { %1955 = vpow2.f32 %v1517_v18 }
 0xc0c   : > { %1957 = vpow2.f32 %v1515_v19 }
 0xc15   : > { %v1956_v49 = vpop.eup %1955 }
 0xc16   : > { %v1522_v60 = vsel %vm691_vm2, %v1956_v49, 0.0  ;;  %v1958_v21 = vpop.eup %1957 }
 0xc17   : > { %1523 = vadd.xlane.f32.xlu0 %v1522_v60  ;;  %v1519_v22 = vsel %vm691_vm2, %v1958_v21, 0.0 }
 0xc1b   : > { %1520 = vadd.xlane.f32.xlu0 %v1519_v22 }
 0xc2c   : > { %v1383_v23 = vpop.f32.mrb[12].mxu0 }
 0xc2d   : > { %v1390_v24 = vadd.f32 %v1383_v23, %v2160_v25  ;;  %v1890_v26 = vpop.f32.mrb[13].mxu0 }
 0xc2e   : > { %v1386_v27 = vpop.f32.mrb[14].mxu0 }
 0xc2f   : > { %v1391_v30 = vadd.f32 %v1386_v27, %v2162_v28  ;;  %v1891_v31 = vpop.f32.mrb[15].mxu0 }
 0xc31   : > { %443 = vperm.xlu0 %1920, %v385_v29  }
 0xca4   : > { %v1524_v34 = vpop.xlane.xlu0 %1523 }
 0xca5   : > { %1959 = vrcp.f32 %v1524_v34 }
 0xca8   : > { %v1521_v25 = vpop.xlane.xlu0 %1520 }
 0xca9   : > { %1961 = vrcp.f32 %v1521_v25 }
 0xcaf   : > { %v1960_v37 = vpop.eup %1959 }
 0xcb0   : > { %v444_v35 = vpop.permute.xlu0 %443  ;;  %v1528_v39 = vmul.f32 %v1960_v37, %v1956_v49 }
 0xcb1   : > { %v572_v36 = vadd.f32 %v2105_v20, %v444_v35 }
 0xcb3   : > { %v1962_v38 = vpop.eup %1961  ;;  %1897 = vmatprep.subr.msk.mxu1 %vm691_vm2, %v572_v36 }
 0xcb4   : > { %1898 = vmatpush3.xpose.msk.msra.mxu1 %vm691_vm2, %v572_v36  ;;  %v1527_v28 = vmul.f32 %v1962_v38, %v1958_v21 }
 0xcb6   : > { %1899 = vmatprep.mubr.msk.f32.mxu1 %vm691_vm2, %v1527_v28 }
 0xcb7   : > { %1900 = vmatmul.mubr.msk.f32.vlgmr.msra.gmra.mrb[22].mxu1 %vm691_vm2, %v1528_v39 }
 0xd8a   : > { %v1901_v40 = vpop.f32.mrb[22].mxu1 }
 0xd8b   : > { %v1604_v41 = vpop.f32.mrb[23].mxu1 }
 0xd8c   : > { %v1613_v42 = vpack.c.bf16 %v1901_v40, %v1604_v41 }
 0xd8e   : > { %1905 = vmatmul.mubr.msk.bf16.vlgmr.msra.gmra.mrb[16].mxu0 %vm607_vm1, %v1613_v42 }
 0xe61   : > { %v1656_v44 = vpop.f32.mrb[16].mxu0 }
 0xe62   : > { %v1663_v20 = vadd.f32 %v1656_v44, %v1390_v24  ;;  %v1906_v45 = vpop.f32.mrb[17].mxu0 }
 0xe63   : > { %v1659_v48 = vpop.f32.mrb[18].mxu0 }
 0xe64   : > { %v1665_v50 = vadd.f32 %v1663_v20, %v2030_v0  ;;  %v1664_v51 = vadd.f32 %v1659_v48, %v1391_v30  ;;  %v1907_v52 = vpop.f32.mrb[19].mxu0 }
 0xe66   : > { %v1674_v53 = vadd.f32 %v1783_v46, %v1665_v50  ;;  %v1666_v54 = vadd.f32 %v1664_v51, %v2032_v1 }
 0xe68   : > { %1676 = vst.msk [vmem:[%s278_s19] sm:$0xff] %vm284_vm0, %v1674_v53  ;;  %v1675_v56 = vadd.f32 %v1783_v46, %v1666_v54 }
 0xe6a   : > { %1677 = vst.msk [vmem:[%s278_s19 + $0x8] sm:$0xff] %vm284_vm0, %v1675_v56 }
 0xe6b PF: > { %s17_s24 = sadd.s32 1, %s1969_s24  }
 0xe6c   : > { %p14_p4 = scmp.ge.s32.totalorder %s17_s24, 4  }
 0xe6e   :  { %16 = sbr.rel (!%p14_p4) target bundleno = 1 (0x1), region = 81 }

// kernel: dual_nar_decoder_forward.33
= control target key start
LH: loop header
LB: loop body
LE: loop exit
PB: predicated region body
PF: predicated region fallthrough
CT: control target
= control target key end

     0   :  { %s2220_s13 = smov 0   ;;  %s2435_s0 = inlined_call_operand.vmem [shape: f32[2,16,32], index: 0, kind: input, shape index: {}]   ;;  %s2436_s1 = inlined_call_operand.vmem [shape: f32[2,16,32], index: 1, kind: input, shape index: {}]   ;;  %s2437_s2 = inlined_call_operand.vmem [shape: f32[1,32], index: 2, kind: input, shape index: {}]   ;;  %s2438_s3 = inlined_call_operand.vmem [shape: f32[1,32], index: 3, kind: input, shape index: {}]   ;;  %s2439_s4 = inlined_call_operand.vmem [shape: bf16[32,32], index: 4, kind: input, shape index: {}]   ;;  %s2440_s5 = inlined_call_operand.vmem [shape: f32[32,1], index: 5, kind: input, shape index: {}]   ;;  %s2441_s6 = inlined_call_operand.vmem [shape: bf16[64,32], index: 6, kind: input, shape index: {}]   ;;  %s2442_s7 = inlined_call_operand.vmem [shape: f32[64,1], index: 7, kind: input, shape index: {}]   ;;  %s2443_s8 = inlined_call_operand.vmem [shape: bf16[4,8,32], index: 8, kind: input, shape index: {}]   ;;  %s2444_s9 = inlined_call_operand.vmem [shape: f32[1,32], index: 9, kind: input, shape index: {}]   ;;  %s2445_s10 = inlined_call_operand.vmem [shape: f32[2,16,32], index: 10, kind: output, shape index: {}]  }
   0x1 LB: > { %s1915_s14 = sadd.s32 4294967295, %s2160_s13   ;;  %p1919_p0 = scmp.ge.s32.totalorder %s2160_s13, 1  ;;  %s2160_s13 = sphi %s2220_s13, %s20_s13  }
   0x2   : > { %p322_p1 = scmp.lt.s32.totalorder %s2160_s13, 3 }
   0x4   : > { %p323_p2 = pnand %p1919_p0, %p322_p1 }
   0x5   : > { %p365_p3 = scmp.lt.s32.totalorder (!%p323_p2), %s1915_s14, 1  ;;  %vm387_vm0 = vcmask (!%p323_p2), 261120   ;;  %v1926_v23 = vld [vmem:[%s2437_s2] ss:$0 sm:$0xff] (!%p323_p2)  ;;  %v2162_v35 = vmov (!%p323_p2), 0   ;;  %v2115_v42 = vld [vmem:[%s2441_s6 + $0x8] sm:$0xff] (!%p323_p2)  }
   0x6   : > { %326 = sbr.rel (%p323_p2) target bundleno = 3680 (0xe60), region = 60  ;;  %v1927_v25 = vld [vmem:[%s2438_s3] ss:$0 sm:$0xff] (!%p323_p2)  ;;  %v2113_v50 = vld [vmem:[%s2439_s4 + $0x8] sm:$0xff] (!%p323_p2)   ;;  %v2116_v51 = vld [vmem:[%s2441_s6 + $0x10] sm:$0xff] (!%p323_p2)   ;;  %vm777_vm1 = vcmask (!%p323_p2), 64512  }
   0x7   : > { %v2112_v32 = vld [vmem:[%s2439_s4] sm:$0xff] (!%p323_p2)   ;;  %v2117_v52 = vld [vmem:[%s2441_s6 + $0x18] sm:$0xff] (!%p323_p2)   ;;  %vm861_vm2 = vcmask (!%p323_p2), 130048   ;;  %vm1197_vm3 = vcmask (!%p323_p2), 1043456   ;;  %vm2164_vm4 = vmmov (!%p323_p2), 0  }
   0x8   : > { %2019 = vmatprep.mubr.msk.bf16.mxu0 (!%p323_p2), %vm387_vm0, %v2112_v32  ;;  %v2114_v33 = vld [vmem:[%s2441_s6] sm:$0xff] (!%p323_p2)  }
   0x9   : > { %v600_v36 = vld [vmem:[%s2442_s7] sm:$0xff] (!%p323_p2)  ;;  %2027 = vmatprep.mubr.msk.bf16.mxu1 (!%p323_p2), %vm387_vm0, %v2114_v33 }
   0xa   : > { %v469_v43 = vld [vmem:[%s2440_s5] sm:$0xff] (!%p323_p2) }
   0xd   : > { %s2447_s14 = smov (!%p365_p3, %s1915_s14), 1 }
   0xe   : > { %s2228_s15 = sshll.u32 %s2447_s14, 4 }
   0xf   : > { %s369_s18 = scalar_lea.vmem %s2435_s0, %s2228_s15  ;;  %s374_s21 = scalar_lea.vmem %s2436_s1, %s2228_s15 }
  0x10   : > { %v2234_v0 = vld [vmem:[%s369_s18] sm:$0xff]  ;;  %v2236_v1 = vld [vmem:[%s369_s18 + $0x8] sm:$0xff]  ;;  %s379_s20 = scalar_lea.vmem %s2445_s10, %s2228_s15 }
  0x11   : > { %v388_v2 = vsel %vm387_vm0, %v2234_v0, 0.0  ;;  %v391_v3 = vsel %vm387_vm0, %v2236_v1, 0.0  ;;  %v383_v14 = vld [vmem:[%s374_s21] sm:$0xff]  ;;  %v384_v15 = vld [vmem:[%s374_s21 + $0x8] sm:$0xff] }
  0x12   : > { %389 = vadd.xlane.f32.xlu0 %v388_v2 }
  0x16   : > { %392 = vadd.xlane.f32.xlu0 %v391_v3 }
  0x9f   : > { %v390_v4 = vpop.xlane.xlu0 %389 }
  0xa0   : > { %v395_v5 = vmul.f32 0.03125, %v390_v4 }
  0xa2   : > { %v397_v6 = vsub.f32 %v2234_v0, %v395_v5 }
  0xa3   : > { %v393_v7 = vpop.xlane.xlu0 %392 }
  0xa4   : > { %v396_v8 = vmul.f32 0.03125, %v393_v7  ;;  %v399_v9 = vmul.f32 %v397_v6, %v397_v6 }
  0xa6   : > { %v398_v10 = vsub.f32 %v2236_v1, %v396_v8  ;;  %v401_v11 = vsel %vm387_vm0, %v399_v9, 0.0 }
  0xa7   : > { %402 = vadd.xlane.f32.xlu1 %v401_v11 }
  0xa8   : > { %v400_v12 = vmul.f32 %v398_v10, %v398_v10 }
  0xaa   : > { %v404_v13 = vsel %vm387_vm0, %v400_v12, 0.0 }
  0xab   : > { %405 = vadd.xlane.f32.xlu1 %v404_v13 }
  0xde   : > { %566 = vxpose.xlu1.b32.start [1/2] (short) (narrow) %v383_v14, 32 }
  0xe2   : > { %567 = vxpose.xlu1.b32.end [2/2] (short) (narrow) %v384_v15, 32  ;;  %v470_v15 = vld [vmem:[%s2440_s5 + $0x8] sm:$0xff] }
 0x100   : > { %2111 = vset.pattern.permute.xlu1 %v2162_v35 }
 0x108   : > { %610 = vperm.xlu1 %2111, %v600_v36  }
 0x134   : > { %v403_v16 = vpop.xlane.xlu1 %402 }
 0x135   : > { %v407_v17 = vmul.f32 0.03125, %v403_v16 }
 0x137   : > { %v409_v18 = vadd.f32 1e-05, %v407_v17 }
 0x138   : > { %v406_v19 = vpop.xlane.xlu1 %405 }
 0x139   : > { %2118 = vrsqrt.f32 %v409_v18  ;;  %v408_v20 = vmul.f32 0.03125, %v406_v19 }
 0x13b   : > { %v410_v21 = vadd.f32 1e-05, %v408_v20 }
 0x13d   : > { %2120 = vrsqrt.f32 %v410_v21 }
 0x143   : > { %v2119_v22 = vpop.eup %2118 }
 0x144   : > { %v413_v24 = vmul.f32 %v2119_v22, %v397_v6 }
 0x146   : > { %v421_v26 = vmul.f32 %v1926_v23, %v413_v24 }
 0x147   : > { %v2121_v27 = vpop.eup %2120 }
 0x148   : > { %v429_v28 = vadd.f32 %v1927_v25, %v421_v26  ;;  %v414_v29 = vmul.f32 %v2121_v27, %v398_v10  ;;  %v604_v26 = vld [vmem:[%s2442_s7 + $0x20] sm:$0xff]  ;;  %v601_v27 = vld [vmem:[%s2442_s7 + $0x8] sm:$0xff] }
 0x14a   : > { %435 = vxpose.xlu0.b32.start [1/2] (short) (narrow) %v429_v28, 32  ;;  %v422_v30 = vmul.f32 %v1926_v23, %v414_v29 }
 0x14c   : > { %v430_v31 = vadd.f32 %v1927_v25, %v422_v30 }
 0x14e   : > { %436 = vxpose.xlu0.b32.end [2/2] (short) (narrow) %v430_v31, 32 }
 0x15e   : > { %v582_v34 = vpop.trf.xlu1 }
 0x162   : > { %v583_v37 = vpop.trf.xlu1 }
 0x163   : > { %v598_v38 = vpack.c.bf16 %v583_v37, %v582_v34 }
 0x165   : > { %2023 = vmatprep.subr.bf16.mxu1 %v598_v38 }
 0x166   : > { %v584_v39 = vpop.trf.xlu1  ;;  %2024 = vmatpush3.bf16.msra.mxu1 %v598_v38 }
 0x16a   : > { %v585_v40 = vpop.trf.xlu1 }
 0x16b   : > { %v599_v41 = vpack.c.bf16 %v585_v40, %v584_v39 }
 0x16d   : > { %2025 = vmatprep.subr.bf16.mxu1 %v599_v41 }
 0x16e   : > { %2026 = vmatpush3.bf16.msra.mxu1 %v599_v41 }
 0x171   : > { %2028 = vmatmul.mubr.msk.bf16.vlgmr.msra.gmra.mrb[0].mxu1 %vm387_vm0, %v2115_v42 }
 0x172   : > { %2031 = vmatprep.mubr.msk.bf16.mxu1 %vm387_vm0, %v2116_v51 }
 0x177   : > { %2110 = vset.pattern.permute.xlu0 %v2162_v35 }
 0x179   : > { %2032 = vmatmul.mubr.msk.bf16.gmra.mrb[4].mxu1 %vm387_vm0, %v2117_v52 }
 0x17f   : > { %475 = vperm.xlu0 %2110, %v469_v43  }
 0x187   : > { %v611_v53 = vpop.permute.xlu1 %610 }
 0x1ca   : > { %v451_v44 = vpop.trf.xlu0 }
 0x1ce   : > { %v452_v45 = vpop.trf.xlu0 }
 0x1cf   : > { %v467_v46 = vpack.c.bf16 %v452_v45, %v451_v44 }
 0x1d1   : > { %2015 = vmatprep.subr.bf16.mxu0 %v467_v46 }
 0x1d2   : > { %2016 = vmatpush3.bf16.msra.mxu0 %v467_v46  ;;  %v453_v47 = vpop.trf.xlu0 }
 0x1d6   : > { %v454_v48 = vpop.trf.xlu0 }
 0x1d7   : > { %v468_v49 = vpack.c.bf16 %v454_v48, %v453_v47 }
 0x1d9   : > { %2017 = vmatprep.subr.bf16.mxu0 %v468_v49 }
 0x1da   : > { %2018 = vmatpush3.bf16.msra.mxu0 %v468_v49 }
 0x1dd   : > { %2020 = vmatmul.mubr.msk.bf16.vlgmr.msra.gmra.mrb[0].mxu0 %vm387_vm0, %v2113_v50 }
 0x1fe   : > { %v476_v59 = vpop.permute.xlu0 %475 }
 0x244   : > { %v2286_v54 = vpop.f32.mrb[0].mxu1 }
 0x245   : > { %v714_v55 = vpop.f32.mrb[1].mxu1 }
 0x246   : > { %v715_v56 = vadd.f32 %v714_v55, %v611_v53  ;;  %v2288_v57 = vpop.f32.mrb[2].mxu1 }
 0x247   : > { %v717_v58 = vpop.f32.mrb[3].mxu1 }
 0x248   : > { %2035 = vmatprep.subr.mxu1 %v715_v56 }
 0x249   : > { %2036 = vmatpush3.msra.mxu1 %v715_v56 }
 0x24c   : > { %v2294_v3 = vpop.f32.mrb[4].mxu1 }
 0x24d   : > { %v730_v4 = vpop.f32.mrb[5].mxu1 }
 0x24e   : > { %v2296_v5 = vpop.f32.mrb[6].mxu1 }
 0x24f   : > { %v2298_v6 = vpop.f32.mrb[7].mxu1 }
 0x2b0   : > { %v2290_v60 = vpop.f32.mrb[0].mxu0 }
 0x2b1   : > { %v543_v61 = vpop.f32.mrb[1].mxu0 }
 0x2b2   : > { %v544_v62 = vadd.f32 %v543_v61, %v476_v59  ;;  %v2292_v63 = vpop.f32.mrb[2].mxu0 }
 0x2b3   : > { %v546_v2 = vpop.f32.mrb[3].mxu0 }
 0x2b4   : > { %745 = vxpose.xlu1.b32.start.end [1/1] (short) (narrow) %v544_v62, 16 }
 0x334   : > { %v761_v7 = vpop.trf.xlu1 }
 0x335   : > { %2037 = vmatprep.mubr.msk.f32.mxu1 %vm777_vm1, %v761_v7  ;;  %v471_v7 = vld [vmem:[%s2440_s5 + $0x10] sm:$0xff] }
 0x338   : > { %v762_v8 = vpop.trf.xlu1 }
 0x339   : > { %2038 = vmatmul.mubr.msk.f32.vlgmr.msra.gmra.mrb[8].mxu1 %vm777_vm1, %v762_v8  ;;  %v602_v8 = vld [vmem:[%s2442_s7 + $0x10] sm:$0xff] }
 0x40c   : > { %v2039_v9 = vpop.f32.mrb[8].mxu1 }
 0x40d   : > { %v850_v10 = vpop.f32.mrb[9].mxu1  ;;  %v860_v12 = vmul.f32 0.35355338, %v2039_v9  ;;  %v2163_v9 = vmov 0.0  }
 0x40e   : > { %v859_v11 = vmul.f32 0.35355338, %v850_v10  ;;  %v1950_v10 = vld [vmem:[%s2443_s8 + $0x4] sm:$0xf] }
 0x40f   : > { %v865_v14 = vsel %vm861_vm2, %v860_v12, -inf }
 0x410   : > { %v862_v13 = vsel %vm861_vm2, %v859_v11, -inf }
 0x411   : > { %863 = vmax.xlane.f32.xlu0 %v862_v13 }
 0x415   : > { %866 = vmax.xlane.f32.xlu0 %v865_v14 }
 0x42b   : > { %480 = vperm.xlu0 %2110, %v470_v15  }
 0x49e   : > { %v864_v16 = vpop.xlane.xlu0 %863 }
 0x49f   : > { %v868_v17 = vsub.f32 %v859_v11, %v864_v16  ;;  %v1199_v11 = vsel %vm1197_vm3, %v1950_v10, 0 }
 0x4a1   : > { %v870_v18 = vmul.f32 1.442695, %v868_v17  ;;  %v969_v17 = vld [vmem:[%s2443_s8] sm:$0xf] }
 0x4a2   : > { %v867_v19 = vpop.xlane.xlu0 %866 }
 0x4a3   : > { %2122 = vpow2.f32 %v870_v18  ;;  %v869_v20 = vsub.f32 %v860_v12, %v867_v19 }
 0x4a5   : > { %v872_v21 = vmul.f32 1.442695, %v869_v20 }
 0x4a7   : > { %2124 = vpow2.f32 %v872_v21 }
 0x4aa   : > { %v481_v28 = vpop.permute.xlu0 %480 }
 0x4ab   : > { %v547_v29 = vadd.f32 %v546_v2, %v481_v28 }
 0x4ad   : > { %v2123_v22 = vpop.eup %2122 }
 0x4ae   : > { %v874_v23 = vsel %vm861_vm2, %v2123_v22, 0.0 }
 0x4af   : > { %875 = vadd.xlane.f32.xlu1 %v874_v23  ;;  %v1246_v23 = vsel %vm1197_vm3, %v969_v17, 0 }
 0x4b1   : > { %v2125_v24 = vpop.eup %2124 }
 0x4b2   : > { %v877_v25 = vsel %vm861_vm2, %v2125_v24, 0.0 }
 0x4b3   : > { %878 = vadd.xlane.f32.xlu0 %v877_v25 }
 0x4c0   : > { %630 = vperm.xlu1 %2111, %v604_v26  }
 0x4c9   : > { %615 = vperm.xlu0 %2110, %v601_v27  }
 0x4e9   : > { %970 = vxpose.xlu1.b32.start.end [1/1] (short) (narrow) %v547_v29, 16 }
 0x53c   : > { %v876_v30 = vpop.xlane.xlu1 %875 }
 0x53d   : > { %2126 = vrcp.f32 %v876_v30 }
 0x540   : > { %v631_v31 = vpop.permute.xlu1 %630  ;;  %v879_v32 = vpop.xlane.xlu0 %878 }
 0x541   : > { %v731_v33 = vadd.f32 %v730_v4, %v631_v31  ;;  %2128 = vrcp.f32 %v879_v32  ;;  %v605_v4 = vld [vmem:[%s2442_s7 + $0x28] sm:$0xff] }
 0x543   : > { %2040 = vmatprep.subr.msk.mxu0 %vm861_vm2, %v731_v33 }
 0x544   : > { %2041 = vmatpush3.xpose.msk.msra.mxu0 %vm861_vm2, %v731_v33 }
 0x547   : > { %v2127_v34 = vpop.eup %2126 }
 0x548   : > { %v616_v35 = vpop.permute.xlu0 %615  ;;  %v882_v36 = vmul.f32 %v2127_v34, %v2123_v22 }
 0x549   : > { %v718_v37 = vadd.f32 %v717_v58, %v616_v35 }
 0x54a   : > { %2042 = vmatprep.mubr.msk.f32.mxu0 %vm861_vm2, %v882_v36 }
 0x54b   : > { %v2129_v38 = vpop.eup %2128  ;;  %2045 = vmatprep.subr.mxu0 %v718_v37 }
 0x54c   : > { %v883_v39 = vmul.f32 %v2129_v38, %v2125_v24 }
 0x54e   : > { %2043 = vmatmul.mubr.msk.f32.vlgmr.msra.gmra.mrb[4].mxu0 %vm861_vm2, %v883_v39 }
 0x54f   : > { %2046 = vmatpush3.msra.mxu0 %v718_v37 }
 0x550   : > { %2055 = vmatprep.subr.bf16.mxu0 %v2163_v9 }
 0x569   : > { %v986_v40 = vpop.trf.xlu1 }
 0x56a   : > { %2047 = vmatprep.mubr.msk.f32.mxu0 %vm777_vm1, %v986_v40 }
 0x56d   : > { %v987_v41 = vpop.trf.xlu1 }
 0x56e   : > { %2048 = vmatmul.mubr.msk.f32.vlgmr.msra.gmra.mrb[6].mxu0 %vm777_vm1, %v987_v41 }
 0x56f   : > { %2057 = vmatprep.mubr.msk.bf16.mxu0 %vm2164_vm4, %v2163_v9  ;;  %2056 = vmatpush3.bf16.msra.mxu0 %v1199_v11 }
 0x621   : > { %v2321_v42 = vpop.f32.mrb[4].mxu0 }
 0x622   : > { %v2323_v43 = vpop.f32.mrb[5].mxu0 }
 0x623   : > { %v968_v44 = vpack.c.bf16 %v2321_v42, %v2323_v43 }
 0x641   : > { %v2049_v45 = vpop.f32.mrb[6].mxu0 }
 0x642   : > { %v1084_v46 = vmul.f32 0.35355338, %v2049_v45  ;;  %v1074_v47 = vpop.f32.mrb[7].mxu0 }
 0x643   : > { %v1083_v48 = vmul.f32 0.35355338, %v1074_v47 }
 0x644   : > { %v1088_v49 = vsel %vm861_vm2, %v1084_v46, -inf }
 0x645   : > { %1089 = vmax.xlane.f32.xlu1 %v1088_v49  ;;  %v1085_v50 = vsel %vm861_vm2, %v1083_v48, -inf }
 0x646   : > { %1086 = vmax.xlane.f32.xlu0 %v1085_v50 }
 0x6d2   : > { %v1090_v51 = vpop.xlane.xlu1 %1089 }
 0x6d3   : > { %v1092_v52 = vsub.f32 %v1084_v46, %v1090_v51  ;;  %v1087_v53 = vpop.xlane.xlu0 %1086 }
 0x6d4   : > { %v1091_v55 = vsub.f32 %v1083_v48, %v1087_v53 }
 0x6d5   : > { %v1095_v56 = vmul.f32 1.442695, %v1092_v52 }
 0x6d6   : > { %v1093_v58 = vmul.f32 1.442695, %v1091_v55 }
 0x6d7   : > { %2130 = vpow2.f32 %v1095_v56  ;;  %v606_v56 = vld [vmem:[%s2442_s7 + $0x30] sm:$0xff] }
 0x6d8   : > { %2132 = vpow2.f32 %v1093_v58  ;;  %v603_v58 = vld [vmem:[%s2442_s7 + $0x18] sm:$0xff] }
 0x6e1   : > { %v2131_v59 = vpop.eup %2130 }
 0x6e2   : > { %v1100_v61 = vsel %vm861_vm2, %v2131_v59, 0.0  ;;  %v2133_v62 = vpop.eup %2132 }
 0x6e3   : > { %1101 = vadd.xlane.f32.xlu0 %v1100_v61  ;;  %v1097_v2 = vsel %vm861_vm2, %v2133_v62, 0.0 }
 0x6e7   : > { %1098 = vadd.xlane.f32.xlu0 %v1097_v2 }
 0x6fd   : > { %635 = vperm.xlu0 %2110, %v605_v4  }
 0x701   : > { %485 = vperm.xlu0 %2110, %v471_v7  }
 0x705   : > { %620 = vperm.xlu0 %2110, %v602_v8  }
 0x770   : > { %v1102_v12 = vpop.xlane.xlu0 %1101 }
 0x771   : > { %2134 = vrcp.f32 %v1102_v12 }
 0x774   : > { %v1099_v13 = vpop.xlane.xlu0 %1098 }
 0x775   : > { %2136 = vrcp.f32 %v1099_v13 }
 0x77b   : > { %v2135_v16 = vpop.eup %2134 }
 0x77c   : > { %v636_v14 = vpop.permute.xlu0 %635  ;;  %v1106_v21 = vmul.f32 %v2135_v16, %v2131_v59 }
 0x77d   : > { %v734_v15 = vadd.f32 %v2298_v6, %v636_v14 }
 0x77f   : > { %v2137_v18 = vpop.eup %2136  ;;  %2050 = vmatprep.subr.msk.mxu1 %vm861_vm2, %v734_v15 }
 0x780   : > { %2051 = vmatpush3.xpose.msk.msra.mxu1 %vm861_vm2, %v734_v15  ;;  %v486_v19 = vpop.permute.xlu0 %485  ;;  %v1105_v20 = vmul.f32 %v2137_v18, %v2133_v62  ;;  %v1958_v15 = vld [vmem:[%s2443_s8 + $0x8] sm:$0xf] }
 0x781   : > { %v552_v22 = vadd.f32 %v2290_v60, %v486_v19  ;;  %2061 = vmatprep.subr.bf16.mxu1 %v2163_v9 }
 0x782   : > { %2052 = vmatprep.mubr.msk.f32.mxu1 %vm861_vm2, %v1105_v20 }
 0x783   : > { %2053 = vmatmul.mubr.msk.f32.vlgmr.msra.gmra.mrb[10].mxu1 %vm861_vm2, %v1106_v21  ;;  %1289 = vxpose.xlu0.b32.start.end [1/1] (short) (narrow) %v552_v22, 16 }
 0x784   : > { %2062 = vmatpush3.bf16.msra.mxu1 %v1246_v23  ;;  %v621_v6 = vpop.permute.xlu0 %620  ;;  %2063 = vmatprep.mubr.msk.bf16.mxu1 %vm2164_vm4, %v2163_v9 }
 0x785   : > { %v723_v24 = vadd.f32 %v2286_v54, %v621_v6 }
 0x787   : > { %2064 = vmatmul.mubr.msk.bf16.vlgmr.msra.gmra.mrb[12].mxu1 %vm777_vm1, %v968_v44  ;;  %2067 = vmatprep.subr.mxu0 %v723_v24  ;;  %v472_v44 = vld [vmem:[%s2440_s5 + $0x18] sm:$0xff] }
 0x803   : > { %v1305_v27 = vpop.trf.xlu0 }
 0x807   : > { %v1306_v32 = vpop.trf.xlu0 }
 0x856   : > { %v2054_v60 = vpop.f32.mrb[10].mxu1 }
 0x857   : > { %v1182_v25 = vpop.f32.mrb[11].mxu1 }
 0x858   : > { %v1191_v26 = vpack.c.bf16 %v2054_v60, %v1182_v25 }
 0x85a   : > { %2058 = vmatmul.mubr.msk.bf16.vlgmr.msra.gmra.mrb[8].mxu0 %vm777_vm1, %v1191_v26  ;;  %v1282_v28 = vpop.f32.mrb[12].mxu1 }
 0x85b   : > { %2068 = vmatpush3.msra.mxu0 %v723_v24  ;;  %v2065_v29 = vpop.f32.mrb[13].mxu1  ;;  %2069 = vmatprep.mubr.msk.f32.mxu0 %vm777_vm1, %v1305_v27 }
 0x85c   : > { %v1285_v30 = vpop.f32.mrb[14].mxu1  ;;  %2077 = vmatprep.subr.bf16.mxu0 %v2163_v9 }
 0x85d   : > { %v2066_v31 = vpop.f32.mrb[15].mxu1 }
 0x862   : > { %2070 = vmatmul.mubr.msk.f32.vlgmr.msra.gmra.mrb[12].mxu0 %vm777_vm1, %v1306_v32 }
 0x863   : > { %2079 = vmatprep.mubr.msk.bf16.mxu0 %vm2164_vm4, %v2163_v9 }
 0x92d   : > { %v1235_v54 = vpop.f32.mrb[8].mxu0 }
 0x92e   : > { %v2368_v33 = vadd.f32 %v1282_v28, %v1235_v54  ;;  %v2059_v34 = vpop.f32.mrb[9].mxu0 }
 0x92f   : > { %v1238_v35 = vpop.f32.mrb[10].mxu0 }
 0x930   : > { %v2370_v36 = vadd.f32 %v1285_v30, %v1238_v35  ;;  %v2060_v37 = vpop.f32.mrb[11].mxu0 }
 0x931   : > { %v607_v37 = vld [vmem:[%s2442_s7 + $0x38] sm:$0xff] }
 0x935   : > { %v2071_v38 = vpop.f32.mrb[12].mxu0 }
 0x936   : > { %v1393_v39 = vpop.f32.mrb[13].mxu0  ;;  %v1403_v41 = vmul.f32 0.35355338, %v2071_v38 }
 0x937   : > { %v1402_v40 = vmul.f32 0.35355338, %v1393_v39 }
 0x938   : > { %v1407_v43 = vsel %vm861_vm2, %v1403_v41, -inf }
 0x939   : > { %v1404_v42 = vsel %vm861_vm2, %v1402_v40, -inf }
 0x93a   : > { %1405 = vmax.xlane.f32.xlu1 %v1404_v42 }
 0x93e   : > { %1408 = vmax.xlane.f32.xlu1 %v1407_v43 }
 0x94f   : > { %490 = vperm.xlu1 %2111, %v472_v44  }
 0x9c7   : > { %v1406_v45 = vpop.xlane.xlu1 %1405 }
 0x9c8   : > { %v1410_v46 = vsub.f32 %v1402_v40, %v1406_v45  ;;  %v1965_v40 = vld [vmem:[%s2443_s8 + $0xc] sm:$0xf] }
 0x9ca   : > { %v1412_v47 = vmul.f32 1.442695, %v1410_v46 }
 0x9cb   : > { %v1409_v48 = vpop.xlane.xlu1 %1408 }
 0x9cc   : > { %2138 = vpow2.f32 %v1412_v47  ;;  %v1411_v49 = vsub.f32 %v1403_v41, %v1409_v48  ;;  %v1790_v41 = vsel %vm1197_vm3, %v1965_v40, 0 }
 0x9ce   : > { %v1414_v50 = vmul.f32 1.442695, %v1411_v49 }
 0x9cf   : > { %v491_v59 = vpop.permute.xlu1 %490 }
 0x9d0   : > { %2140 = vpow2.f32 %v1414_v50  ;;  %v555_v61 = vadd.f32 %v2292_v63, %v491_v59 }
 0x9d6   : > { %v2139_v51 = vpop.eup %2138 }
 0x9d7   : > { %v1416_v52 = vsel %vm861_vm2, %v2139_v51, 0.0 }
 0x9d8   : > { %1417 = vadd.xlane.f32.xlu1 %v1416_v52 }
 0x9da   : > { %v2141_v53 = vpop.eup %2140 }
 0x9db   : > { %v1419_v55 = vsel %vm861_vm2, %v2141_v53, 0.0 }
 0x9dc   : > { %1420 = vadd.xlane.f32.xlu0 %v1419_v55 }
 0x9e9   : > { %640 = vperm.xlu1 %2111, %v606_v56  }
 0x9f2   : > { %625 = vperm.xlu0 %2110, %v603_v58  }
 0xa12   : > { %1562 = vxpose.xlu1.b32.start.end [1/1] (short) (narrow) %v555_v61, 16 }
 0xa65   : > { %v1418_v62 = vpop.xlane.xlu1 %1417 }
 0xa66   : > { %2142 = vrcp.f32 %v1418_v62 }
 0xa69   : > { %v1421_v2 = vpop.xlane.xlu0 %1420  ;;  %v641_v4 = vpop.permute.xlu1 %640 }
 0xa6a   : > { %2144 = vrcp.f32 %v1421_v2  ;;  %v739_v7 = vadd.f32 %v2294_v3, %v641_v4 }
 0xa6c   : > { %2072 = vmatprep.subr.msk.mxu1 %vm861_vm2, %v739_v7 }
 0xa6d   : > { %2073 = vmatpush3.xpose.msk.msra.mxu1 %vm861_vm2, %v739_v7 }
 0xa70   : > { %v2143_v8 = vpop.eup %2142 }
 0xa71   : > { %v626_v10 = vpop.permute.xlu0 %625  ;;  %v1424_v11 = vmul.f32 %v2143_v8, %v2139_v51 }
 0xa72   : > { %v726_v12 = vadd.f32 %v2288_v57, %v626_v10  ;;  %v1517_v57 = vsel %vm1197_vm3, %v1958_v15, 0 }
 0xa73   : > { %2074 = vmatprep.mubr.msk.f32.mxu1 %vm861_vm2, %v1424_v11  ;;  %2078 = vmatpush3.bf16.msra.mxu0 %v1517_v57 }
 0xa74   : > { %v2145_v63 = vpop.eup %2144  ;;  %2083 = vmatprep.subr.mxu1 %v726_v12  ;;  %2093 = vmatprep.subr.bf16.mxu0 %v2163_v9 }
 0xa75   : > { %v1425_v13 = vmul.f32 %v2145_v63, %v2141_v53  ;;  %v1967_v53 = vld [vmem:[%s2444_s9] ss:$0 sm:$0xff] }
 0xa77   : > { %2075 = vmatmul.mubr.msk.f32.vlgmr.msra.gmra.mrb[16].mxu1 %vm861_vm2, %v1425_v13 }
 0xa78   : > { %2084 = vmatpush3.msra.mxu1 %v726_v12 }
 0xa92   : > { %v1578_v14 = vpop.trf.xlu1 }
 0xa93   : > { %2085 = vmatprep.mubr.msk.f32.mxu1 %vm777_vm1, %v1578_v14 }
 0xa96   : > { %v1579_v3 = vpop.trf.xlu1 }
 0xa97   : > { %2086 = vmatmul.mubr.msk.f32.vlgmr.msra.gmra.mrb[18].mxu1 %vm777_vm1, %v1579_v3 }
 0xb4a   : > { %v2076_v16 = vpop.f32.mrb[16].mxu1 }
 0xb4b   : > { %v1501_v17 = vpop.f32.mrb[17].mxu1 }
 0xb4c   : > { %v1510_v18 = vpack.c.bf16 %v2076_v16, %v1501_v17 }
 0xb4e   : > { %2080 = vmatmul.mubr.msk.bf16.vlgmr.msra.gmra.mrb[16].mxu0 %vm777_vm1, %v1510_v18 }
 0xb4f   : > { %2095 = vmatprep.mubr.msk.bf16.mxu0 %vm2164_vm4, %v2163_v9  ;;  %2094 = vmatpush3.bf16.msra.mxu0 %v1790_v41 }
 0xb6a   : > { %v2087_v19 = vpop.f32.mrb[18].mxu1 }
 0xb6b   : > { %v1676_v20 = vmul.f32 0.35355338, %v2087_v19  ;;  %v1666_v21 = vpop.f32.mrb[19].mxu1 }
 0xb6c   : > { %v1675_v22 = vmul.f32 0.35355338, %v1666_v21 }
 0xb6d   : > { %v1680_v23 = vsel %vm861_vm2, %v1676_v20, -inf }
 0xb6e   : > { %1681 = vmax.xlane.f32.xlu1 %v1680_v23  ;;  %v1677_v6 = vsel %vm861_vm2, %v1675_v22, -inf }
 0xb6f   : > { %1678 = vmax.xlane.f32.xlu0 %v1677_v6 }
 0xbfb   : > { %v1682_v24 = vpop.xlane.xlu1 %1681 }
 0xbfc   : > { %v1684_v60 = vsub.f32 %v1676_v20, %v1682_v24  ;;  %v1679_v25 = vpop.xlane.xlu0 %1678 }
 0xbfd   : > { %v1683_v26 = vsub.f32 %v1675_v22, %v1679_v25 }
 0xbfe   : > { %v1687_v27 = vmul.f32 1.442695, %v1684_v60 }
 0xbff   : > { %v1685_v28 = vmul.f32 1.442695, %v1683_v26 }
 0xc00   : > { %2146 = vpow2.f32 %v1687_v27 }
 0xc01   : > { %2148 = vpow2.f32 %v1685_v28 }
 0xc0a   : > { %v2147_v29 = vpop.eup %2146 }
 0xc0b   : > { %v1692_v9 = vsel %vm861_vm2, %v2147_v29, 0.0  ;;  %v2149_v30 = vpop.eup %2148 }
 0xc0c   : > { %1693 = vadd.xlane.f32.xlu0 %v1692_v9  ;;  %v1689_v31 = vsel %vm861_vm2, %v2149_v30, 0.0 }
 0xc10   : > { %1690 = vadd.xlane.f32.xlu0 %v1689_v31 }
 0xc21   : > { %v1553_v32 = vpop.f32.mrb[16].mxu0 }
 0xc22   : > { %v1560_v54 = vadd.f32 %v1553_v32, %v2368_v33  ;;  %v2081_v34 = vpop.f32.mrb[17].mxu0 }
 0xc23   : > { %v1556_v35 = vpop.f32.mrb[18].mxu0 }
 0xc24   : > { %v1561_v38 = vadd.f32 %v1556_v35, %v2370_v36  ;;  %v2082_v39 = vpop.f32.mrb[19].mxu0 }
 0xc26   : > { %645 = vperm.xlu0 %2110, %v607_v37  }
 0xc99   : > { %v1694_v42 = vpop.xlane.xlu0 %1693 }
 0xc9a   : > { %2150 = vrcp.f32 %v1694_v42 }
 0xc9d   : > { %v1691_v33 = vpop.xlane.xlu0 %1690 }
 0xc9e   : > { %2152 = vrcp.f32 %v1691_v33 }
 0xca4   : > { %v2151_v45 = vpop.eup %2150 }
 0xca5   : > { %v646_v43 = vpop.permute.xlu0 %645  ;;  %v1698_v47 = vmul.f32 %v2151_v45, %v2147_v29 }
 0xca6   : > { %v742_v44 = vadd.f32 %v2296_v5, %v646_v43 }
 0xca8   : > { %v2153_v46 = vpop.eup %2152  ;;  %2088 = vmatprep.subr.msk.mxu1 %vm861_vm2, %v742_v44 }
 0xca9   : > { %2089 = vmatpush3.xpose.msk.msra.mxu1 %vm861_vm2, %v742_v44  ;;  %v1697_v36 = vmul.f32 %v2153_v46, %v2149_v30 }
 0xcab   : > { %2090 = vmatprep.mubr.msk.f32.mxu1 %vm861_vm2, %v1697_v36 }
 0xcac   : > { %2091 = vmatmul.mubr.msk.f32.vlgmr.msra.gmra.mrb[20].mxu1 %vm861_vm2, %v1698_v47 }
 0xd7f   : > { %v2092_v48 = vpop.f32.mrb[20].mxu1 }
 0xd80   : > { %v1774_v49 = vpop.f32.mrb[21].mxu1 }
 0xd81   : > { %v1783_v50 = vpack.c.bf16 %v2092_v48, %v1774_v49 }
 0xd83   : > { %2096 = vmatmul.mubr.msk.bf16.vlgmr.msra.gmra.mrb[20].mxu0 %vm777_vm1, %v1783_v50 }
 0xe56   : > { %v1826_v51 = vpop.f32.mrb[20].mxu0 }
 0xe57   : > { %v1833_v5 = vadd.f32 %v1826_v51, %v1560_v54  ;;  %v2097_v52 = vpop.f32.mrb[21].mxu0 }
 0xe58   : > { %v1829_v55 = vpop.f32.mrb[22].mxu0 }
 0xe59   : > { %v1835_v56 = vadd.f32 %v1833_v5, %v2234_v0  ;;  %v1834_v58 = vadd.f32 %v1829_v55, %v1561_v38  ;;  %v2098_v59 = vpop.f32.mrb[23].mxu0 }
 0xe5b   : > { %v1844_v61 = vadd.f32 %v1967_v53, %v1835_v56  ;;  %v1836_v62 = vadd.f32 %v1834_v58, %v2236_v1 }
 0xe5d   : > { %1846 = vst.msk [vmem:[%s379_s20] sm:$0xff] %vm387_vm0, %v1844_v61  ;;  %v1845_v2 = vadd.f32 %v1967_v53, %v1836_v62 }
 0xe5f   : > { %1847 = vst.msk [vmem:[%s379_s20 + $0x8] sm:$0xff] %vm387_vm0, %v1845_v2 }
 0xe60 PF: > { %s20_s13 = sadd.s32 1, %s2160_s13  }
 0xe61   : > { %p17_p4 = scmp.ge.s32.totalorder %s20_s13, 4  }
 0xe63   :  { %19 = sbr.rel (!%p17_p4) target bundleno = 1 (0x1), region = 96 }

// kernel: dual_nar_decoder_forward.39
= control target key start
LH: loop header
LB: loop body
LE: loop exit
PB: predicated region body
PF: predicated region fallthrough
CT: control target
= control target key end

     0   :  { %vm29_vm0 = vcmask 0   ;;  %v207_v0 = vmov 0.0   ;;  %vm208_vm1 = vmmov 0   ;;  %s278_s0 = inlined_call_operand.vmem [shape: f32[2,32], index: 0, kind: input, shape index: {}]   ;;  %s279_s1 = inlined_call_operand.vmem [shape: f32[1,32], index: 1, kind: input, shape index: {}]   ;;  %s280_s2 = inlined_call_operand.vmem [shape: f32[1,32], index: 2, kind: input, shape index: {}]   ;;  %s281_s3 = inlined_call_operand.vmem [shape: bf16[32,32], index: 3, kind: input, shape index: {}]   ;;  %s282_s4 = inlined_call_operand.vmem [shape: f32[1,32], index: 4, kind: input, shape index: {}]   ;;  %s283_s5 = inlined_call_operand.vmem [shape: s32[2,1], index: 5, kind: input, shape index: {}]   ;;  %s284_s6 = inlined_call_operand.hbm [shape: f32[1,1], index: 6, kind: output, shape index: {}]  }
   0x1   :  { %30 = vst.msk [vmem:[#allocation2] sm:$0x1] %vm29_vm0, %v207_v0  ;;  %162 = vmatprep.subr.bf16.mxu0 %v207_v0  ;;  %v177_v1 = vld [vmem:[%s281_s3] sm:$0xff]   ;;  %166 = vmatprep.mubr.msk.bf16.mxu0 %vm208_vm1, %v207_v0  ;;  %v178_v2 = vld [vmem:[%s281_s3 + $0x8] sm:$0xff]  }
   0x2   :  { %163 = vmatpush3.bf16.msra.mxu0 %v177_v1  ;;  %v31_v3 = vld [vmem:[%s278_s0] sm:$0x3] }
   0x3   :  { %11 = vsyncpa [#allocation3], 0  ;;  %164 = vmatprep.subr.bf16.mxu0 %v207_v0  ;;  %v32_v4 = vpack.c.bf16 %v31_v3, %v31_v3  ;;  %vm56_vm2 = vcmask 261120   ;;  %v209_v5 = vmov 0   ;;  %v155_v6 = vld [vmem:[%s282_s4] ss:$0 sm:$0xff]  ;;  %v113_v17 = vlaneseq }
   0x4   :  { %176 = vset.pattern.permute.xlu0 %v209_v5  ;;  %vm100_vm3 = vcmask 254976   ;;  %v115_v13 = vld [vmem:[%s283_s5] sm:$0x3]  ;;  %vm126_vm5 = vcmask 1024   ;;  %s210_s4 = smov [#allocation2]  }
   0x5   :  { %v114_v18 = vand.u32 127, %v113_v17  ;;  %s147_s5 = sshll.u32 %s210_s4, 4  ;;  %s148_s5 = int_to_ptr.vmem [resolvable:$true] %s147_s5 }
   0x6   :  { %165 = vmatpush3.bf16.msra.mxu0 %v178_v2  ;;  %s183_s28 = scalar_lea.vmem %s148_s5, 16  ;;  %s187_s29 = scalar_lea.vmem %s148_s5, 32 }
   0x7   :  { %p184_p0 = scmp.ne.s32.totalorder %s148_s5, %s183_s28  ;;  %p188_p1 = scmp.lt.s32.totalorder %s148_s5, %s148_s5 }
   0x8   :  { %v124_v38 = vld [vmem:[#allocation2] sm:$0x1]  ;;  %p189_p2 = scmp.lt.s32.totalorder %s187_s29, %s183_s28 }
   0x9   :  { %167 = vmatmul.mubr.msk.bf16.vlgmr.msra.gmra.mrb[0].mxu0 %vm56_vm2, %v32_v4 }
   0xa   :  { %p190_p3 = por %p189_p2, %p188_p1 }
   0xc   :  { %p191_p4 = pnand %p190_p3, %p184_p0 }
  0xdc   :  { %v94_v7 = vpop.f32.mrb[0].mxu0 }
  0xdd   :  { %v95_v8 = vadd.f32 %v155_v6, %v94_v7  ;;  %v168_v9 = vpop.f32.mrb[1].mxu0 }
  0xde   :  { %v97_v10 = vpop.f32.mrb[2].mxu0 }
  0xdf   :  { %v169_v11 = vpop.f32.mrb[3].mxu0  ;;  %v101_v12 = vsel %vm100_vm3, %v95_v8, -inf }
  0xe0   :  { %102 = vmax.xlane.f32.xlu0 %v101_v12 }
  0xf6   :  { %117 = vperm.xlu0 %176, %v115_v13  }
 0x16d   :  { %v103_v14 = vpop.xlane.xlu0 %102 }
 0x16e   :  { %v104_v15 = vsub.f32 %v95_v8, %v103_v14 }
 0x170   :  { %v105_v16 = vmul.f32 1.442695, %v104_v15 }
 0x172   :  { %179 = vpow2.f32 %v105_v16 }
 0x175   :  { %v118_v19 = vpop.permute.xlu0 %117 }
 0x176   :  { %vm119_vm4 = vcmp.eq.s32.totalorder %v114_v18, %v118_v19 }
 0x177   :  { %v120_v22 = vsel %vm119_vm4, %v95_v8, 0.0 }
 0x178   :  { %v121_v23 = vsel %vm100_vm3, %v120_v22, 0.0 }
 0x17c   :  { %v180_v20 = vpop.eup %179 }
 0x17d   :  { %v107_v21 = vsel %vm100_vm3, %v180_v20, 0.0 }
 0x17e   :  { %108 = vadd.xlane.f32.xlu1 %v107_v21 }
 0x182   :  { %122 = vadd.xlane.f32.xlu1 %v121_v23 }
 0x20b   :  { %v109_v24 = vpop.xlane.xlu1 %108 }
 0x20c   :  { %181 = vlog2.f32 %v109_v24 }
 0x20f   :  { %v123_v28 = vpop.xlane.xlu1 %122 }
 0x216   :  { %v182_v25 = vpop.eup %181 }
 0x217   :  { %v111_v26 = vmul.f32 0.6931472, %v182_v25 }
 0x219   :  { %v112_v27 = vadd.f32 %v111_v26, %v103_v14 }
 0x21b   :  { %v125_v29 = vsub.f32 %v112_v27, %v123_v28 }
 0x21d   :  { %v127_v30 = vsel %vm126_vm5, %v125_v29, 0.0 }
 0x21e   :  { %128 = vadd.xlane.f32.xlu1 %v127_v30 }
 0x2ab   :  { %v129_v31 = vpop.xlane.xlu1 %128 }
 0x2ac   :  { %v130_v32 = vrot.slane %v129_v31, 4 }
 0x2ae   :  { %v131_v33 = vadd.f32 %v130_v32, %v129_v31 }
 0x2b0   :  { %v132_v34 = vrot.slane %v131_v33, 2 }
 0x2b2   :  { %v133_v35 = vadd.f32 %v132_v34, %v131_v33 }
 0x2b4   :  { %v134_v36 = vrot.slane %v133_v35, 1 }
 0x2b6   :  { %v135_v37 = vadd.f32 %v134_v36, %v133_v35 }
 0x2b8   :  { %170 = vpush %v135_v37 }
 0x2e9   :  { %s171_s27 = spop %170 }
 0x2ea   :  { %v137_v39 = vstv %s171_s27 }
 0x2eb   :  { %v138_v40 = vadd.f32 %v137_v39, %v124_v38 }
 0x2ed   :  { %140 = vst.msk [vmem:[#allocation2] sm:$0x1] %vm29_vm0, %v138_v40 }
 0x2ee   :  { %194 = shalt.err (!%p191_p4)
}
 0x2ef   :  { %s195_s8 = scalar_lea.hbm %s284_s6, 16 }
 0x2f0   :  { %p196_p5 = scmp.ne.s32.totalorder %s284_s6, %s195_s8  ;;  %p199_p6 = scmp.lt.u32.totalorder %s195_s8, %s284_s6 }
 0x2f2   :  { %p201_p7 = pnand %p199_p6, %p196_p5 }
 0x2f4   :  { %204 = shalt.err (!%p201_p7)
}
 0x2f5   :  { %150 = dma.vmem_to_hbm [thread:$0]  %s148_s5, 16, %s284_s6, [#allocation3]  }
 0x2f6   :  { %205 = dma.done.wait [#allocation3], 16  }
 0x2f7   :  { %206 = vsyncadd [#allocation3], 4294967280 }
 0x2f8   :  { %154 = vsyncpa [#allocation3], 1 }

// kernel: dual_nar_decoder_forward.38
= control target key start
LH: loop header
LB: loop body
LE: loop exit
PB: predicated region body
PF: predicated region fallthrough
CT: control target
= control target key end

     0   :  { %vm37_vm0 = vcmask 261120   ;;  %s516_s0 = inlined_call_operand.vmem [shape: f32[32,32], index: 0, kind: input, shape index: {}]   ;;  %s517_s1 = inlined_call_operand.vmem [shape: f32[1,32], index: 1, kind: input, shape index: {}]   ;;  %s518_s2 = inlined_call_operand.vmem [shape: f32[1,32], index: 2, kind: input, shape index: {}]   ;;  %s519_s3 = inlined_call_operand.vmem [shape: bf16[32,64], index: 3, kind: input, shape index: {}]   ;;  %s520_s4 = inlined_call_operand.vmem [shape: f32[1,64], index: 4, kind: input, shape index: {}]   ;;  %s521_s5 = inlined_call_operand.vmem [shape: s32[32,1], index: 5, kind: input, shape index: {}]   ;;  %s522_s6 = inlined_call_operand.hbm [shape: f32[1,1], index: 6, kind: output, shape index: {}]  }
   0x1   :  { %v31_v0 = vld [vmem:[%s516_s0] sm:$0xff]  ;;  %v33_v1 = vld [vmem:[%s516_s0 + $0x10] sm:$0xff]  ;;  %v32_v2 = vld [vmem:[%s516_s0 + $0x8] sm:$0xff] }
   0x2   :  { %v38_v3 = vsel %vm37_vm0, %v31_v0, 0.0  ;;  %v44_v4 = vsel %vm37_vm0, %v33_v1, 0.0  ;;  %v34_v5 = vld [vmem:[%s516_s0 + $0x18] sm:$0xff]  ;;  %v41_v6 = vsel %vm37_vm0, %v32_v2, 0.0 }
   0x3   :  { %39 = vadd.xlane.f32.xlu0 %v38_v3  ;;  %45 = vadd.xlane.f32.xlu1 %v44_v4  ;;  %v47_v7 = vsel %vm37_vm0, %v34_v5, 0.0 }
   0x4   :  { %11 = vsyncpa [#allocation3], 0  ;;  %v344_v28 = vld [vmem:[%s519_s3] sm:$0xff]   ;;  %v345_v29 = vld [vmem:[%s519_s3 + $0x8] sm:$0xff]   ;;  %v394_v31 = vmov 0   ;;  %vm191_vm1 = vcmask 523264  }
   0x5   :  { %329 = vmatprep.subr.bf16.mxu0 %v344_v28  ;;  %v243_v30 = vld [vmem:[%s521_s5 + $0x8] sm:$0xff]  ;;  %343 = vset.pattern.permute.xlu1 %v394_v31  ;;  %v318_v46 = vld [vmem:[%s517_s1] ss:$0 sm:$0xff]  ;;  %vm283_vm6 = vcmask 7168   ;;  %vm29_vm7 = vcmask 0  }
   0x6   :  { %330 = vmatpush3.bf16.msra.mxu0 %v344_v28  ;;  %342 = vset.pattern.permute.xlu0 %v394_v31  ;;  %v319_v52 = vld [vmem:[%s518_s2] ss:$0 sm:$0xff] }
   0x7   :  { %42 = vadd.xlane.f32.xlu0 %v41_v6  ;;  %48 = vadd.xlane.f32.xlu1 %v47_v7 }
   0x8   :  { %331 = vmatprep.subr.bf16.mxu0 %v345_v29 }
   0xa   :  { %332 = vmatpush3.bf16.msra.mxu0 %v345_v29  ;;  %v240_v29 = vlaneseq }
  0x90   :  { %v40_v8 = vpop.xlane.xlu0 %39  ;;  %v46_v9 = vpop.xlane.xlu1 %45 }
  0x91   :  { %v51_v10 = vmul.f32 0.03125, %v40_v8  ;;  %v53_v11 = vmul.f32 0.03125, %v46_v9 }
  0x93   :  { %v55_v12 = vsub.f32 %v31_v0, %v51_v10  ;;  %v57_v13 = vsub.f32 %v33_v1, %v53_v11  ;;  %v320_v0 = vld [vmem:[%s520_s4] ss:$0 sm:$0xff] }
  0x94   :  { %v43_v14 = vpop.xlane.xlu0 %42  ;;  %v49_v15 = vpop.xlane.xlu1 %48 }
  0x95   :  { %v52_v16 = vmul.f32 0.03125, %v43_v14  ;;  %v54_v17 = vmul.f32 0.03125, %v49_v15  ;;  %v59_v18 = vmul.f32 %v55_v12, %v55_v12  ;;  %v61_v19 = vmul.f32 %v57_v13, %v57_v13  ;;  %v245_v14 = vld [vmem:[%s521_s5 + $0x18] sm:$0xff]  ;;  %v242_v15 = vld [vmem:[%s521_s5] sm:$0xff] }
  0x97   :  { %v56_v20 = vsub.f32 %v32_v2, %v52_v16  ;;  %v58_v21 = vsub.f32 %v34_v5, %v54_v17  ;;  %v63_v22 = vsel %vm37_vm0, %v59_v18, 0.0  ;;  %v69_v23 = vsel %vm37_vm0, %v61_v19, 0.0 }
  0x98   :  { %64 = vadd.xlane.f32.xlu0 %v63_v22 }
  0x99   :  { %v60_v24 = vmul.f32 %v56_v20, %v56_v20  ;;  %v62_v25 = vmul.f32 %v58_v21, %v58_v21 }
  0x9b   :  { %v66_v26 = vsel %vm37_vm0, %v60_v24, 0.0  ;;  %v72_v27 = vsel %vm37_vm0, %v62_v25, 0.0 }
  0x9c   :  { %70 = vadd.xlane.f32.xlu0 %v69_v23  ;;  %67 = vadd.xlane.f32.xlu1 %v66_v26 }
  0xa0   :  { %73 = vadd.xlane.f32.xlu1 %v72_v27 }
  0xb1   :  { %250 = vperm.xlu1 %343, %v243_v30  }
 0x125   :  { %v65_v32 = vpop.xlane.xlu0 %64 }
 0x126   :  { %v75_v33 = vmul.f32 0.03125, %v65_v32 }
 0x128   :  { %v79_v34 = vadd.f32 1e-05, %v75_v33  ;;  %v241_v33 = vand.u32 127, %v240_v29 }
 0x129   :  { %v68_v35 = vpop.xlane.xlu1 %67  ;;  %v71_v36 = vpop.xlane.xlu0 %70 }
 0x12a   :  { %346 = vrsqrt.f32 %v79_v34  ;;  %v76_v37 = vmul.f32 0.03125, %v68_v35  ;;  %v77_v38 = vmul.f32 0.03125, %v71_v36 }
 0x12c   :  { %v80_v39 = vadd.f32 1e-05, %v76_v37  ;;  %v81_v40 = vadd.f32 1e-05, %v77_v38 }
 0x12d   :  { %v74_v41 = vpop.xlane.xlu1 %73 }
 0x12e   :  { %348 = vrsqrt.f32 %v80_v39  ;;  %v78_v42 = vmul.f32 0.03125, %v74_v41 }
 0x12f   :  { %350 = vrsqrt.f32 %v81_v40 }
 0x130   :  { %v82_v43 = vadd.f32 1e-05, %v78_v42 }
 0x131   :  { %v251_v16 = vpop.permute.xlu1 %250 }
 0x132   :  { %352 = vrsqrt.f32 %v82_v43  ;;  %vm259_vm4 = vcmp.eq.s32.totalorder %v241_v33, %v251_v16 }
 0x134   :  { %v347_v44 = vpop.eup %346 }
 0x135   :  { %v87_v45 = vmul.f32 %v347_v44, %v55_v12 }
 0x137   :  { %v97_v50 = vmul.f32 %v318_v46, %v87_v45 }
 0x138   :  { %v349_v47 = vpop.eup %348 }
 0x139   :  { %v351_v48 = vpop.eup %350  ;;  %v88_v49 = vmul.f32 %v349_v47, %v56_v20  ;;  %v107_v56 = vadd.f32 %v319_v52, %v97_v50 }
 0x13a   :  { %v89_v51 = vmul.f32 %v351_v48, %v57_v13  ;;  %v244_v13 = vld [vmem:[%s521_s5 + $0x10] sm:$0xff]  ;;  %s396_s5 = smov [#allocation2]  }
 0x13b   :  { %v98_v53 = vmul.f32 %v318_v46, %v88_v49  ;;  %s310_s18 = sshll.u32 %s396_s5, 4  ;;  %s311_s18 = int_to_ptr.vmem [resolvable:$true] %s310_s18 }
 0x13c   :  { %v353_v54 = vpop.eup %352  ;;  %v99_v58 = vmul.f32 %v318_v46, %v89_v51  ;;  %s370_s20 = scalar_lea.vmem %s311_s18, 16  ;;  %s374_s21 = scalar_lea.vmem %s311_s18, 32 }
 0x13d   :  { %v90_v55 = vmul.f32 %v353_v54, %v58_v21  ;;  %v108_v57 = vadd.f32 %v319_v52, %v98_v53  ;;  %p371_p0 = scmp.ne.s32.totalorder %s311_s18, %s370_s20  ;;  %p375_p1 = scmp.lt.s32.totalorder %s311_s18, %s311_s18 }
 0x13e   :  { %v109_v61 = vadd.f32 %v319_v52, %v99_v58  ;;  %p376_p2 = scmp.lt.s32.totalorder %s374_s21, %s370_s20 }
 0x13f   :  { %v111_v59 = vpack.c.bf16 %v108_v57, %v107_v56  ;;  %v100_v60 = vmul.f32 %v318_v46, %v90_v55 }
 0x140   :  { %p377_p3 = por %p376_p2, %p375_p1 }
 0x141   :  { %333 = vmatprep.mubr.msk.bf16.mxu0 %vm37_vm0, %v111_v59  ;;  %v110_v62 = vadd.f32 %v319_v52, %v100_v60 }
 0x142   :  { %p378_p4 = pnand %p377_p3, %p371_p0 }
 0x143   :  { %v112_v63 = vpack.c.bf16 %v110_v62, %v109_v61 }
 0x145   :  { %334 = vmatmul.mubr.msk.bf16.vlgmr.msra.gmra.mrb[0].mxu0 %vm37_vm0, %v112_v63 }
 0x218   :  { %v335_v1 = vpop.f32.mrb[0].mxu0 }
 0x219   :  { %v176_v2 = vpop.f32.mrb[1].mxu0  ;;  %v185_v7 = vadd.f32 %v335_v1, %v320_v0 }
 0x21a   :  { %v177_v3 = vadd.f32 %v320_v0, %v176_v2  ;;  %v336_v4 = vpop.f32.mrb[2].mxu0 }
 0x21b   :  { %v472_v5 = vadd.f32 %v336_v4, %v320_v0  ;;  %v179_v6 = vpop.f32.mrb[3].mxu0  ;;  %v198_v11 = vsel %vm191_vm1, %v185_v7, -inf }
 0x21c   :  { %v192_v8 = vsel %vm191_vm1, %v177_v3, -inf  ;;  %v180_v9 = vadd.f32 %v320_v0, %v179_v6 }
 0x21d   :  { %193 = vmax.xlane.f32.xlu0 %v192_v8  ;;  %v201_v10 = vsel %vm191_vm1, %v472_v5, -inf }
 0x21e   :  { %202 = vmax.xlane.f32.xlu1 %v201_v10  ;;  %v195_v12 = vsel %vm191_vm1, %v180_v9, -inf  ;;  %v263_v46 = vsel %vm259_vm4, %v180_v9, 0.0 }
 0x21f   :  { %v269_v47 = vsel %vm191_vm1, %v263_v46, 0.0 }
 0x221   :  { %199 = vmax.xlane.f32.xlu0 %v198_v11 }
 0x222   :  { %196 = vmax.xlane.f32.xlu1 %v195_v12 }
 0x233   :  { %253 = vperm.xlu1 %343, %v244_v13  }
 0x237   :  { %256 = vperm.xlu1 %343, %v245_v14   ;;  %247 = vperm.xlu0 %342, %v242_v15  }
 0x2aa   :  { %v194_v17 = vpop.xlane.xlu0 %193 }
 0x2ab   :  { %v204_v18 = vsub.f32 %v177_v3, %v194_v17  ;;  %v488_v19 = vpop.xlane.xlu1 %202 }
 0x2ac   :  { %v207_v21 = vsub.f32 %v472_v5, %v488_v19 }
 0x2ad   :  { %v208_v20 = vmul.f32 1.442695, %v204_v18 }
 0x2ae   :  { %v200_v22 = vpop.xlane.xlu0 %199  ;;  %v214_v26 = vmul.f32 1.442695, %v207_v21 }
 0x2af   :  { %354 = vpow2.f32 %v208_v20  ;;  %v206_v23 = vsub.f32 %v185_v7, %v200_v22  ;;  %v197_v24 = vpop.xlane.xlu1 %196 }
 0x2b0   :  { %v205_v25 = vsub.f32 %v180_v9, %v197_v24 }
 0x2b1   :  { %v212_v27 = vmul.f32 1.442695, %v206_v23 }
 0x2b2   :  { %v210_v28 = vmul.f32 1.442695, %v205_v25 }
 0x2b3   :  { %356 = vpow2.f32 %v212_v27  ;;  %v254_v31 = vpop.permute.xlu1 %253 }
 0x2b4   :  { %358 = vpow2.f32 %v210_v28  ;;  %vm260_vm2 = vcmp.eq.s32.totalorder %v241_v33, %v254_v31 }
 0x2b5   :  { %360 = vpow2.f32 %v214_v26  ;;  %v264_v40 = vsel %vm260_vm2, %v185_v7, 0.0 }
 0x2b6   :  { %v248_v35 = vpop.permute.xlu0 %247  ;;  %v272_v42 = vsel %vm191_vm1, %v264_v40, 0.0 }
 0x2b7   :  { %vm258_vm3 = vcmp.eq.s32.totalorder %v241_v33, %v248_v35  ;;  %v257_v44 = vpop.permute.xlu1 %256 }
 0x2b8   :  { %v262_v43 = vsel %vm258_vm3, %v177_v3, 0.0  ;;  %vm261_vm5 = vcmp.eq.s32.totalorder %v241_v33, %v257_v44 }
 0x2b9   :  { %v355_v30 = vpop.eup %354  ;;  %v266_v45 = vsel %vm191_vm1, %v262_v43, 0.0  ;;  %v265_v48 = vsel %vm261_vm5, %v472_v5, 0.0 }
 0x2ba   :  { %v216_v32 = vsel %vm191_vm1, %v355_v30, 0.0  ;;  %v275_v49 = vsel %vm191_vm1, %v265_v48, 0.0 }
 0x2bb   :  { %217 = vadd.xlane.f32.xlu1 %v216_v32 }
 0x2bd   :  { %v357_v34 = vpop.eup %356 }
 0x2be   :  { %v359_v36 = vpop.eup %358  ;;  %v222_v37 = vsel %vm191_vm1, %v357_v34, 0.0 }
 0x2bf   :  { %v361_v38 = vpop.eup %360  ;;  %223 = vadd.xlane.f32.xlu1 %v222_v37  ;;  %v219_v39 = vsel %vm191_vm1, %v359_v36, 0.0 }
 0x2c0   :  { %220 = vadd.xlane.f32.xlu0 %v219_v39  ;;  %v225_v41 = vsel %vm191_vm1, %v361_v38, 0.0 }
 0x2c3   :  { %226 = vadd.xlane.f32.xlu1 %v225_v41 }
 0x2c4   :  { %273 = vadd.xlane.f32.xlu0 %v272_v42 }
 0x2c7   :  { %267 = vadd.xlane.f32.xlu1 %v266_v45 }
 0x2cb   :  { %270 = vadd.xlane.f32.xlu1 %v269_v47 }
 0x2cf   :  { %276 = vadd.xlane.f32.xlu1 %v275_v49 }
 0x348   :  { %v218_v50 = vpop.xlane.xlu1 %217 }
 0x349   :  { %362 = vlog2.f32 %v218_v50 }
 0x34c   :  { %v224_v51 = vpop.xlane.xlu1 %223 }
 0x34d   :  { %364 = vlog2.f32 %v224_v51  ;;  %v221_v52 = vpop.xlane.xlu0 %220 }
 0x34e   :  { %366 = vlog2.f32 %v221_v52 }
 0x350   :  { %v227_v53 = vpop.xlane.xlu1 %226 }
 0x351   :  { %368 = vlog2.f32 %v227_v53  ;;  %v274_v4 = vpop.xlane.xlu0 %273 }
 0x353   :  { %v363_v54 = vpop.eup %362 }
 0x354   :  { %v229_v55 = vmul.f32 0.6931472, %v363_v54  ;;  %v268_v56 = vpop.xlane.xlu1 %267 }
 0x356   :  { %v236_v58 = vadd.f32 %v229_v55, %v194_v17  ;;  %v395_v17 = vmov 0.0  }
 0x357   :  { %v365_v57 = vpop.eup %364  ;;  %30 = vst.msk [vmem:[#allocation2] sm:$0x1] %vm29_vm7, %v395_v17 }
 0x358   :  { %v367_v59 = vpop.eup %366  ;;  %v233_v60 = vmul.f32 0.6931472, %v365_v57  ;;  %v271_v62 = vpop.xlane.xlu1 %270  ;;  %v279_v1 = vsub.f32 %v236_v58, %v268_v56 }
 0x359   :  { %v231_v61 = vmul.f32 0.6931472, %v367_v59 }
 0x35a   :  { %v238_v63 = vadd.f32 %v233_v60, %v200_v22  ;;  %v284_v8 = vsel %vm283_vm6, %v279_v1, 0.0 }
 0x35b   :  { %v369_v0 = vpop.eup %368  ;;  %v237_v2 = vadd.f32 %v231_v61, %v197_v24 }
 0x35c   :  { %v235_v3 = vmul.f32 0.6931472, %v369_v0  ;;  %v281_v5 = vsub.f32 %v238_v63, %v274_v4  ;;  %v277_v10 = vpop.xlane.xlu1 %276 }
 0x35d   :  { %v280_v6 = vsub.f32 %v237_v2, %v271_v62 }
 0x35e   :  { %v239_v7 = vadd.f32 %v235_v3, %v488_v19  ;;  %v287_v13 = vsel %vm283_vm6, %v281_v5, 0.0  ;;  %v278_v25 = vld [vmem:[#allocation2] sm:$0x1] }
 0x35f   :  { %v285_v9 = vsel %vm283_vm6, %v280_v6, 0.0 }
 0x360   :  { %v286_v11 = vadd.f32 %v285_v9, %v284_v8  ;;  %v282_v12 = vsub.f32 %v239_v7, %v277_v10 }
 0x362   :  { %v288_v14 = vadd.f32 %v287_v13, %v286_v11  ;;  %v289_v15 = vsel %vm283_vm6, %v282_v12, 0.0 }
 0x364   :  { %v290_v16 = vadd.f32 %v289_v15, %v288_v14 }
 0x366   :  { %291 = vadd.xlane.f32.xlu0 %v290_v16 }
 0x3f3   :  { %v292_v18 = vpop.xlane.xlu0 %291 }
 0x3f4   :  { %v293_v20 = vrot.slane %v292_v18, 4 }
 0x3f6   :  { %v294_v21 = vadd.f32 %v293_v20, %v292_v18 }
 0x3f8   :  { %v295_v22 = vrot.slane %v294_v21, 2 }
 0x3fa   :  { %v296_v23 = vadd.f32 %v295_v22, %v294_v21 }
 0x3fc   :  { %v297_v19 = vrot.slane %v296_v23, 1 }
 0x3fe   :  { %v298_v24 = vadd.f32 %v297_v19, %v296_v23 }
 0x400   :  { %337 = vpush %v298_v24 }
 0x431   :  { %s338_s19 = spop %337 }
 0x432   :  { %v300_v26 = vstv %s338_s19 }
 0x433   :  { %v301_v27 = vadd.f32 %v300_v26, %v278_v25 }
 0x435   :  { %303 = vst.msk [vmem:[#allocation2] sm:$0x1] %vm29_vm7, %v301_v27 }
 0x436   :  { %381 = shalt.err (!%p378_p4)
}
 0x437   :  { %s382_s24 = scalar_lea.hbm %s522_s6, 16 }
 0x438   :  { %p383_p5 = scmp.ne.s32.totalorder %s522_s6, %s382_s24  ;;  %p386_p6 = scmp.lt.u32.totalorder %s382_s24, %s522_s6 }
 0x43a   :  { %p388_p7 = pnand %p386_p6, %p383_p5 }
 0x43c   :  { %391 = shalt.err (!%p388_p7)
}
 0x43d   :  { %313 = dma.vmem_to_hbm [thread:$0]  %s311_s18, 16, %s522_s6, [#allocation3]  }
 0x43e   :  { %392 = dma.done.wait [#allocation3], 16  }
 0x43f   :  { %393 = vsyncadd [#allocation3], 4294967280 }
 0x440   :  { %317 = vsyncpa [#allocation3], 1 }

</bundles_post_ra>
